<compile_context>
chip_gen: v5e
topology: v5e:2x2
jax: 0.10.0
libtpu: 0.0.40
codegen_flags: <defaults>
</compile_context>

<pallas_src>
import numpy as np
import jax
import jax.numpy as jnp
from jax import lax
from jax.experimental import pallas as pl
from jax.experimental.pallas import tpu as pltpu

_MATMUL_DTYPE = jnp.bfloat16   # MXU operand dtype (accumulation is always f32)
_C_IN = 128                    # comb2 channels
_C_MID = 64                    # out1 / crop channels
_EPS = 1e-5                    # InstanceNorm3d default eps


# ----------------------------------------------------------------------------
# trilinear (align_corners=True) interpolation coefficients (trace-time consts)
# ----------------------------------------------------------------------------
def _linear_coeffs(in_size: int, out_size: int):
    """Per-output-index (i0, i1, w0, w1) for align_corners=True linear interp."""
    coeffs = []
    for i in range(out_size):
        if out_size == 1 or in_size == 1:
            coeffs.append((0, 0, 1.0, 0.0))
            continue
        s = i * (in_size - 1) / (out_size - 1)
        i0 = min(int(np.floor(s)), in_size - 1)
        i1 = min(i0 + 1, in_size - 1)
        w1 = float(s - i0)
        coeffs.append((i0, i1, 1.0 - w1, w1))
    return coeffs


# ----------------------------------------------------------------------------
# Pallas kernel: one crop shape, grid over proposals of that shape
# ----------------------------------------------------------------------------
def _make_group_kernel(d4, h4, w4, S):
    d2, h2, w2 = 2 * d4, 2 * h4, 2 * w4
    n4 = d4 * h4 * w4
    N = d2 * h2 * w2
    w_coef = _linear_coeffs(w4, w2)
    h_coef = _linear_coeffs(h4, h2)
    d_coef = _linear_coeffs(d4, d2)
    pool_fast = (d2 % S == 0) and (h2 % S == 0) and (w2 % S == 0)

    def upsample_axis(x, axis, coef):
        # x2 linear upsample along `axis` with compile-time weights (VPU only).
        parts = []
        for (i0, i1, a0, a1) in coef:
            s0 = lax.slice_in_dim(x, i0, i0 + 1, axis=axis)
            if i0 == i1:                      # clamped edge: a0 + a1 == 1
                parts.append(s0)
            elif a1 == 0.0:
                parts.append(s0 if a0 == 1.0 else a0 * s0)
            else:
                s1 = lax.slice_in_dim(x, i1, i1 + 1, axis=axis)
                parts.append(a0 * s0 + a1 * s1)
        return jnp.concatenate(parts, axis=axis)

    def instance_norm_relu(v, gamma, beta):
        # one-pass (sum, sum-of-squares) InstanceNorm3d(affine) + ReLU, f32.
        s1 = jnp.sum(v, axis=0, keepdims=True)
        s2 = jnp.sum(v * v, axis=0, keepdims=True)
        mean = s1 * (1.0 / N)
        var = jnp.maximum(s2 * (1.0 / N) - mean * mean, 0.0)
        return jnp.maximum((v - mean) * lax.rsqrt(var + _EPS) * gamma + beta, 0.0)

    def kernel(fe1_ref, o1_ref, w2_ref, b2_ref, g2_ref, bt2_ref,
               wb_ref, bb_ref, gb_ref, btb_ref, o_ref):
        # --- up2 1x1x1 conv on the COARSE grid (conv <-> linear upsample commute) ---
        x4 = fe1_ref[0]                                           # bf16 (n4, 128)
        y4 = jnp.dot(x4, w2_ref[...],
                     preferred_element_type=jnp.float32) + b2_ref[...]
        y4 = y4.reshape(d4, h4, w4, _C_MID)                       # f32

        # --- separable trilinear x2 upsample (align_corners=True), VPU weights ---
        y = upsample_axis(y4, 2, w_coef)                          # (d4, h4, w2, 64)
        y = upsample_axis(y, 1, h_coef)                           # (d4, h2, w2, 64)
        y = upsample_axis(y, 0, d_coef)                           # (d2, h2, w2, 64)
        y = instance_norm_relu(y.reshape(N, _C_MID), g2_ref[...], bt2_ref[...])

        # --- back2: channel concat + ONE K=128 matmul + InstanceNorm + ReLU ---
        o1 = o1_ref[0]                                            # bf16 (N, 64)
        cat = jnp.concatenate([y.astype(_MATMUL_DTYPE), o1], axis=-1)   # (N, 128)
        z = jnp.dot(cat, wb_ref[...],
                    preferred_element_type=jnp.float32) + bb_ref[...]
        z = instance_norm_relu(z, gb_ref[...], btb_ref[...])
        z = z.reshape(d2, h2, w2, _C_MID)

        # --- adaptive_max_pool3d to (S, S, S) ---
        if pool_fast:
            r = z.reshape(S, d2 // S, h2, w2, _C_MID).max(axis=1)
            r = r.reshape(S, S, h2 // S, w2, _C_MID).max(axis=2)
            r = r.reshape(S, S, S, w2 // S, _C_MID).max(axis=3)
            pooled = r.reshape(S * S * S, _C_MID)
        else:  # ragged fallback: PyTorch floor/ceil bin edges
            cells = []
            for i in range(S):
                za, zb = (i * d2) // S, -(-((i + 1) * d2) // S)
                for j in range(S):
                    ya, yb = (j * h2) // S, -(-((j + 1) * h2) // S)
                    for k in range(S):
                        xa, xb = (k * w2) // S, -(-((k + 1) * w2) // S)
                        cell = z[za:zb, ya:yb, xa:xb, :]
                        cells.append(jnp.max(cell, axis=(0, 1, 2)).reshape(1, _C_MID))
            pooled = jnp.concatenate(cells, axis=0)

        # lane-dense (full 128-lane) store; wrapper slices back to 64 channels.
        o_ref[0] = jnp.concatenate([pooled, jnp.zeros_like(pooled)], axis=-1)

    return kernel


def _run_group(fe1_stack, o1_stack, kparams, S, d4, h4, w4):
    """One pallas_call for all proposals sharing crop shape (d4, h4, w4)."""
    P = fe1_stack.shape[0]
    n4 = d4 * h4 * w4
    N = 8 * n4
    n_out = S * S * S
    kernel = _make_group_kernel(d4, h4, w4, S)

    crop_spec = pl.BlockSpec((1, n4, _C_IN), lambda p: (p, 0, 0))
    o1_spec = pl.BlockSpec((1, N, _C_MID), lambda p: (p, 0, 0))
    wspec = pl.BlockSpec((_C_IN, _C_MID), lambda p: (0, 0))
    vspec = pl.BlockSpec((1, _C_MID), lambda p: (0, 0))

    return pl.pallas_call(
        kernel,
        grid=(P,),
        in_specs=[crop_spec, o1_spec,
                  wspec, vspec, vspec, vspec,
                  wspec, vspec, vspec, vspec],
        out_specs=pl.BlockSpec((1, n_out, 2 * _C_MID), lambda p: (p, 0, 0)),
        out_shape=jax.ShapeDtypeStruct((P, n_out, 2 * _C_MID), jnp.float32),
        compiler_params=pltpu.CompilerParams(
            dimension_semantics=("parallel",),       # shard proposals across TCs (v7x)
            vmem_limit_bytes=64 * 1024 * 1024),
    )(fe1_stack, o1_stack,
      kparams['w_up2'], kparams['b_up2'], kparams['g_up2'], kparams['bt_up2'],
      kparams['w_back2'], kparams['b_back2'], kparams['g_back2'], kparams['bt_back2'])


# ----------------------------------------------------------------------------
# CropRoi forward (wrapper = crop gather / layout glue; compute in the kernel)
# ----------------------------------------------------------------------------
def crop_roi_forward(f, inputs, proposals, params, rcnn_crop_size):
    img, out1, comb2 = f
    img = jnp.squeeze(img, 0)      # kept for parity with the PyTorch forward
    out1 = jnp.squeeze(out1, 0)    # (B, 64,  D/2, H/2, W/2)
    comb2 = jnp.squeeze(comb2, 0)  # (B, 128, D/4, H/4, W/4)
    _DEPTH, _HEIGHT, _WIDTH = inputs.shape[2:]   # set-but-unused, as in PyTorch
    S = int(rcnn_crop_size)

    # One channels-last transpose + bf16 cast for the WHOLE batch (hoisted out of
    # the proposal loop).
    comb2_cl = jnp.transpose(comb2, (0, 2, 3, 4, 1)).astype(_MATMUL_DTYPE)
    out1_cl = jnp.transpose(out1, (0, 2, 3, 4, 1)).astype(_MATMUL_DTYPE)

    kparams = {
        'w_up2': params['w_up2'].astype(_MATMUL_DTYPE),
        'w_back2': params['w_back2'].astype(_MATMUL_DTYPE),
        'b_up2': params['b_up2'].astype(jnp.float32),
        'g_up2': params['g_up2'].astype(jnp.float32),
        'bt_up2': params['bt_up2'].astype(jnp.float32),
        'b_back2': params['b_back2'].astype(jnp.float32),
        'g_back2': params['g_back2'].astype(jnp.float32),
        'bt_back2': params['bt_back2'].astype(jnp.float32),
    }

    # Gather crops (static slices of the already-transposed arrays) and bucket
    # proposals by crop shape: ONE pallas_call per distinct shape, grid over its
    # proposals.
    # TODO(synk): for fully dynamic shapes, move the gather into the kernel with
    # PrefetchScalarGridSpec offsets + memory_space=pl.ANY DMA, and tile the D axis
    # with running InstanceNorm sums for very large ROIs (v7x 64 MiB VMEM).
    groups = {}
    for idx, p in enumerate(proposals):
        b = int(p[0])
        zs, ys, xs, ze, ye, xe = [float(v) for v in p[1:]]
        c0 = np.array([zs, ys, xs], dtype=np.float64)
        c1 = np.array([ze, ye, xe], dtype=np.float64)
        if np.any(c1 - c0 < 1):   # degenerate-box fixup, identical to PyTorch
            for i in range(3):
                if c1[i] == 0:
                    c1[i] = c1[i] + 4
                if c1[i] - c0[i] == 0:
                    c1[i] = c1[i] + 4
            print(p)
            print('c0:', c0, ', c1:', c1)
        ze, ye, xe = [float(v) for v in c1]

        fe1 = comb2_cl[b, int(zs / 4):int(ze / 4), int(ys / 4):int(ye / 4),
                       int(xs / 4):int(xe / 4), :]               # (d4,h4,w4,128)
        o1c = out1_cl[b, int(zs / 2):int(ze / 2), int(ys / 2):int(ye / 2),
                      int(xs / 2):int(xe / 2), :]                # (d2,h2,w2,64)
        d4, h4, w4 = fe1.shape[:3]
        assert o1c.shape[:3] == (2 * d4, 2 * h4, 2 * w4), \
            "up2 output / out1 crop spatial mismatch (proposal coords must align)"
        fe1_flat = fe1.reshape(d4 * h4 * w4, _C_IN)
        o1_flat = o1c.reshape(8 * d4 * h4 * w4, _C_MID)
        groups.setdefault((d4, h4, w4), []).append((idx, fe1_flat, o1_flat))

    crops = [None] * len(proposals)
    for (d4, h4, w4), items in groups.items():
        fe1_stack = jnp.stack([it[1] for it in items])           # (P, n4, 128)
        o1_stack = jnp.stack([it[2] for it in items])            # (P, N,  64)
        out = _run_group(fe1_stack, o1_stack, kparams, S, d4, h4, w4)  # (P,S^3,128)
        pooled = out[:, :, :_C_MID].reshape(len(items), S, S, S, _C_MID)
        pooled = jnp.transpose(pooled, (0, 4, 1, 2, 3))          # (P, 64, S, S, S)
        for j, (idx, _, _) in enumerate(items):
            crops[idx] = pooled[j]

    return jnp.stack(crops)  # (num_proposals, 64, S, S, S) == PyTorch output


# ----------------------------------------------------------------------------
# main
# ----------------------------------------------------------------------------
if __name__ == "__main__":
    key = jax.random.PRNGKey(0)
    k_img, k_out1, k_comb2, k_w2, k_b2, k_wb, k_bb = jax.random.split(key, 7)

    B = 2
    D = H = W = 32
    rcnn_crop_size = 2

    # feature pyramid (extra leading dim of 1 is squeezed in forward, as in PyTorch)
    img = jax.random.normal(k_img, (1, B, 1, D, H, W), jnp.float32)
    out1 = jax.random.normal(k_out1, (1, B, 64, D // 2, H // 2, W // 2), jnp.float32)
    comb2 = jax.random.normal(k_comb2, (1, B, 128, D // 4, H // 4, W // 4), jnp.float32)
    inputs = jnp.zeros((B, 1, D, H, W), jnp.float32)

    # deterministic parameters (PyTorch InstanceNorm affine defaults: gamma=1, beta=0)
    params = {
        'w_up2': 0.05 * jax.random.normal(k_w2, (128, 64), jnp.float32),
        'b_up2': 0.05 * jax.random.normal(k_b2, (1, 64), jnp.float32),
        'g_up2': jnp.ones((1, 64), jnp.float32),
        'bt_up2': jnp.zeros((1, 64), jnp.float32),
        'w_back2': 0.05 * jax.random.normal(k_wb, (128, 64), jnp.float32),
        'b_back2': 0.05 * jax.random.normal(k_bb, (1, 64), jnp.float32),
        'g_back2': jnp.ones((1, 64), jnp.float32),
        'bt_back2': jnp.zeros((1, 64), jnp.float32),
    }

    proposals = [
        [0, 0, 0, 0, 16, 16, 16],
        [1, 8, 8, 8, 24, 24, 24],
    ]

    crops = crop_roi_forward((img, out1, comb2), inputs, proposals,
                             params, rcnn_crop_size)
    crops = jax.block_until_ready(crops)

    assert crops.shape == (len(proposals), 64,
                           rcnn_crop_size, rcnn_crop_size, rcnn_crop_size)
    assert bool(jnp.all(jnp.isfinite(crops)))
    print("KERNEL_OK")
</pallas_src>

<mosaic_0001>
module attributes {stable_mosaic.version = 11 : i64} {
  func.func @kernel(%arg0: i32, %arg1: memref<1x64x128xbf16, #tpu.memory_space<vmem>>, %arg2: memref<1x512x64xbf16, #tpu.memory_space<vmem>>, %arg3: memref<128x64xbf16, #tpu.memory_space<vmem>>, %arg4: memref<1x64xf32, #tpu.memory_space<vmem>>, %arg5: memref<1x64xf32, #tpu.memory_space<vmem>>, %arg6: memref<1x64xf32, #tpu.memory_space<vmem>>, %arg7: memref<128x64xbf16, #tpu.memory_space<vmem>>, %arg8: memref<1x64xf32, #tpu.memory_space<vmem>>, %arg9: memref<1x64xf32, #tpu.memory_space<vmem>>, %arg10: memref<1x64xf32, #tpu.memory_space<vmem>>, %arg11: memref<1x8x128xf32, #tpu.memory_space<vmem>>) attributes {dimension_semantics = [#tpu.dimension_semantics<parallel>], iteration_bounds = array<i64: 2>, scalar_prefetch = 0 : i64, scratch_operands = 0 : i64, tpu.core_type = #tpu.core_type<tc>, window_params = [{transform_indices = @transform_0, window_bounds = array<i64: 1, 64, 128>}, {transform_indices = @transform_1, window_bounds = array<i64: 1, 512, 64>}, {pipeline_mode = #tpu.pipeline_mode<synchronous>, transform_indices = @transform_2, window_bounds = array<i64: 128, 64>}, {pipeline_mode = #tpu.pipeline_mode<synchronous>, transform_indices = @transform_3, window_bounds = array<i64: 1, 64>}, {pipeline_mode = #tpu.pipeline_mode<synchronous>, transform_indices = @transform_4, window_bounds = array<i64: 1, 64>}, {pipeline_mode = #tpu.pipeline_mode<synchronous>, transform_indices = @transform_5, window_bounds = array<i64: 1, 64>}, {pipeline_mode = #tpu.pipeline_mode<synchronous>, transform_indices = @transform_6, window_bounds = array<i64: 128, 64>}, {pipeline_mode = #tpu.pipeline_mode<synchronous>, transform_indices = @transform_7, window_bounds = array<i64: 1, 64>}, {pipeline_mode = #tpu.pipeline_mode<synchronous>, transform_indices = @transform_8, window_bounds = array<i64: 1, 64>}, {pipeline_mode = #tpu.pipeline_mode<synchronous>, transform_indices = @transform_9, window_bounds = array<i64: 1, 64>}, {transform_indices = @transform_10, window_bounds = array<i64: 1, 8, 128>}]} {
    %c0 = arith.constant 0 : index
    %c0_0 = arith.constant 0 : index
    %c0_1 = arith.constant 0 : index
    %0 = vector.load %arg1[%c0, %c0_0, %c0_1] : memref<1x64x128xbf16, #tpu.memory_space<vmem>>, vector<1x64x128xbf16>
    %1 = vector.shape_cast %0 : vector<1x64x128xbf16> to vector<64x128xbf16>
    %c0_2 = arith.constant 0 : index
    %c0_3 = arith.constant 0 : index
    %2 = vector.load %arg3[%c0_2, %c0_3] : memref<128x64xbf16, #tpu.memory_space<vmem>>, vector<128x64xbf16>
    %cst = arith.constant dense<0.000000e+00> : vector<64x64xf32>
    %3 = tpu.matmul %1, %2, %cst {dimension_numbers = #tpu.dot_dimension_numbers<[1], [0], [0], [1], [0, 0, 1, 1], [], []>} : vector<64x128xbf16>, vector<128x64xbf16>, vector<64x64xf32> -> vector<64x64xf32>
    %c0_4 = arith.constant 0 : index
    %c0_5 = arith.constant 0 : index
    %4 = vector.load %arg4[%c0_4, %c0_5] : memref<1x64xf32, #tpu.memory_space<vmem>>, vector<1x64xf32>
    %5 = vector.broadcast %4 : vector<1x64xf32> to vector<64x64xf32>
    %6 = arith.addf %3, %5 : vector<64x64xf32>
    %7 = vector.shape_cast %6 : vector<64x64xf32> to vector<4x4x4x64xf32>
    %8 = vector.extract_strided_slice %7 {offsets = [0, 0, 0, 0], sizes = [4, 4, 1, 64], strides = [1, 1, 1, 1]} : vector<4x4x4x64xf32> to vector<4x4x1x64xf32>
    %9 = vector.extract_strided_slice %7 {offsets = [0, 0, 0, 0], sizes = [4, 4, 1, 64], strides = [1, 1, 1, 1]} : vector<4x4x4x64xf32> to vector<4x4x1x64xf32>
    %10 = vector.extract_strided_slice %7 {offsets = [0, 0, 1, 0], sizes = [4, 4, 1, 64], strides = [1, 1, 1, 1]} : vector<4x4x4x64xf32> to vector<4x4x1x64xf32>
    %cst_6 = arith.constant 0.571428597 : f32
    %11 = vector.broadcast %cst_6 : f32 to vector<4x4x1x64xf32>
    %12 = arith.mulf %11, %9 : vector<4x4x1x64xf32>
    %cst_7 = arith.constant 0.428571433 : f32
    %13 = vector.broadcast %cst_7 : f32 to vector<4x4x1x64xf32>
    %14 = arith.mulf %13, %10 : vector<4x4x1x64xf32>
    %15 = arith.addf %12, %14 : vector<4x4x1x64xf32>
    %16 = vector.extract_strided_slice %7 {offsets = [0, 0, 0, 0], sizes = [4, 4, 1, 64], strides = [1, 1, 1, 1]} : vector<4x4x4x64xf32> to vector<4x4x1x64xf32>
    %17 = vector.extract_strided_slice %7 {offsets = [0, 0, 1, 0], sizes = [4, 4, 1, 64], strides = [1, 1, 1, 1]} : vector<4x4x4x64xf32> to vector<4x4x1x64xf32>
    %cst_8 = arith.constant 0.142857149 : f32
    %18 = vector.broadcast %cst_8 : f32 to vector<4x4x1x64xf32>
    %19 = arith.mulf %18, %16 : vector<4x4x1x64xf32>
    %cst_9 = arith.constant 0.857142865 : f32
    %20 = vector.broadcast %cst_9 : f32 to vector<4x4x1x64xf32>
    %21 = arith.mulf %20, %17 : vector<4x4x1x64xf32>
    %22 = arith.addf %19, %21 : vector<4x4x1x64xf32>
    %23 = vector.extract_strided_slice %7 {offsets = [0, 0, 1, 0], sizes = [4, 4, 1, 64], strides = [1, 1, 1, 1]} : vector<4x4x4x64xf32> to vector<4x4x1x64xf32>
    %24 = vector.extract_strided_slice %7 {offsets = [0, 0, 2, 0], sizes = [4, 4, 1, 64], strides = [1, 1, 1, 1]} : vector<4x4x4x64xf32> to vector<4x4x1x64xf32>
    %cst_10 = arith.constant 0.714285731 : f32
    %25 = vector.broadcast %cst_10 : f32 to vector<4x4x1x64xf32>
    %26 = arith.mulf %25, %23 : vector<4x4x1x64xf32>
    %cst_11 = arith.constant 0.285714298 : f32
    %27 = vector.broadcast %cst_11 : f32 to vector<4x4x1x64xf32>
    %28 = arith.mulf %27, %24 : vector<4x4x1x64xf32>
    %29 = arith.addf %26, %28 : vector<4x4x1x64xf32>
    %30 = vector.extract_strided_slice %7 {offsets = [0, 0, 1, 0], sizes = [4, 4, 1, 64], strides = [1, 1, 1, 1]} : vector<4x4x4x64xf32> to vector<4x4x1x64xf32>
    %31 = vector.extract_strided_slice %7 {offsets = [0, 0, 2, 0], sizes = [4, 4, 1, 64], strides = [1, 1, 1, 1]} : vector<4x4x4x64xf32> to vector<4x4x1x64xf32>
    %cst_12 = arith.constant 0.285714298 : f32
    %32 = vector.broadcast %cst_12 : f32 to vector<4x4x1x64xf32>
    %33 = arith.mulf %32, %30 : vector<4x4x1x64xf32>
    %cst_13 = arith.constant 0.714285731 : f32
    %34 = vector.broadcast %cst_13 : f32 to vector<4x4x1x64xf32>
    %35 = arith.mulf %34, %31 : vector<4x4x1x64xf32>
    %36 = arith.addf %33, %35 : vector<4x4x1x64xf32>
    %37 = vector.extract_strided_slice %7 {offsets = [0, 0, 2, 0], sizes = [4, 4, 1, 64], strides = [1, 1, 1, 1]} : vector<4x4x4x64xf32> to vector<4x4x1x64xf32>
    %38 = vector.extract_strided_slice %7 {offsets = [0, 0, 3, 0], sizes = [4, 4, 1, 64], strides = [1, 1, 1, 1]} : vector<4x4x4x64xf32> to vector<4x4x1x64xf32>
    %cst_14 = arith.constant 0.857142865 : f32
    %39 = vector.broadcast %cst_14 : f32 to vector<4x4x1x64xf32>
    %40 = arith.mulf %39, %37 : vector<4x4x1x64xf32>
    %cst_15 = arith.constant 0.142857149 : f32
    %41 = vector.broadcast %cst_15 : f32 to vector<4x4x1x64xf32>
    %42 = arith.mulf %41, %38 : vector<4x4x1x64xf32>
    %43 = arith.addf %40, %42 : vector<4x4x1x64xf32>
    %44 = vector.extract_strided_slice %7 {offsets = [0, 0, 2, 0], sizes = [4, 4, 1, 64], strides = [1, 1, 1, 1]} : vector<4x4x4x64xf32> to vector<4x4x1x64xf32>
    %45 = vector.extract_strided_slice %7 {offsets = [0, 0, 3, 0], sizes = [4, 4, 1, 64], strides = [1, 1, 1, 1]} : vector<4x4x4x64xf32> to vector<4x4x1x64xf32>
    %cst_16 = arith.constant 0.428571433 : f32
    %46 = vector.broadcast %cst_16 : f32 to vector<4x4x1x64xf32>
    %47 = arith.mulf %46, %44 : vector<4x4x1x64xf32>
    %cst_17 = arith.constant 0.571428597 : f32
    %48 = vector.broadcast %cst_17 : f32 to vector<4x4x1x64xf32>
    %49 = arith.mulf %48, %45 : vector<4x4x1x64xf32>
    %50 = arith.addf %47, %49 : vector<4x4x1x64xf32>
    %51 = vector.extract_strided_slice %7 {offsets = [0, 0, 3, 0], sizes = [4, 4, 1, 64], strides = [1, 1, 1, 1]} : vector<4x4x4x64xf32> to vector<4x4x1x64xf32>
    %52 = tpu.concatenate %8, %15, %22, %29, %36, %43, %50, %51 in 2 : vector<4x4x1x64xf32>, vector<4x4x1x64xf32>, vector<4x4x1x64xf32>, vector<4x4x1x64xf32>, vector<4x4x1x64xf32>, vector<4x4x1x64xf32>, vector<4x4x1x64xf32>, vector<4x4x1x64xf32> -> vector<4x4x8x64xf32>
    %53 = vector.extract_strided_slice %52 {offsets = [0, 0, 0, 0], sizes = [4, 1, 8, 64], strides = [1, 1, 1, 1]} : vector<4x4x8x64xf32> to vector<4x1x8x64xf32>
    %54 = vector.extract_strided_slice %52 {offsets = [0, 0, 0, 0], sizes = [4, 1, 8, 64], strides = [1, 1, 1, 1]} : vector<4x4x8x64xf32> to vector<4x1x8x64xf32>
    %55 = vector.extract_strided_slice %52 {offsets = [0, 1, 0, 0], sizes = [4, 1, 8, 64], strides = [1, 1, 1, 1]} : vector<4x4x8x64xf32> to vector<4x1x8x64xf32>
    %cst_18 = arith.constant 0.571428597 : f32
    %56 = vector.broadcast %cst_18 : f32 to vector<4x1x8x64xf32>
    %57 = arith.mulf %56, %54 : vector<4x1x8x64xf32>
    %cst_19 = arith.constant 0.428571433 : f32
    %58 = vector.broadcast %cst_19 : f32 to vector<4x1x8x64xf32>
    %59 = arith.mulf %58, %55 : vector<4x1x8x64xf32>
    %60 = arith.addf %57, %59 : vector<4x1x8x64xf32>
    %61 = vector.extract_strided_slice %52 {offsets = [0, 0, 0, 0], sizes = [4, 1, 8, 64], strides = [1, 1, 1, 1]} : vector<4x4x8x64xf32> to vector<4x1x8x64xf32>
    %62 = vector.extract_strided_slice %52 {offsets = [0, 1, 0, 0], sizes = [4, 1, 8, 64], strides = [1, 1, 1, 1]} : vector<4x4x8x64xf32> to vector<4x1x8x64xf32>
    %cst_20 = arith.constant 0.142857149 : f32
    %63 = vector.broadcast %cst_20 : f32 to vector<4x1x8x64xf32>
    %64 = arith.mulf %63, %61 : vector<4x1x8x64xf32>
    %cst_21 = arith.constant 0.857142865 : f32
    %65 = vector.broadcast %cst_21 : f32 to vector<4x1x8x64xf32>
    %66 = arith.mulf %65, %62 : vector<4x1x8x64xf32>
    %67 = arith.addf %64, %66 : vector<4x1x8x64xf32>
    %68 = vector.extract_strided_slice %52 {offsets = [0, 1, 0, 0], sizes = [4, 1, 8, 64], strides = [1, 1, 1, 1]} : vector<4x4x8x64xf32> to vector<4x1x8x64xf32>
    %69 = vector.extract_strided_slice %52 {offsets = [0, 2, 0, 0], sizes = [4, 1, 8, 64], strides = [1, 1, 1, 1]} : vector<4x4x8x64xf32> to vector<4x1x8x64xf32>
    %cst_22 = arith.constant 0.714285731 : f32
    %70 = vector.broadcast %cst_22 : f32 to vector<4x1x8x64xf32>
    %71 = arith.mulf %70, %68 : vector<4x1x8x64xf32>
    %cst_23 = arith.constant 0.285714298 : f32
    %72 = vector.broadcast %cst_23 : f32 to vector<4x1x8x64xf32>
    %73 = arith.mulf %72, %69 : vector<4x1x8x64xf32>
    %74 = arith.addf %71, %73 : vector<4x1x8x64xf32>
    %75 = vector.extract_strided_slice %52 {offsets = [0, 1, 0, 0], sizes = [4, 1, 8, 64], strides = [1, 1, 1, 1]} : vector<4x4x8x64xf32> to vector<4x1x8x64xf32>
    %76 = vector.extract_strided_slice %52 {offsets = [0, 2, 0, 0], sizes = [4, 1, 8, 64], strides = [1, 1, 1, 1]} : vector<4x4x8x64xf32> to vector<4x1x8x64xf32>
    %cst_24 = arith.constant 0.285714298 : f32
    %77 = vector.broadcast %cst_24 : f32 to vector<4x1x8x64xf32>
    %78 = arith.mulf %77, %75 : vector<4x1x8x64xf32>
    %cst_25 = arith.constant 0.714285731 : f32
    %79 = vector.broadcast %cst_25 : f32 to vector<4x1x8x64xf32>
    %80 = arith.mulf %79, %76 : vector<4x1x8x64xf32>
    %81 = arith.addf %78, %80 : vector<4x1x8x64xf32>
    %82 = vector.extract_strided_slice %52 {offsets = [0, 2, 0, 0], sizes = [4, 1, 8, 64], strides = [1, 1, 1, 1]} : vector<4x4x8x64xf32> to vector<4x1x8x64xf32>
    %83 = vector.extract_strided_slice %52 {offsets = [0, 3, 0, 0], sizes = [4, 1, 8, 64], strides = [1, 1, 1, 1]} : vector<4x4x8x64xf32> to vector<4x1x8x64xf32>
    %cst_26 = arith.constant 0.857142865 : f32
    %84 = vector.broadcast %cst_26 : f32 to vector<4x1x8x64xf32>
    %85 = arith.mulf %84, %82 : vector<4x1x8x64xf32>
    %cst_27 = arith.constant 0.142857149 : f32
    %86 = vector.broadcast %cst_27 : f32 to vector<4x1x8x64xf32>
    %87 = arith.mulf %86, %83 : vector<4x1x8x64xf32>
    %88 = arith.addf %85, %87 : vector<4x1x8x64xf32>
    %89 = vector.extract_strided_slice %52 {offsets = [0, 2, 0, 0], sizes = [4, 1, 8, 64], strides = [1, 1, 1, 1]} : vector<4x4x8x64xf32> to vector<4x1x8x64xf32>
    %90 = vector.extract_strided_slice %52 {offsets = [0, 3, 0, 0], sizes = [4, 1, 8, 64], strides = [1, 1, 1, 1]} : vector<4x4x8x64xf32> to vector<4x1x8x64xf32>
    %cst_28 = arith.constant 0.428571433 : f32
    %91 = vector.broadcast %cst_28 : f32 to vector<4x1x8x64xf32>
    %92 = arith.mulf %91, %89 : vector<4x1x8x64xf32>
    %cst_29 = arith.constant 0.571428597 : f32
    %93 = vector.broadcast %cst_29 : f32 to vector<4x1x8x64xf32>
    %94 = arith.mulf %93, %90 : vector<4x1x8x64xf32>
    %95 = arith.addf %92, %94 : vector<4x1x8x64xf32>
    %96 = vector.extract_strided_slice %52 {offsets = [0, 3, 0, 0], sizes = [4, 1, 8, 64], strides = [1, 1, 1, 1]} : vector<4x4x8x64xf32> to vector<4x1x8x64xf32>
    %97 = tpu.concatenate %53, %60, %67, %74, %81, %88, %95, %96 in 1 : vector<4x1x8x64xf32>, vector<4x1x8x64xf32>, vector<4x1x8x64xf32>, vector<4x1x8x64xf32>, vector<4x1x8x64xf32>, vector<4x1x8x64xf32>, vector<4x1x8x64xf32>, vector<4x1x8x64xf32> -> vector<4x8x8x64xf32>
    %98 = vector.extract_strided_slice %97 {offsets = [0, 0, 0, 0], sizes = [1, 8, 8, 64], strides = [1, 1, 1, 1]} : vector<4x8x8x64xf32> to vector<1x8x8x64xf32>
    %99 = vector.extract_strided_slice %97 {offsets = [0, 0, 0, 0], sizes = [1, 8, 8, 64], strides = [1, 1, 1, 1]} : vector<4x8x8x64xf32> to vector<1x8x8x64xf32>
    %100 = vector.extract_strided_slice %97 {offsets = [1, 0, 0, 0], sizes = [1, 8, 8, 64], strides = [1, 1, 1, 1]} : vector<4x8x8x64xf32> to vector<1x8x8x64xf32>
    %cst_30 = arith.constant 0.571428597 : f32
    %101 = vector.broadcast %cst_30 : f32 to vector<1x8x8x64xf32>
    %102 = arith.mulf %101, %99 : vector<1x8x8x64xf32>
    %cst_31 = arith.constant 0.428571433 : f32
    %103 = vector.broadcast %cst_31 : f32 to vector<1x8x8x64xf32>
    %104 = arith.mulf %103, %100 : vector<1x8x8x64xf32>
    %105 = arith.addf %102, %104 : vector<1x8x8x64xf32>
    %106 = vector.extract_strided_slice %97 {offsets = [0, 0, 0, 0], sizes = [1, 8, 8, 64], strides = [1, 1, 1, 1]} : vector<4x8x8x64xf32> to vector<1x8x8x64xf32>
    %107 = vector.extract_strided_slice %97 {offsets = [1, 0, 0, 0], sizes = [1, 8, 8, 64], strides = [1, 1, 1, 1]} : vector<4x8x8x64xf32> to vector<1x8x8x64xf32>
    %cst_32 = arith.constant 0.142857149 : f32
    %108 = vector.broadcast %cst_32 : f32 to vector<1x8x8x64xf32>
    %109 = arith.mulf %108, %106 : vector<1x8x8x64xf32>
    %cst_33 = arith.constant 0.857142865 : f32
    %110 = vector.broadcast %cst_33 : f32 to vector<1x8x8x64xf32>
    %111 = arith.mulf %110, %107 : vector<1x8x8x64xf32>
    %112 = arith.addf %109, %111 : vector<1x8x8x64xf32>
    %113 = vector.extract_strided_slice %97 {offsets = [1, 0, 0, 0], sizes = [1, 8, 8, 64], strides = [1, 1, 1, 1]} : vector<4x8x8x64xf32> to vector<1x8x8x64xf32>
    %114 = vector.extract_strided_slice %97 {offsets = [2, 0, 0, 0], sizes = [1, 8, 8, 64], strides = [1, 1, 1, 1]} : vector<4x8x8x64xf32> to vector<1x8x8x64xf32>
    %cst_34 = arith.constant 0.714285731 : f32
    %115 = vector.broadcast %cst_34 : f32 to vector<1x8x8x64xf32>
    %116 = arith.mulf %115, %113 : vector<1x8x8x64xf32>
    %cst_35 = arith.constant 0.285714298 : f32
    %117 = vector.broadcast %cst_35 : f32 to vector<1x8x8x64xf32>
    %118 = arith.mulf %117, %114 : vector<1x8x8x64xf32>
    %119 = arith.addf %116, %118 : vector<1x8x8x64xf32>
    %120 = vector.extract_strided_slice %97 {offsets = [1, 0, 0, 0], sizes = [1, 8, 8, 64], strides = [1, 1, 1, 1]} : vector<4x8x8x64xf32> to vector<1x8x8x64xf32>
    %121 = vector.extract_strided_slice %97 {offsets = [2, 0, 0, 0], sizes = [1, 8, 8, 64], strides = [1, 1, 1, 1]} : vector<4x8x8x64xf32> to vector<1x8x8x64xf32>
    %cst_36 = arith.constant 0.285714298 : f32
    %122 = vector.broadcast %cst_36 : f32 to vector<1x8x8x64xf32>
    %123 = arith.mulf %122, %120 : vector<1x8x8x64xf32>
    %cst_37 = arith.constant 0.714285731 : f32
    %124 = vector.broadcast %cst_37 : f32 to vector<1x8x8x64xf32>
    %125 = arith.mulf %124, %121 : vector<1x8x8x64xf32>
    %126 = arith.addf %123, %125 : vector<1x8x8x64xf32>
    %127 = vector.extract_strided_slice %97 {offsets = [2, 0, 0, 0], sizes = [1, 8, 8, 64], strides = [1, 1, 1, 1]} : vector<4x8x8x64xf32> to vector<1x8x8x64xf32>
    %128 = vector.extract_strided_slice %97 {offsets = [3, 0, 0, 0], sizes = [1, 8, 8, 64], strides = [1, 1, 1, 1]} : vector<4x8x8x64xf32> to vector<1x8x8x64xf32>
    %cst_38 = arith.constant 0.857142865 : f32
    %129 = vector.broadcast %cst_38 : f32 to vector<1x8x8x64xf32>
    %130 = arith.mulf %129, %127 : vector<1x8x8x64xf32>
    %cst_39 = arith.constant 0.142857149 : f32
    %131 = vector.broadcast %cst_39 : f32 to vector<1x8x8x64xf32>
    %132 = arith.mulf %131, %128 : vector<1x8x8x64xf32>
    %133 = arith.addf %130, %132 : vector<1x8x8x64xf32>
    %134 = vector.extract_strided_slice %97 {offsets = [2, 0, 0, 0], sizes = [1, 8, 8, 64], strides = [1, 1, 1, 1]} : vector<4x8x8x64xf32> to vector<1x8x8x64xf32>
    %135 = vector.extract_strided_slice %97 {offsets = [3, 0, 0, 0], sizes = [1, 8, 8, 64], strides = [1, 1, 1, 1]} : vector<4x8x8x64xf32> to vector<1x8x8x64xf32>
    %cst_40 = arith.constant 0.428571433 : f32
    %136 = vector.broadcast %cst_40 : f32 to vector<1x8x8x64xf32>
    %137 = arith.mulf %136, %134 : vector<1x8x8x64xf32>
    %cst_41 = arith.constant 0.571428597 : f32
    %138 = vector.broadcast %cst_41 : f32 to vector<1x8x8x64xf32>
    %139 = arith.mulf %138, %135 : vector<1x8x8x64xf32>
    %140 = arith.addf %137, %139 : vector<1x8x8x64xf32>
    %141 = vector.extract_strided_slice %97 {offsets = [3, 0, 0, 0], sizes = [1, 8, 8, 64], strides = [1, 1, 1, 1]} : vector<4x8x8x64xf32> to vector<1x8x8x64xf32>
    %142 = tpu.concatenate %98, %105, %112, %119, %126, %133, %140, %141 in 0 : vector<1x8x8x64xf32>, vector<1x8x8x64xf32>, vector<1x8x8x64xf32>, vector<1x8x8x64xf32>, vector<1x8x8x64xf32>, vector<1x8x8x64xf32>, vector<1x8x8x64xf32>, vector<1x8x8x64xf32> -> vector<8x8x8x64xf32>
    %143 = vector.shape_cast %142 : vector<8x8x8x64xf32> to vector<512x64xf32>
    %c0_42 = arith.constant 0 : index
    %c0_43 = arith.constant 0 : index
    %144 = vector.load %arg5[%c0_42, %c0_43] : memref<1x64xf32, #tpu.memory_space<vmem>>, vector<1x64xf32>
    %c0_44 = arith.constant 0 : index
    %c0_45 = arith.constant 0 : index
    %145 = vector.load %arg6[%c0_44, %c0_45] : memref<1x64xf32, #tpu.memory_space<vmem>>, vector<1x64xf32>
    %cst_46 = arith.constant dense<0.000000e+00> : vector<64xf32>
    %146 = vector.multi_reduction <add>, %143, %cst_46 [0] : vector<512x64xf32> to vector<64xf32>
    %147 = vector.shape_cast %146 : vector<64xf32> to vector<1x64xf32>
    %148 = arith.mulf %143, %143 : vector<512x64xf32>
    %cst_47 = arith.constant dense<0.000000e+00> : vector<64xf32>
    %149 = vector.multi_reduction <add>, %148, %cst_47 [0] : vector<512x64xf32> to vector<64xf32>
    %150 = vector.shape_cast %149 : vector<64xf32> to vector<1x64xf32>
    %cst_48 = arith.constant 0.001953125 : f32
    %151 = vector.broadcast %cst_48 : f32 to vector<1x64xf32>
    %152 = arith.mulf %147, %151 : vector<1x64xf32>
    %cst_49 = arith.constant 0.001953125 : f32
    %153 = vector.broadcast %cst_49 : f32 to vector<1x64xf32>
    %154 = arith.mulf %150, %153 : vector<1x64xf32>
    %155 = arith.mulf %152, %152 : vector<1x64xf32>
    %156 = arith.subf %154, %155 : vector<1x64xf32>
    %cst_50 = arith.constant 0.000000e+00 : f32
    %157 = vector.broadcast %cst_50 : f32 to vector<1x64xf32>
    %158 = arith.maximumf %156, %157 : vector<1x64xf32>
    %159 = vector.broadcast %152 : vector<1x64xf32> to vector<512x64xf32>
    %160 = arith.subf %143, %159 : vector<512x64xf32>
    %cst_51 = arith.constant 9.99999974E-6 : f32
    %161 = vector.broadcast %cst_51 : f32 to vector<1x64xf32>
    %162 = arith.addf %158, %161 : vector<1x64xf32>
    %163 = math.rsqrt %162 : vector<1x64xf32>
    %164 = vector.broadcast %163 : vector<1x64xf32> to vector<512x64xf32>
    %165 = arith.mulf %160, %164 : vector<512x64xf32>
    %166 = vector.broadcast %144 : vector<1x64xf32> to vector<512x64xf32>
    %167 = arith.mulf %165, %166 : vector<512x64xf32>
    %168 = vector.broadcast %145 : vector<1x64xf32> to vector<512x64xf32>
    %169 = arith.addf %167, %168 : vector<512x64xf32>
    %cst_52 = arith.constant 0.000000e+00 : f32
    %170 = vector.broadcast %cst_52 : f32 to vector<512x64xf32>
    %171 = arith.maximumf %169, %170 : vector<512x64xf32>
    %c0_53 = arith.constant 0 : index
    %c0_54 = arith.constant 0 : index
    %c0_55 = arith.constant 0 : index
    %172 = vector.load %arg2[%c0_53, %c0_54, %c0_55] : memref<1x512x64xbf16, #tpu.memory_space<vmem>>, vector<1x512x64xbf16>
    %173 = vector.shape_cast %172 : vector<1x512x64xbf16> to vector<512x64xbf16>
    %174 = arith.truncf %171 : vector<512x64xf32> to vector<512x64xbf16>
    %175 = tpu.concatenate %174, %173 in 1 : vector<512x64xbf16>, vector<512x64xbf16> -> vector<512x128xbf16>
    %c0_56 = arith.constant 0 : index
    %c0_57 = arith.constant 0 : index
    %176 = vector.load %arg7[%c0_56, %c0_57] : memref<128x64xbf16, #tpu.memory_space<vmem>>, vector<128x64xbf16>
    %cst_58 = arith.constant dense<0.000000e+00> : vector<512x64xf32>
    %177 = tpu.matmul %175, %176, %cst_58 {dimension_numbers = #tpu.dot_dimension_numbers<[1], [0], [0], [1], [0, 0, 1, 1], [], []>} : vector<512x128xbf16>, vector<128x64xbf16>, vector<512x64xf32> -> vector<512x64xf32>
    %c0_59 = arith.constant 0 : index
    %c0_60 = arith.constant 0 : index
    %178 = vector.load %arg8[%c0_59, %c0_60] : memref<1x64xf32, #tpu.memory_space<vmem>>, vector<1x64xf32>
    %179 = vector.broadcast %178 : vector<1x64xf32> to vector<512x64xf32>
    %180 = arith.addf %177, %179 : vector<512x64xf32>
    %c0_61 = arith.constant 0 : index
    %c0_62 = arith.constant 0 : index
    %181 = vector.load %arg9[%c0_61, %c0_62] : memref<1x64xf32, #tpu.memory_space<vmem>>, vector<1x64xf32>
    %c0_63 = arith.constant 0 : index
    %c0_64 = arith.constant 0 : index
    %182 = vector.load %arg10[%c0_63, %c0_64] : memref<1x64xf32, #tpu.memory_space<vmem>>, vector<1x64xf32>
    %cst_65 = arith.constant dense<0.000000e+00> : vector<64xf32>
    %183 = vector.multi_reduction <add>, %180, %cst_65 [0] : vector<512x64xf32> to vector<64xf32>
    %184 = vector.shape_cast %183 : vector<64xf32> to vector<1x64xf32>
    %185 = arith.mulf %180, %180 : vector<512x64xf32>
    %cst_66 = arith.constant dense<0.000000e+00> : vector<64xf32>
    %186 = vector.multi_reduction <add>, %185, %cst_66 [0] : vector<512x64xf32> to vector<64xf32>
    %187 = vector.shape_cast %186 : vector<64xf32> to vector<1x64xf32>
    %cst_67 = arith.constant 0.001953125 : f32
    %188 = vector.broadcast %cst_67 : f32 to vector<1x64xf32>
    %189 = arith.mulf %184, %188 : vector<1x64xf32>
    %cst_68 = arith.constant 0.001953125 : f32
    %190 = vector.broadcast %cst_68 : f32 to vector<1x64xf32>
    %191 = arith.mulf %187, %190 : vector<1x64xf32>
    %192 = arith.mulf %189, %189 : vector<1x64xf32>
    %193 = arith.subf %191, %192 : vector<1x64xf32>
    %cst_69 = arith.constant 0.000000e+00 : f32
    %194 = vector.broadcast %cst_69 : f32 to vector<1x64xf32>
    %195 = arith.maximumf %193, %194 : vector<1x64xf32>
    %196 = vector.broadcast %189 : vector<1x64xf32> to vector<512x64xf32>
    %197 = arith.subf %180, %196 : vector<512x64xf32>
    %cst_70 = arith.constant 9.99999974E-6 : f32
    %198 = vector.broadcast %cst_70 : f32 to vector<1x64xf32>
    %199 = arith.addf %195, %198 : vector<1x64xf32>
    %200 = math.rsqrt %199 : vector<1x64xf32>
    %201 = vector.broadcast %200 : vector<1x64xf32> to vector<512x64xf32>
    %202 = arith.mulf %197, %201 : vector<512x64xf32>
    %203 = vector.broadcast %181 : vector<1x64xf32> to vector<512x64xf32>
    %204 = arith.mulf %202, %203 : vector<512x64xf32>
    %205 = vector.broadcast %182 : vector<1x64xf32> to vector<512x64xf32>
    %206 = arith.addf %204, %205 : vector<512x64xf32>
    %cst_71 = arith.constant 0.000000e+00 : f32
    %207 = vector.broadcast %cst_71 : f32 to vector<512x64xf32>
    %208 = arith.maximumf %206, %207 : vector<512x64xf32>
    %209 = vector.shape_cast %208 : vector<512x64xf32> to vector<8x8x8x64xf32>
    %210 = vector.shape_cast %209 : vector<8x8x8x64xf32> to vector<2x4x8x8x64xf32>
    %cst_72 = arith.constant dense<0xFF800000> : vector<2x8x8x64xf32>
    %211 = vector.multi_reduction <maximumf>, %210, %cst_72 [1] : vector<2x4x8x8x64xf32> to vector<2x8x8x64xf32>
    %212 = vector.shape_cast %211 : vector<2x8x8x64xf32> to vector<2x2x4x8x64xf32>
    %cst_73 = arith.constant dense<0xFF800000> : vector<2x2x8x64xf32>
    %213 = vector.multi_reduction <maximumf>, %212, %cst_73 [2] : vector<2x2x4x8x64xf32> to vector<2x2x8x64xf32>
    %214 = vector.shape_cast %213 : vector<2x2x8x64xf32> to vector<2x2x2x4x64xf32>
    %cst_74 = arith.constant dense<0xFF800000> : vector<2x2x2x64xf32>
    %215 = vector.multi_reduction <maximumf>, %214, %cst_74 [3] : vector<2x2x2x4x64xf32> to vector<2x2x2x64xf32>
    %216 = vector.shape_cast %215 : vector<2x2x2x64xf32> to vector<8x64xf32>
    %cst_75 = arith.constant 0.000000e+00 : f32
    %217 = vector.broadcast %cst_75 : f32 to vector<8x64xf32>
    %218 = tpu.concatenate %216, %217 in 1 : vector<8x64xf32>, vector<8x64xf32> -> vector<8x128xf32>
    %c0_76 = arith.constant 0 : index
    %c0_77 = arith.constant 0 : index
    %c0_78 = arith.constant 0 : index
    %219 = vector.load %arg11[%c0_76, %c0_77, %c0_78] : memref<1x8x128xf32, #tpu.memory_space<vmem>>, vector<1x8x128xf32>
    %220 = vector.shape_cast %219 : vector<1x8x128xf32> to vector<8x128xf32>
    %221 = vector.shape_cast %218 : vector<8x128xf32> to vector<1x8x128xf32>
    tpu.vector_store %arg11[%c0_76, %c0_77, %c0_78], %221 {strides = array<i32>} : memref<1x8x128xf32, #tpu.memory_space<vmem>>, vector<1x8x128xf32>,
    return
  }
  func.func @transform_0(%arg0: i32) -> (i32, i32, i32) {
    %c0_i32 = arith.constant 0 : i32
    %c0_i32_0 = arith.constant 0 : i32
    %c0_i32_1 = arith.constant 0 : i32
    return %arg0, %c0_i32, %c0_i32_0 : i32, i32, i32
  }
  func.func @transform_1(%arg0: i32) -> (i32, i32, i32) {
    %c0_i32 = arith.constant 0 : i32
    %c0_i32_0 = arith.constant 0 : i32
    %c0_i32_1 = arith.constant 0 : i32
    return %arg0, %c0_i32, %c0_i32_0 : i32, i32, i32
  }
  func.func @transform_2(%arg0: i32) -> (i32, i32) {
    %c0_i32 = arith.constant 0 : i32
    %c0_i32_0 = arith.constant 0 : i32
    %c0_i32_1 = arith.constant 0 : i32
    return %c0_i32, %c0_i32_0 : i32, i32
  }
  func.func @transform_3(%arg0: i32) -> (i32, i32) {
    %c0_i32 = arith.constant 0 : i32
    %c0_i32_0 = arith.constant 0 : i32
    %c0_i32_1 = arith.constant 0 : i32
    return %c0_i32, %c0_i32_0 : i32, i32
  }
  func.func @transform_4(%arg0: i32) -> (i32, i32) {
    %c0_i32 = arith.constant 0 : i32
    %c0_i32_0 = arith.constant 0 : i32
    %c0_i32_1 = arith.constant 0 : i32
    return %c0_i32, %c0_i32_0 : i32, i32
  }
  func.func @transform_5(%arg0: i32) -> (i32, i32) {
    %c0_i32 = arith.constant 0 : i32
    %c0_i32_0 = arith.constant 0 : i32
    %c0_i32_1 = arith.constant 0 : i32
    return %c0_i32, %c0_i32_0 : i32, i32
  }
  func.func @transform_6(%arg0: i32) -> (i32, i32) {
    %c0_i32 = arith.constant 0 : i32
    %c0_i32_0 = arith.constant 0 : i32
    %c0_i32_1 = arith.constant 0 : i32
    return %c0_i32, %c0_i32_0 : i32, i32
  }
  func.func @transform_7(%arg0: i32) -> (i32, i32) {
    %c0_i32 = arith.constant 0 : i32
    %c0_i32_0 = arith.constant 0 : i32
    %c0_i32_1 = arith.constant 0 : i32
    return %c0_i32, %c0_i32_0 : i32, i32
  }
  func.func @transform_8(%arg0: i32) -> (i32, i32) {
    %c0_i32 = arith.constant 0 : i32
    %c0_i32_0 = arith.constant 0 : i32
    %c0_i32_1 = arith.constant 0 : i32
    return %c0_i32, %c0_i32_0 : i32, i32
  }
  func.func @transform_9(%arg0: i32) -> (i32, i32) {
    %c0_i32 = arith.constant 0 : i32
    %c0_i32_0 = arith.constant 0 : i32
    %c0_i32_1 = arith.constant 0 : i32
    return %c0_i32, %c0_i32_0 : i32, i32
  }
  func.func @transform_10(%arg0: i32) -> (i32, i32, i32) {
    %c0_i32 = arith.constant 0 : i32
    %c0_i32_0 = arith.constant 0 : i32
    %c0_i32_1 = arith.constant 0 : i32
    return %arg0, %c0_i32, %c0_i32_0 : i32, i32, i32
  }
}

</mosaic_0001>

<bundles_post_ra>
// kernel: tpu_custom_call.1
= control target key start
LH: loop header
LB: loop body
LE: loop exit
PB: predicated region body
PF: predicated region fallthrough
CT: control target
= control target key end

     0   :  { %15 = vsyncpa [#allocation3], 0  ;;  %s8271_s0 = inlined_call_operand.vmem [shape: bf16[2,64,128], index: 0, kind: input, shape index: {}]   ;;  %s8272_s1 = inlined_call_operand.vmem [shape: bf16[2,512,64], index: 1, kind: input, shape index: {}]   ;;  %s8273_s2 = inlined_call_operand.vmem [shape: bf16[128,64], index: 2, kind: input, shape index: {}]   ;;  %s8274_s3 = inlined_call_operand.vmem [shape: f32[1,64], index: 3, kind: input, shape index: {}]   ;;  %s8275_s4 = inlined_call_operand.vmem [shape: f32[1,64], index: 4, kind: input, shape index: {}]   ;;  %s8276_s5 = inlined_call_operand.vmem [shape: f32[1,64], index: 5, kind: input, shape index: {}]   ;;  %s8277_s6 = inlined_call_operand.vmem [shape: bf16[128,64], index: 6, kind: input, shape index: {}]   ;;  %s8278_s7 = inlined_call_operand.vmem [shape: f32[1,64], index: 7, kind: input, shape index: {}]   ;;  %s8279_s8 = inlined_call_operand.vmem [shape: f32[1,64], index: 8, kind: input, shape index: {}]   ;;  %s8280_s9 = inlined_call_operand.vmem [shape: f32[1,64], index: 9, kind: input, shape index: {}]   ;;  %s8281_s10 = inlined_call_operand.hbm [shape: f32[2,8,128], index: 10, kind: output, shape index: {}]  }
   0x1   :  { %17 = vsyncpa [#allocation3 + $0x1], 0  ;;  %s4866_s13 = smov 0   ;;  %s4868_s14 = smov 0  }
   0x2   :  { %s4870_s15 = smov 0   ;;  %s4872_s16 = smov 0  }
   0x3 LB: > { %s4887_s17 = sadd.s32 4294967295, %s4808_s16   ;;  %s4301_s18 = sadd.s32 4294967294, %s4808_s16   ;;  %s4808_s16 = sphi %s4872_s16, %s8674_s16   ;;  %s4804_s15 = sphi %s4870_s15, %s8673_s15   ;;  %s4800_s14 = sphi %s4868_s14, %s8672_s14   ;;  %s4796_s13 = sphi %s4866_s13, %s8671_s13  }
   0x4   : > { %s4891_s19 = sadd.s32 1, %s4808_s16   ;;  %s250_s20 = sadd.s32 1, %s4804_s15 }
   0x5   : > { %s247_s21 = ssub.s32 %s4808_s16, %s4891_s19  ;;  %p260_p0 = scmp.ne.s32.totalorder %s4804_s15, %s4800_s14 }
   0x6   : > { %p248_p1 = scmp.eq.s32.totalorder %s247_s21, 0  ;;  %p261_p2 = scmp.eq.s32.totalorder %s4887_s17, 1 }
   0x7   : > { %p266_p3 = scmp.ne.s32.totalorder %s4800_s14, %s4796_s13  ;;  %p267_p4 = scmp.eq.s32.totalorder %s4301_s18, 1 }
   0x8   : > { %s4902_s22 = scalar_select %p248_p1, %s4804_s15, %s250_s20  }
   0x9   : > { %p4904_p5 = por %p261_p2, %p260_p0  ;;  %p4908_p6 = por %p267_p4, %p266_p3 }
   0xa   : > { %p4304_p7 = scmp.ge.s32.totalorder %s4808_s16, 1  ;;  %p325_p8 = scmp.lt.s32.totalorder %s4808_s16, 3 }
   0xc   : > { %p326_p9 = pnand %p4304_p7, %p325_p8 }
   0xe   : > { %329 = sbr.rel (%p326_p9) target bundleno = 1050 (0x41a), region = 60 }
  0x13   : > { %v4631_v0 = vld [vmem:[%s8273_s2 + $0x38] sm:$0xff]  ;;  %v4630_v1 = vld [vmem:[%s8273_s2 + $0x30] sm:$0xff]  ;;  %v4629_v2 = vld [vmem:[%s8273_s2 + $0x28] sm:$0xff]  ;;  %p368_p10 = scmp.lt.s32.totalorder %s4887_s17, 1  ;;  %vm1427_vm0 = vcmask 1040384   ;;  %vm1444_vm1 = vcmask 1041408  }
  0x14   : > { %478 = vmatpush.bf16.msra.mxu0 %v4631_v0  ;;  %v4628_v3 = vld [vmem:[%s8273_s2 + $0x20] sm:$0xff]  ;;  %v4627_v4 = vld [vmem:[%s8273_s2 + $0x18] sm:$0xff]  ;;  %v4626_v5 = vld [vmem:[%s8273_s2 + $0x10] sm:$0xff]  ;;  %vm1461_vm2 = vcmask 1042432   ;;  %vm1478_vm3 = vcmask 1043456   ;;  %vm1495_vm4 = vcmask 1044480  }
  0x15   : > { %s369_s26 = scalar_select %p368_p10, %s4887_s17, 1  ;;  %v4625_v6 = vld [vmem:[%s8273_s2 + $0x8] sm:$0xff]  ;;  %v4624_v7 = vld [vmem:[%s8273_s2] sm:$0xff]  ;;  %vm1512_vm5 = vcmask 1045504   ;;  %vm1529_vm6 = vcmask 1046528   ;;  %vm1756_vm7 = vcmask 523264  }
  0x16   : > { %v4967_v23 = vld [vmem:[%s8274_s3] ss:$0 sm:$0xff]  ;;  %vm4132_vm14 = vcmask 519168   ;;  %vm4197_vm15 = vcmask 1041409   ;;  %s4615_s27 = sshll.u32 %s4887_s17, 3 }
  0x17   : > { %s4618_s29 = sshll.u32 %s369_s26, 5  ;;  %s4619_s21 = sshll.u32 %s369_s26, 8 }
  0x18   : > { %479 = vmatpush.bf16.msra.mxu0 %v4630_v1  ;;  %s372_s20 = scalar_lea.vmem %s8271_s0, %s4618_s29  ;;  %s4946_s28 = scalar_lea.vmem %s8272_s1, %s4619_s21 }
  0x19   : > { %v4620_v8 = vld [vmem:[%s372_s20] sm:$0xff]  ;;  %v4621_v9 = vld [vmem:[%s372_s20 + $0x8] sm:$0xff]  ;;  %v4622_v10 = vld [vmem:[%s372_s20 + $0x10] sm:$0xff]  ;;  %s4810_s29 = smov 64   ;;  %s365_s21 = sand.u32 1, %s4800_s14  }
  0x1a   : > { %v4623_v11 = vld [vmem:[%s372_s20 + $0x18] sm:$0xff]  ;;  %v4637_v12 = vld [vmem:[%s4946_s28 + $0x28] sm:$0xff]  ;;  %v4632_v13 = vld [vmem:[%s4946_s28] sm:$0xff]  ;;  %s8234_s25 = sshll.u32 %s365_s21, 3  ;;  %s4225_s26 = scalar_lea.hbm %s8281_s10, %s4615_s27 }
  0x1b   : > { %2887 = vrot.lane.b32.xlu0 %v4637_v12, %s4810_s29  ;;  %2877 = vrot.lane.b32.xlu1 %v4632_v13, %s4810_s29  ;;  %v4638_v14 = vld [vmem:[%s4946_s28 + $0x30] sm:$0xff]  ;;  %v4647_v16 = vld [vmem:[%s4946_s28 + $0x78] sm:$0xff]  ;;  %s367_s17 = scalar_lea.vmem [#allocation2], %s8234_s25  ;;  %s4229_s11 = sshll.u32 %s4225_s26, 4  ;;  %s4230_s11 = int_to_ptr.hbm [resolvable:$true] %s4229_s11 }
  0x1c   : > { %480 = vmatpush.bf16.msra.mxu0 %v4629_v2  ;;  %v4646_v15 = vld [vmem:[%s4946_s28 + $0x70] sm:$0xff]  ;;  %v4640_v17 = vld [vmem:[%s4946_s28 + $0x40] sm:$0xff]  ;;  %v4641_v19 = vld [vmem:[%s4946_s28 + $0x48] sm:$0xff]  ;;  %s4227_s30 = sshll.u32 %s367_s17, 4  ;;  %s4215_s12 = scalar_lea.sflag [#allocation3], %s365_s21  ;;  %s4228_s30 = int_to_ptr.vmem [resolvable:$true] %s4227_s30 }
  0x1d   : > { %v4648_v18 = vld [vmem:[%s4946_s28 + $0x80] sm:$0xff]  ;;  %v4639_v50 = vld [vmem:[%s4946_s28 + $0x38] sm:$0xff]  ;;  %v4649_v54 = vld [vmem:[%s4946_s28 + $0x88] sm:$0xff]  ;;  %s4760_s18 = sshra.s32 %s4230_s11, 4  ;;  %s4761_s18 = int_to_ptr.hbm [resolvable:$true] %s4760_s18 }
  0x1e   : > { %v4635_v51 = vld [vmem:[%s4946_s28 + $0x18] sm:$0xff]  ;;  %2891 = vrot.lane.b32.xlu2 %v4639_v50, %s4810_s29  ;;  %s4762_s20 = scalar_lea.hbm %s4761_s18, 8  ;;  %p4767_p0 = scmp.lt.s32.totalorder %s4761_s18, %s8281_s10 }
  0x1f   : > { %p4763_p11 = scmp.ne.s32.totalorder %s4761_s18, %s4762_s20 }
  0x20   : > { %481 = vmatpush.bf16.msra.mxu0 %v4628_v3 }
  0x21   : > { %p4764_p12 = pnand %p4763_p11, %p4904_p5 }
  0x23   : > { %2889 = vrot.lane.b32.xlu0 %v4638_v14, %s4810_s29  ;;  %2905 = vrot.lane.b32.xlu1 %v4646_v15, %s4810_s29  ;;  %p4765_p13 = pneg %p4764_p12 }
  0x24   : > { %482 = vmatpush.bf16.msra.mxu0 %v4627_v4 }
  0x28   : > { %483 = vmatpush.bf16.msra.mxu0 %v4626_v5 }
  0x2b   : > { %2907 = vrot.lane.b32.xlu0 %v4647_v16, %s4810_s29  ;;  %2893 = vrot.lane.b32.xlu1 %v4640_v17, %s4810_s29 }
  0x2c   : > { %484 = vmatpush.bf16.msra.mxu0 %v4625_v6 }
  0x30   : > { %485 = vmatpush.bf16.msra.mxu0 %v4624_v7 }
  0x33   : > { %486 = vmatmul.bf16.vlgmr.msra.gmra.mxu0 %v4620_v8  ;;  %2909 = vrot.lane.b32.xlu0 %v4648_v18, %s4810_s29 }
  0x34   : > { %2895 = vrot.lane.b32.xlu1 %v4641_v19, %s4810_s29 }
  0x3b   : > { %2883 = vrot.lane.b32.xlu0 %v4635_v51, %s4810_s29 }
  0x3c   : > { %2911 = vrot.lane.b32.xlu1 %v4649_v54, %s4810_s29 }
  0x43   : > { %491 = vmatmul.bf16.gmra.mxu0 %v4621_v9 }
  0x53   : > { %496 = vmatmul.bf16.gmra.mxu0 %v4622_v10 }
  0x63   : > { %501 = vmatmul.bf16.gmra.mxu0 %v4623_v11 }
  0xb0   : > { %v487_v20 = vpop.f32.mrf.mxu0 }
  0xb1   : > { %v4988_v41 = vadd.f32 %v4967_v23, %v487_v20 }
  0xb3   : > { %8397 = vst [vmem:[#allocation5_spill] sm:$0xff] %v4988_v41  ;;  %v5005_v52 = vrot.slane %v4988_v41, 4 }
  0xb5   : > { %8398 = vst [vmem:[#allocation6_spill] sm:$0xff] %v5005_v52 }
  0xb8   : > { %v489_v21 = vpop.f32.mrf.mxu0 }
  0xb9   : > { %v4970_v24 = vadd.f32 %v4967_v23, %v489_v21 }
  0xbb   : > { %v549_v25 = vmul.f32 0.42857143, %v4970_v24  ;;  %v533_v26 = vmul.f32 0.5714286, %v4970_v24  ;;  %v645_v27 = vmul.f32 0.14285715, %v4970_v24 }
  0xbc   : > { %v661_v29 = vmul.f32 0.85714287, %v4970_v24  ;;  %v757_v30 = vmul.f32 0.71428573, %v4970_v24  ;;  %v773_v31 = vmul.f32 0.2857143, %v4970_v24 }
  0xbd   : > { %v4360_v33 = vrot.slane %v549_v25, 9  ;;  %v4440_v34 = vrot.slane %v533_v26, 9  ;;  %v4424_v40 = vrot.slane %v645_v27, 9  ;;  %v5009_v55 = vrot.slane %v4970_v24, 4 }
  0xbe   : > { %v4376_v37 = vrot.slane %v661_v29, 9  ;;  %v4392_v38 = vrot.slane %v773_v31, 9  ;;  %v4408_v39 = vrot.slane %v757_v30, 9  ;;  %v1397_v60 = vperm.slane %v4970_v24, 3 }
  0xbf   : > { %v629_v42 = vadd.f32 %v4360_v33, %v533_v26  ;;  %v4990_v43 = vadd.f32 %v4440_v34, %v549_v25  ;;  %v5000_v49 = vadd.f32 %v4424_v40, %v661_v29  ;;  %8399 = vst [vmem:[#allocation7_spill] sm:$0xff] %v5009_v55 }
  0xc0   : > { %v492_v22 = vpop.f32.mrf.mxu0  ;;  %v741_v46 = vadd.f32 %v4376_v37, %v645_v27  ;;  %v853_v47 = vadd.f32 %v4392_v38, %v757_v30  ;;  %v4998_v48 = vadd.f32 %v4408_v39, %v773_v31 }
  0xc1   : > { %v4976_v28 = vadd.f32 %v4967_v23, %v492_v22  ;;  %v1125_v53 = vperm.slane %v629_v42, 0  ;;  %v1365_v59 = vperm.slane %v4990_v43, 2  ;;  %v1317_v2 = vperm.slane %v5000_v49, 2 }
  0xc2   : > { %v1173_v63 = vperm.slane %v741_v46, 0  ;;  %v1221_v0 = vperm.slane %v853_v47, 1  ;;  %v1269_v1 = vperm.slane %v4998_v48, 1 }
  0xc3   : > { %v4982_v35 = vrot.slane %v4976_v28, 4  ;;  %v1430_v3 = vsel %vm1427_vm0, %v4970_v24, %v1125_v53  ;;  %v5032_v4 = vmul.f32 0.5714286, %v4976_v28  ;;  %v5041_v7 = vmul.f32 0.42857143, %v4976_v28 }
  0xc4   : > { %v5053_v15 = vmul.f32 0.14285715, %v4976_v28  ;;  %v1447_v18 = vsel %vm1444_vm1, %v1430_v3, %v1173_v63  ;;  %v5059_v19 = vmul.f32 0.85714287, %v4976_v28  ;;  %v5069_v34 = vmul.f32 0.71428573, %v4976_v28 }
  0xc5   : > { %v4993_v44 = vmul.f32 0.42857143, %v4982_v35  ;;  %v5015_v57 = vmul.f32 0.85714287, %v4982_v35  ;;  %v5035_v5 = vmul.f32 0.5714286, %v4982_v35  ;;  %v1464_v33 = vsel %vm1461_vm2, %v1447_v18, %v1221_v0 }
  0xc6   : > { %v776_v13 = vmul.f32 0.2857143, %v4982_v35  ;;  %v648_v16 = vmul.f32 0.14285715, %v4982_v35  ;;  %v760_v20 = vmul.f32 0.71428573, %v4982_v35  ;;  %v1481_v63 = vsel %vm1478_vm3, %v1464_v33, %v1269_v1 }
  0xc7   : > { %v4363_v61 = vrot.slane %v4993_v44, 9  ;;  %v4379_v9 = vrot.slane %v5015_v57, 9  ;;  %v5072_v37 = vmul.f32 0.2857143, %v4976_v28  ;;  %v4362_v1 = vrot.slane %v5041_v7, 9 }
  0xc8   : > { %v494_v32 = vpop.f32.mrf.mxu0  ;;  %v4395_v29 = vrot.slane %v776_v13, 9  ;;  %v4411_v46 = vrot.slane %v760_v20, 9  ;;  %v4427_v3 = vrot.slane %v648_v16, 9 }
  0xc9   : > { %v4985_v36 = vadd.f32 %v4967_v23, %v494_v32  ;;  %v632_v11 = vadd.f32 %v4363_v61, %v5035_v5  ;;  %v744_v25 = vadd.f32 %v4379_v9, %v648_v16  ;;  %v4656_v9 = vld [vmem:[%s4946_s28 + $0xc0] sm:$0xff]  ;;  %v4378_v16 = vrot.slane %v5059_v19, 9 }
  0xca   : > { %v856_v53 = vadd.f32 %v4395_v29, %v760_v20  ;;  %2925 = vrot.lane.b32.xlu0 %v4656_v9, %s4810_s29 }
  0xcb   : > { %v4996_v45 = vmul.f32 0.42857143, %v4985_v36  ;;  %v5012_v56 = vrot.slane %v4985_v36, 4  ;;  %v5018_v58 = vmul.f32 0.85714287, %v4985_v36  ;;  %v1128_v31 = vperm.slane %v632_v11, 0 }
  0xcc   : > { %v5038_v6 = vmul.f32 0.5714286, %v4985_v36  ;;  %v777_v14 = vmul.f32 0.2857143, %v4985_v36  ;;  %v649_v17 = vmul.f32 0.14285715, %v4985_v36 }
  0xcd   : > { %v4364_v62 = vrot.slane %v4996_v45, 9  ;;  %v5044_v8 = vmul.f32 0.42857143, %v5012_v56  ;;  %v4380_v10 = vrot.slane %v5018_v58, 9  ;;  %v5063_v21 = vmul.f32 0.85714287, %v5012_v56 }
  0xce   : > { %v761_v27 = vmul.f32 0.71428573, %v4985_v36  ;;  %v4396_v30 = vrot.slane %v777_v14, 9  ;;  %v5075_v38 = vmul.f32 0.5714286, %v5012_v56  ;;  %v1176_v50 = vperm.slane %v744_v25, 0 }
  0xcf   : > { %v633_v12 = vadd.f32 %v4364_v62, %v5038_v6  ;;  %v4365_v22 = vrot.slane %v5044_v8, 9  ;;  %v745_v26 = vadd.f32 %v4380_v10, %v649_v17  ;;  %v5078_v39 = vmul.f32 0.14285715, %v5012_v56  ;;  %v4633_v10 = vld [vmem:[%s4946_s28 + $0x8] sm:$0xff]  ;;  %v4636_v11 = vld [vmem:[%s4946_s28 + $0x20] sm:$0xff] }
  0xd0   : > { %v4381_v40 = vrot.slane %v5063_v21, 9  ;;  %v778_v42 = vmul.f32 0.2857143, %v5012_v56  ;;  %v4412_v48 = vrot.slane %v761_v27, 9  ;;  %v857_v54 = vadd.f32 %v4396_v30, %v761_v27  ;;  %2879 = vrot.lane.b32.xlu2 %v4633_v10, %s4810_s29  ;;  %2885 = vrot.lane.b32.xlu1 %v4636_v11, %s4810_s29 }
  0xd1   : > { %v1129_v32 = vperm.slane %v633_v12, 0  ;;  %v634_v47 = vadd.f32 %v4365_v22, %v5075_v38  ;;  %v1177_v51 = vperm.slane %v745_v26, 0  ;;  %v1433_v61 = vsel %vm1427_vm0, %v4982_v35, %v1128_v31 }
  0xd2   : > { %v762_v0 = vmul.f32 0.71428573, %v5012_v56  ;;  %v746_v12 = vadd.f32 %v4381_v40, %v5078_v39  ;;  %v4397_v18 = vrot.slane %v778_v42, 9  ;;  %v936_v22 = vadd.f32 %v4411_v46, %v776_v13 }
  0xd3   : > { %v1434_v62 = vsel %vm1427_vm0, %v4985_v36, %v1129_v32  ;;  %v4428_v20 = vrot.slane %v649_v17, 9  ;;  %v937_v25 = vadd.f32 %v4412_v48, %v777_v14  ;;  %v1130_v26 = vperm.slane %v634_v47, 0  ;;  %v497_v32 = vpop.f32.mrf.mxu0 }
  0xd4   : > { %v1450_v27 = vsel %vm1444_vm1, %v1433_v61, %v1176_v50  ;;  %v1451_v29 = vsel %vm1444_vm1, %v1434_v62, %v1177_v51  ;;  %v1224_v30 = vperm.slane %v856_v53, 1  ;;  %v1225_v31 = vperm.slane %v857_v54, 1 }
  0xd5   : > { %v4413_v13 = vrot.slane %v762_v0, 9  ;;  %v1016_v14 = vadd.f32 %v4427_v3, %v5015_v57  ;;  %v4443_v17 = vrot.slane %v5035_v5, 9  ;;  %v4444_v33 = vrot.slane %v5038_v6, 9 }
  0xd6   : > { %v1017_v40 = vadd.f32 %v4428_v20, %v5018_v58  ;;  %v1178_v46 = vperm.slane %v746_v12, 0  ;;  %v1467_v47 = vsel %vm1461_vm2, %v1450_v27, %v1224_v30  ;;  %v1468_v48 = vsel %vm1461_vm2, %v1451_v29, %v1225_v31 }
  0xd7   : > { %v858_v50 = vadd.f32 %v4397_v18, %v762_v0  ;;  %v1272_v51 = vperm.slane %v936_v22, 1  ;;  %v1273_v53 = vperm.slane %v937_v25, 1  ;;  %v1435_v54 = vsel %vm1427_vm0, %v5012_v56, %v1130_v26 }
  0xd8   : > { %v1498_v57 = vsel %vm1495_vm4, %v1481_v63, %v1317_v2  ;;  %v4394_v5 = vrot.slane %v5072_v37, 9  ;;  %v4426_v6 = vrot.slane %v5053_v15, 9  ;;  %v4429_v58 = vrot.slane %v5078_v39, 9 }
  0xd9   : > { %v1096_v61 = vadd.f32 %v4443_v17, %v4993_v44  ;;  %v1097_v62 = vadd.f32 %v4444_v33, %v4996_v45  ;;  %v1484_v0 = vsel %vm1478_vm3, %v1467_v47, %v1272_v51  ;;  %v1485_v3 = vsel %vm1478_vm3, %v1468_v48, %v1273_v53 }
  0xda   : > { %v938_v9 = vadd.f32 %v4413_v13, %v778_v42  ;;  %v1320_v10 = vperm.slane %v1016_v14, 2  ;;  %v1321_v11 = vperm.slane %v1017_v40, 2  ;;  %v1452_v49 = vsel %vm1444_vm1, %v1435_v54, %v1178_v46 }
  0xdb   : > { %v4410_v2 = vrot.slane %v5069_v34, 9  ;;  %v4442_v63 = vrot.slane %v5032_v4, 9  ;;  %v1226_v12 = vperm.slane %v858_v50, 1  ;;  %v5122_v39 = vadd.f32 %v4967_v23, %v497_v32 }
  0xdc   : > { %v1515_v44 = vsel %vm1512_vm5, %v1498_v57, %v1365_v59  ;;  %v4445_v45 = vrot.slane %v5075_v38, 9  ;;  %v1501_v42 = vsel %vm1495_vm4, %v1484_v0, %v1320_v10  ;;  %v1502_v18 = vsel %vm1495_vm4, %v1485_v3, %v1321_v11  ;;  %v499_v38 = vpop.f32.mrf.mxu0  ;;  %v4643_v3 = vld [vmem:[%s4946_s28 + $0x58] sm:$0xff] }
  0xdd   : > { %v1018_v22 = vadd.f32 %v4429_v58, %v5063_v21  ;;  %v1368_v20 = vperm.slane %v1096_v61, 2  ;;  %v1369_v25 = vperm.slane %v1097_v62, 2  ;;  %v1469_v26 = vsel %vm1461_vm2, %v1452_v49, %v1226_v12  ;;  %v4657_v12 = vld [vmem:[%s4946_s28 + $0xc8] sm:$0xff]  ;;  %2899 = vrot.lane.b32.xlu0 %v4643_v3, %s4810_s29 }
  0xde   : > { %v5133_v27 = vadd.f32 %v4362_v1, %v5032_v4  ;;  %v5136_v29 = vadd.f32 %v4378_v16, %v5053_v15  ;;  %v5139_v43 = vadd.f32 %v4426_v6, %v5059_v19  ;;  %v1274_v59 = vperm.slane %v938_v9, 1  ;;  %v4634_v9 = vld [vmem:[%s4946_s28 + $0x10] sm:$0xff]  ;;  %2927 = vrot.lane.b32.xlu1 %v4657_v12, %s4810_s29 }
  0xdf   : > { %v5144_v30 = vsel %vm1529_vm6, %v1515_v44, %v1397_v60  ;;  %v1518_v21 = vsel %vm1512_vm5, %v1501_v42, %v1368_v20  ;;  %v1519_v31 = vsel %vm1512_vm5, %v1502_v18, %v1369_v25  ;;  %v5149_v4 = vrot.slane %v5122_v39, 4  ;;  %2881 = vrot.lane.b32.xlu2 %v4634_v9, %s4810_s29 }
  0xe0   : > { %8400 = vst [vmem:[#allocation8_spill] sm:$0xff] %v5139_v43  ;;  %v1098_v15 = vadd.f32 %v4445_v45, %v5044_v8  ;;  %v1400_v1 = vperm.slane %v4982_v35, 3  ;;  %v1401_v19 = vperm.slane %v4985_v36, 3  ;;  %v1486_v16 = vsel %vm1478_vm3, %v1469_v26, %v1274_v59 }
  0xe1   : > { %8401 = vst [vmem:[#allocation9_spill] sm:$0xff] %v5144_v30  ;;  %v5156_v24 = vadd.f32 %v4394_v5, %v5069_v34  ;;  %v5159_v60 = vadd.f32 %v4410_v2, %v5072_v37  ;;  %v1322_v32 = vperm.slane %v1018_v22, 2  ;;  %v5162_v13 = vadd.f32 %v4967_v23, %v499_v38  ;;  %v4644_v37 = vld [vmem:[%s4946_s28 + $0x60] sm:$0xff]  ;;  %v4655_v34 = vld [vmem:[%s4946_s28 + $0xb8] sm:$0xff] }
  0xe2   : > { %v5165_v14 = vmul.f32 0.85714287, %v5144_v30  ;;  %v5168_v8 = vsel %vm1529_vm6, %v1518_v21, %v1400_v1  ;;  %v5171_v35 = vsel %vm1529_vm6, %v1519_v31, %v1401_v19  ;;  %v5174_v36 = vmul.f32 0.42857143, %v5122_v39  ;;  %v4658_v30 = vld [vmem:[%s4946_s28 + $0xd0] sm:$0xff] }
  0xe3   : > { %8402 = vst [vmem:[#allocation10_spill] sm:$0xff] %v5156_v24  ;;  %v1503_v17 = vsel %vm1495_vm4, %v1486_v16, %v1322_v32  ;;  %v5180_v33 = vmul.f32 0.42857143, %v5149_v4  ;;  %v1370_v46 = vperm.slane %v1098_v15, 2  ;;  %v5184_v47 = vmul.f32 0.5714286, %v5122_v39 }
  0xe4   : > { %8403 = vst [vmem:[#allocation11_spill] sm:$0xff] %v5159_v60  ;;  %v5187_v48 = vmul.f32 0.5714286, %v5149_v4  ;;  %v5191_v51 = vmul.f32 0.71428573, %v5168_v8  ;;  %v5197_v54 = vrot.slane %v5162_v13, 4  ;;  %v5213_v10 = vadd.f32 %v4442_v63, %v5041_v7 }
  0xe5   : > { %8404 = vst [vmem:[#allocation12_spill] sm:$0xff] %v5165_v14  ;;  %v5194_v53 = vmul.f32 0.2857143, %v5171_v35  ;;  %v1520_v57 = vsel %vm1512_vm5, %v1503_v17, %v1370_v46  ;;  %v5201_v5 = vmul.f32 0.2857143, %v5168_v8  ;;  %v4366_v58 = vrot.slane %v5174_v36, 9  ;;  %2901 = vrot.lane.b32.xlu0 %v4644_v37, %s4810_s29 }
  0xe6   : > { %8405 = vst [vmem:[#allocation13_spill] sm:$0xff] %v5168_v8  ;;  %v5204_v6 = vmul.f32 0.71428573, %v5171_v35  ;;  %v1402_v61 = vperm.slane %v5012_v56, 3  ;;  %v4367_v62 = vrot.slane %v5180_v33, 9  ;;  %2929 = vrot.lane.b32.xlu1 %v4658_v30, %s4810_s29  ;;  %v4645_v60 = vld [vmem:[%s4946_s28 + $0x68] sm:$0xff] }
  0xe7   : > { %v667_v0 = vmul.f32 0.85714287, %v5122_v39  ;;  %v668_v49 = vmul.f32 0.85714287, %v5149_v4  ;;  %v5218_v2 = vmul.f32 0.42857143, %v5162_v13  ;;  %v5232_v7 = vadd.f32 %v4366_v58, %v5184_v47  ;;  %2923 = vrot.lane.b32.xlu2 %v4655_v34, %s4810_s29 }
  0xe8   : > { %v5222_v44 = vsel %vm1529_vm6, %v1520_v57, %v1402_v61  ;;  %v651_v56 = vmul.f32 0.14285715, %v5122_v39  ;;  %v779_v45 = vmul.f32 0.2857143, %v5122_v39  ;;  %v5227_v42 = vmul.f32 0.42857143, %v5197_v54 }
  0xe9   : > { %8406 = vst [vmem:[#allocation14_spill] sm:$0xff] %v5222_v44  ;;  %v652_v63 = vmul.f32 0.14285715, %v5149_v4  ;;  %v763_v18 = vmul.f32 0.71428573, %v5122_v39  ;;  %v636_v20 = vadd.f32 %v4367_v62, %v5187_v48  ;;  %v4382_v25 = vrot.slane %v667_v0, 9 }
  0xea   : > { %v764_v22 = vmul.f32 0.71428573, %v5149_v4  ;;  %v780_v26 = vmul.f32 0.2857143, %v5149_v4  ;;  %v5241_v59 = vmul.f32 0.85714287, %v5162_v13 }
  0xeb   : > { %v4383_v38 = vrot.slane %v668_v49, 9  ;;  %v5244_v21 = vmul.f32 0.5714286, %v5162_v13  ;;  %v4368_v31 = vrot.slane %v5218_v2, 9  ;;  %v5248_v15 = vmul.f32 0.85714287, %v5197_v54 }
  0xec   : > { %v4398_v1 = vrot.slane %v779_v45, 9  ;;  %v4430_v19 = vrot.slane %v651_v56, 9  ;;  %v5251_v16 = vmul.f32 0.5714286, %v5197_v54  ;;  %v4369_v32 = vrot.slane %v5227_v42, 9  ;;  %v4659_v24 = vld [vmem:[%s4946_s28 + $0xd8] sm:$0xff] }
  0xed   : > { %v4414_v17 = vrot.slane %v763_v18, 9  ;;  %v4415_v46 = vrot.slane %v764_v22, 9  ;;  %v4431_v57 = vrot.slane %v652_v63, 9  ;;  %v781_v58 = vmul.f32 0.2857143, %v5162_v13  ;;  %2903 = vrot.lane.b32.xlu0 %v4645_v60, %s4810_s29 }
  0xee   : > { %v747_v61 = vadd.f32 %v4382_v25, %v651_v56  ;;  %v5256_v62 = vmul.f32 0.14285715, %v5162_v13  ;;  %v4384_v3 = vrot.slane %v5241_v59, 9  ;;  %v782_v9 = vmul.f32 0.2857143, %v5197_v54  ;;  %2931 = vrot.lane.b32.xlu1 %v4659_v24, %s4810_s29 }
  0xef   : > { %v748_v12 = vadd.f32 %v4383_v38, %v652_v63  ;;  %v637_v40 = vadd.f32 %v4368_v31, %v5244_v21  ;;  %v5262_v11 = vmul.f32 0.14285715, %v5197_v54  ;;  %v4385_v50 = vrot.slane %v5248_v15, 9 }
  0xf0   : > { %v4399_v14 = vrot.slane %v780_v26, 9  ;;  %v5267_v8 = vadd.f32 %v4430_v19, %v667_v0  ;;  %v638_v56 = vadd.f32 %v4369_v32, %v5251_v16  ;;  %v765_v25 = vmul.f32 0.71428573, %v5162_v13 }
  0xf1   : > { %v859_v43 = vadd.f32 %v4398_v1, %v763_v18  ;;  %v5272_v55 = vadd.f32 %v4414_v17, %v779_v45  ;;  %v766_v63 = vmul.f32 0.71428573, %v5197_v54  ;;  %v4400_v38 = vrot.slane %v781_v58, 9 }
  0xf2   : > { %v5277_v31 = vadd.f32 %v4415_v46, %v780_v26  ;;  %v1132_v41 = vperm.slane %v636_v20, 0  ;;  %v749_v0 = vadd.f32 %v4384_v3, %v5256_v62  ;;  %v4401_v19 = vrot.slane %v782_v9, 9 }
  0xf3   : > { %v5281_v32 = vadd.f32 %v4431_v57, %v668_v49  ;;  %v1131_v45 = vperm.slane %v5232_v7, 0  ;;  %v750_v18 = vadd.f32 %v4385_v50, %v5262_v11  ;;  %v1133_v37 = vperm.slane %v637_v40, 0  ;;  %v4642_v50 = vld [vmem:[%s4946_s28 + $0x50] sm:$0xff] }
  0xf4   : > { %v860_v1 = vadd.f32 %v4399_v14, %v764_v22  ;;  %v4446_v34 = vrot.slane %v5184_v47, 9  ;;  %v4416_v26 = vrot.slane %v765_v25, 9  ;;  %v1134_v20 = vperm.slane %v638_v56, 0  ;;  %2897 = vrot.lane.b32.xlu2 %v4642_v50, %s4810_s29 }
  0xf5   : > { %v4447_v17 = vrot.slane %v5187_v48, 9  ;;  %v1180_v46 = vperm.slane %v748_v12, 0  ;;  %v861_v3 = vadd.f32 %v4400_v38, %v765_v25  ;;  %v4417_v30 = vrot.slane %v766_v63, 9 }
  0xf6   : > { %v1179_v49 = vperm.slane %v747_v61, 0  ;;  %v1437_v57 = vsel %vm1427_vm0, %v5149_v4, %v1132_v41  ;;  %v862_v7 = vadd.f32 %v4401_v19, %v766_v63  ;;  %v1181_v52 = vperm.slane %v749_v0, 0 }
  0xf7   : > { %v1436_v14 = vsel %vm1427_vm0, %v5122_v39, %v1131_v45  ;;  %v4432_v40 = vrot.slane %v5256_v62, 9  ;;  %v1182_v47 = vperm.slane %v750_v18, 0  ;;  %v1438_v48 = vsel %vm1427_vm0, %v5162_v13, %v1133_v37 }
  0xf8   : > { %v1228_v22 = vperm.slane %v860_v1, 1  ;;  %v941_v12 = vadd.f32 %v4416_v26, %v781_v58  ;;  %v4433_v61 = vrot.slane %v5262_v11, 9  ;;  %v1439_v41 = vsel %vm1427_vm0, %v5197_v54, %v1134_v20  ;;  %v4650_v26 = vld [vmem:[%s4946_s28 + $0x90] sm:$0xff] }
  0xf9   : > { %v1227_v56 = vperm.slane %v859_v43, 1  ;;  %v1454_v25 = vsel %vm1444_vm1, %v1437_v57, %v1180_v46  ;;  %v942_v63 = vadd.f32 %v4417_v30, %v782_v9  ;;  %v1229_v38 = vperm.slane %v861_v3, 1  ;;  %v4654_v3 = vld [vmem:[%s4946_s28 + $0xb0] sm:$0xff] }
  0xfa   : > { %v1453_v62 = vsel %vm1444_vm1, %v1436_v14, %v1179_v49  ;;  %v4448_v0 = vrot.slane %v5244_v21, 9  ;;  %v1230_v58 = vperm.slane %v862_v7, 1  ;;  %v1455_v11 = vsel %vm1444_vm1, %v1438_v48, %v1181_v52  ;;  %2921 = vrot.lane.b32.xlu1 %v4654_v3, %s4810_s29 }
  0xfb   : > { %v1276_v43 = vperm.slane %v5277_v31, 1  ;;  %v1021_v9 = vadd.f32 %v4432_v40, %v5241_v59  ;;  %v4449_v19 = vrot.slane %v5251_v16, 9  ;;  %v1456_v60 = vsel %vm1444_vm1, %v1439_v41, %v1182_v47  ;;  %v4660_v59 = vld [vmem:[%s4946_s28 + $0xe0] sm:$0xff] }
  0xfc   : > { %v1275_v45 = vperm.slane %v5272_v55, 1  ;;  %v1471_v21 = vsel %vm1461_vm2, %v1454_v25, %v1228_v22  ;;  %v1022_v18 = vadd.f32 %v4433_v61, %v5248_v15  ;;  %v1277_v37 = vperm.slane %v941_v12, 1  ;;  %2933 = vrot.lane.b32.xlu0 %v4660_v59, %s4810_s29  ;;  %2913 = vrot.lane.b32.xlu2 %v4650_v26, %s4810_s29 }
  0xfd   : > { %v1100_v52 = vadd.f32 %v4447_v17, %v5180_v33  ;;  %v1470_v24 = vsel %vm1461_vm2, %v1453_v62, %v1227_v56  ;;  %v1278_v1 = vperm.slane %v942_v63, 1  ;;  %v1472_v31 = vsel %vm1461_vm2, %v1455_v11, %v1229_v38  ;;  %v502_v56 = vpop.f32.mrf.mxu0  ;;  %v4663_v11 = vld [vmem:[%s4946_s28 + $0xf8] sm:$0xff] }
  0xfe   : > { %v1099_v16 = vadd.f32 %v4446_v34, %v5174_v36  ;;  %v1324_v20 = vperm.slane %v5281_v32, 2  ;;  %v1101_v55 = vadd.f32 %v4448_v0, %v5218_v2  ;;  %v1473_v46 = vsel %vm1461_vm2, %v1456_v60, %v1230_v58 }
  0xff   : > { %v1323_v15 = vperm.slane %v5267_v8, 2  ;;  %v1488_v33 = vsel %vm1478_vm3, %v1471_v21, %v1276_v43  ;;  %v1102_v17 = vadd.f32 %v4449_v19, %v5227_v42  ;;  %v1325_v30 = vperm.slane %v1021_v9, 2 }
 0x100   : > { %v1599_v49 = vmul.f32 0.14285715, %v5222_v44  ;;  %v1487_v57 = vsel %vm1478_vm3, %v1470_v24, %v1275_v45  ;;  %v1326_v7 = vperm.slane %v1022_v18, 2  ;;  %v1489_v36 = vsel %vm1478_vm3, %v1472_v31, %v1277_v37 }
 0x101   : > { %v1595_v32 = vmul.f32 0.85714287, %v5171_v35  ;;  %v1611_v2 = vmul.f32 0.5714286, %v5222_v44  ;;  %v1372_v34 = vperm.slane %v1100_v52, 2  ;;  %v1490_v50 = vsel %vm1478_vm3, %v1473_v46, %v1278_v1 }
 0x102   : > { %v5337_v8 = vadd.f32 %v5194_v53, %v5191_v51  ;;  %v1371_v42 = vperm.slane %v1099_v16, 2  ;;  %v1505_v14 = vsel %vm1495_vm4, %v1488_v33, %v1324_v20  ;;  %v1373_v40 = vperm.slane %v1101_v55, 2  ;;  %2939 = vrot.lane.b32.xlu1 %v4663_v11, %s4810_s29 }
 0x103   : > { %v1607_v47 = vmul.f32 0.42857143, %v5171_v35  ;;  %v1504_v48 = vsel %vm1495_vm4, %v1487_v57, %v1323_v15  ;;  %v1374_v22 = vperm.slane %v1102_v17, 2  ;;  %v1506_v12 = vsel %vm1495_vm4, %v1489_v36, %v1325_v30  ;;  %v4652_v57 = vld [vmem:[%s4946_s28 + $0xa0] sm:$0xff]  ;;  %v8439_v17 = vld [vmem:[#allocation5_spill] sm:$0xff] }
 0x104   : > { %v5346_v51 = vadd.f32 %v5204_v6, %v5201_v5  ;;  %v5348_v53 = vadd.f32 %v1599_v49, %v1595_v32  ;;  %v1404_v61 = vperm.slane %v5149_v4, 3  ;;  %v1507_v41 = vsel %vm1495_vm4, %v1490_v50, %v1326_v7  ;;  %v4662_v5 = vld [vmem:[%s4946_s28 + $0xf0] sm:$0xff]  ;;  %v4651_v6 = vld [vmem:[%s4946_s28 + $0x98] sm:$0xff] }
 0x105   : > { %v8407_v25 = vperm.slane %v5133_v27, 0  ;;  %v5356_v63 = vadd.f32 %v1611_v2, %v1607_v47  ;;  %v1403_v38 = vperm.slane %v5122_v39, 3  ;;  %v1522_v62 = vsel %vm1512_vm5, %v1505_v14, %v1372_v34  ;;  %2937 = vrot.lane.b32.xlu0 %v4662_v5, %s4810_s29  ;;  %2915 = vrot.lane.b32.xlu2 %v4651_v6, %s4810_s29  ;;  %v8412_v7 = vld [vmem:[#allocation10_spill] sm:$0xff] }
 0x106   : > { %v5363_v0 = vmul.f32 0.71428573, %v5337_v8  ;;  %v5366_v4 = vmul.f32 0.2857143, %v5222_v44  ;;  %v1521_v58 = vsel %vm1512_vm5, %v1504_v48, %v1371_v42  ;;  %v1523_v27 = vsel %vm1512_vm5, %v1506_v12, %v1373_v40 }
 0x107   : > { %v1432_v35 = vsel %vm1427_vm0, %v4976_v28, %v8407_v25  ;;  %8408 = vst [vmem:[#allocation15_spill] sm:$0xff] %v5356_v63  ;;  %v5372_v43 = vmul.f32 0.2857143, %v5337_v8  ;;  %v1405_v39 = vperm.slane %v5162_v13, 3  ;;  %v1524_v9 = vsel %vm1512_vm5, %v1507_v41, %v1374_v22 }
 0x108   : > { %v5377_v19 = vadd.f32 %v4967_v23, %v502_v56  ;;  %v5380_v60 = vmul.f32 0.71428573, %v5346_v51  ;;  %v5383_v45 = vmul.f32 0.71428573, %v5348_v53  ;;  %v1539_v21 = vsel %vm1529_vm6, %v1522_v62, %v1404_v61 }
 0x109   : > { %v1406_v18 = vperm.slane %v5197_v54, 3  ;;  %v5388_v37 = vmul.f32 0.71428573, %v5356_v63  ;;  %v5391_v13 = vmul.f32 0.2857143, %v5346_v51  ;;  %v5394_v52 = vsel %vm1529_vm6, %v1521_v58, %v1403_v38 }
 0x10a   : > { %8409 = vst [vmem:[#allocation16_spill] sm:$0xff] %v5394_v52  ;;  %v1540_v24 = vsel %vm1529_vm6, %v1523_v27, %v1405_v39  ;;  %v5400_v1 = vmul.f32 0.2857143, %v5348_v53  ;;  %v1548_v54 = vmul.f32 0.5714286, %v5394_v52  ;;  %v8411_v26 = vperm.slane %v5136_v29, 0 }
 0x10b   : > { %v1560_v31 = vmul.f32 0.14285715, %v5394_v52  ;;  %v5405_v59 = vsel %vm1529_vm6, %v1524_v9, %v1406_v18  ;;  %v1552_v20 = vmul.f32 0.42857143, %v1539_v21  ;;  %v1564_v55 = vmul.f32 0.85714287, %v1539_v21 }
 0x10c   : > { %8410 = vst [vmem:[#allocation17_spill] sm:$0xff] %v5405_v59  ;;  %v1449_v16 = vsel %vm1444_vm1, %v1432_v35, %v8411_v26  ;;  %v5412_v46 = vrot.slane %v5377_v19, 4  ;;  %v1692_v3 = vmul.f32 0.2857143, %v5356_v63  ;;  %v1576_v15 = vmul.f32 0.2857143, %v1540_v24 }
 0x10d   : > { %v1588_v33 = vmul.f32 0.71428573, %v1540_v24  ;;  %v1572_v30 = vmul.f32 0.71428573, %v1539_v21  ;;  %v1600_v49 = vmul.f32 0.14285715, %v5405_v59  ;;  %v5425_v50 = vadd.f32 %v1552_v20, %v1548_v54  ;;  %2917 = vrot.lane.b32.xlu2 %v4652_v57, %s4810_s29 }
 0x10e   : > { %v8413_v36 = vperm.slane %v8412_v7, 1  ;;  %v1584_v32 = vmul.f32 0.2857143, %v1539_v21  ;;  %v1612_v2 = vmul.f32 0.5714286, %v5405_v59  ;;  %v5427_v42 = vadd.f32 %v1564_v55, %v1560_v31  ;;  %v8423_v18 = vld [vmem:[#allocation11_spill] sm:$0xff] }
 0x10f   : > { %v5423_v34 = vmul.f32 0.42857143, %v5377_v19  ;;  %8414 = vst [vmem:[#allocation10_spill] sm:$0xff] %v5425_v50  ;;  %v1596_v14 = vmul.f32 0.85714287, %v1540_v24  ;;  %v5435_v48 = vadd.f32 %v1576_v15, %v1572_v30  ;;  %v4653_v20 = vld [vmem:[%s4946_s28 + $0xa8] sm:$0xff] }
 0x110   : > { %v1466_v29 = vsel %vm1461_vm2, %v1449_v16, %v8413_v36  ;;  %8415 = vst [vmem:[#allocation18_spill] sm:$0xff] %v5427_v42  ;;  %v5430_v40 = vmul.f32 0.42857143, %v5412_v46  ;;  %v5433_v47 = vmul.f32 0.85714287, %v5394_v52  ;;  %v5437_v22 = vadd.f32 %v1588_v33, %v1584_v32 }
 0x111   : > { %8417 = vst [vmem:[#allocation20_spill] sm:$0xff] %v5435_v48  ;;  %v1608_v12 = vmul.f32 0.42857143, %v1540_v24  ;;  %v5440_v61 = vmul.f32 0.85714287, %v5425_v50  ;;  %v5445_v56 = vadd.f32 %v1600_v49, %v1596_v14  ;;  %v4370_v62 = vrot.slane %v5423_v34, 9 }
 0x112   : > { %8416 = vst [vmem:[#allocation19_spill] sm:$0xff] %v5433_v47  ;;  %v5443_v41 = vmul.f32 0.85714287, %v5427_v42  ;;  %v5448_v25 = vmul.f32 0.85714287, %v5377_v19  ;;  %v4371_v27 = vrot.slane %v5430_v40, 9 }
 0x113   : > { %8418 = vst [vmem:[#allocation21_spill] sm:$0xff] %v5437_v22  ;;  %v5451_v35 = vadd.f32 %v1612_v2, %v1608_v12  ;;  %v5454_v38 = vmul.f32 0.5714286, %v5377_v19  ;;  %v655_v5 = vmul.f32 0.14285715, %v5377_v19  ;;  %v8424_v24 = vperm.slane %v8423_v18, 1 }
 0x114   : > { %8419 = vst [vmem:[#allocation22_spill] sm:$0xff] %v5440_v61  ;;  %v5460_v58 = vmul.f32 0.5714286, %v5412_v46  ;;  %v656_v11 = vmul.f32 0.14285715, %v5412_v46  ;;  %v4386_v16 = vrot.slane %v5448_v25, 9 }
 0x115   : > { %8420 = vst [vmem:[#allocation23_spill] sm:$0xff] %v5443_v41  ;;  %v1673_v39 = vmul.f32 0.2857143, %v5435_v48  ;;  %v1674_v9 = vmul.f32 0.2857143, %v5437_v22  ;;  %v5470_v54 = vsel %vm1478_vm3, %v1466_v29, %v8424_v24  ;;  %v5480_v30 = vadd.f32 %v4370_v62, %v5454_v38  ;;  %2919 = vrot.lane.b32.xlu2 %v4653_v20, %s4810_s29  ;;  %v504_v20 = vpop.f32.mrf.mxu0 }
 0x116   : > { %8421 = vst [vmem:[#allocation24_spill] sm:$0xff] %v5445_v56  ;;  %v1701_v21 = vmul.f32 0.71428573, %v5405_v59  ;;  %v1675_v31 = vmul.f32 0.2857143, %v5445_v56  ;;  %v5484_v57 = vadd.f32 %v4371_v27, %v5460_v58  ;;  %v5503_v18 = vadd.f32 %v4386_v16, %v655_v5 }
 0x117   : > { %8422 = vst [vmem:[#allocation25_spill] sm:$0xff] %v5451_v35  ;;  %v1697_v26 = vmul.f32 0.71428573, %v5435_v48  ;;  %v1676_v55 = vmul.f32 0.2857143, %v5451_v35  ;;  %v5495_v12 = vadd.f32 %v1673_v39, %v5363_v0  ;;  %v5498_v62 = vadd.f32 %v1674_v9, %v5380_v60 }
 0x118   : > { %v1698_v15 = vmul.f32 0.71428573, %v5437_v22  ;;  %v1699_v33 = vmul.f32 0.71428573, %v5445_v56  ;;  %v1700_v49 = vmul.f32 0.71428573, %v5451_v35  ;;  %v5489_v29 = vadd.f32 %v1701_v21, %v5366_v4 }
 0x119   : > { %v672_v7 = vmul.f32 0.85714287, %v5412_v46  ;;  %v783_v36 = vmul.f32 0.2857143, %v5377_v19  ;;  %v767_v32 = vmul.f32 0.71428573, %v5377_v19  ;;  %v5501_v27 = vadd.f32 %v1675_v31, %v5383_v45 }
 0x11a   : > { %8425 = vst [vmem:[#allocation11_spill] sm:$0xff] %v5489_v29  ;;  %v768_v2 = vmul.f32 0.71428573, %v5412_v46  ;;  %v784_v14 = vmul.f32 0.2857143, %v5412_v46  ;;  %v5507_v4 = vadd.f32 %v1676_v55, %v5388_v37  ;;  %v5510_v21 = vadd.f32 %v1697_v26, %v5372_v43  ;;  %v8435_v43 = vld [vmem:[#allocation6_spill] sm:$0xff] }
 0x11b   : > { %8426 = vst [vmem:[#allocation26_spill] sm:$0xff] %v5495_v12  ;;  %v5513_v0 = vadd.f32 %v1698_v15, %v5391_v13  ;;  %v5516_v60 = vadd.f32 %v1699_v33, %v5400_v1  ;;  %v5518_v39 = vadd.f32 %v1700_v49, %v1692_v3  ;;  %v5521_v45 = vmul.f32 0.85714287, %v5435_v48  ;;  %v4661_v15 = vld [vmem:[%s4946_s28 + $0xe8] sm:$0xff]  ;;  %s4766_s28 = scalar_lea.hbm %s8281_s10, 16 }
 0x11c   : > { %8427 = vst [vmem:[#allocation27_spill] sm:$0xff] %v5498_v62  ;;  %v4387_v9 = vrot.slane %v672_v7, 9  ;;  %v4402_v24 = vrot.slane %v783_v36, 9  ;;  %v4403_v31 = vrot.slane %v784_v14, 9  ;;  %v4418_v37 = vrot.slane %v767_v32, 9  ;;  %p4768_p1 = scmp.lt.s32.totalorder %s4766_s28, %s4762_s20 }
 0x11d   : > { %8428 = vst [vmem:[#allocation28_spill] sm:$0xff] %v5501_v27  ;;  %v4419_v16 = vrot.slane %v768_v2, 9  ;;  %v5524_v26 = vmul.f32 0.42857143, %v8435_v43  ;;  %v5528_v13 = vmul.f32 %v5501_v27, %v5501_v27  ;;  %v4434_v1 = vrot.slane %v655_v5, 9  ;;  %2935 = vrot.lane.b32.xlu2 %v4661_v15, %s4810_s29 }
 0x11e   : > { %8429 = vst [vmem:[#allocation29_spill] sm:$0xff] %v5507_v4  ;;  %v4435_v55 = vrot.slane %v656_v11, 9  ;;  %v4450_v3 = vrot.slane %v5454_v38, 9  ;;  %v5534_v33 = vsel %vm1756_vm7, %v5513_v0, 0.0  ;;  %v5538_v49 = vmul.f32 %v5507_v4, %v5507_v4  ;;  %p4769_p2 = por %p4768_p1, %p4767_p0 }
 0x11f   : > { %8430 = vst [vmem:[#allocation30_spill] sm:$0xff] %v5510_v21  ;;  %v4451_v6 = vrot.slane %v5460_v58, 9  ;;  %v5542_v48 = vmul.f32 0.42857143, %v8439_v17  ;;  %v5544_v35 = vadd.f32 %v4387_v9, %v656_v11  ;;  %v5546_v5 = vadd.f32 %v4402_v24, %v767_v32 }
 0x120   : > { %8431 = vst [vmem:[#allocation31_spill] sm:$0xff] %v5513_v0  ;;  %v5549_v38 = vadd.f32 %v4967_v23, %v504_v20  ;;  %v5552_v56 = vmul.f32 0.85714287, %v8435_v43  ;;  %v5554_v0 = vadd.f32 %v4403_v31, %v768_v2  ;;  %v5558_v22 = vadd.f32 %v4419_v16, %v784_v14  ;;  %p4770_p3 = pnand %p4769_p2, %p4765_p13 }
 0x121   : > { %8432 = vst [vmem:[#allocation32_spill] sm:$0xff] %v5516_v60  ;;  %v4359_v58 = vrot.slane %v5524_v26, 9  ;;  %v5562_v41 = vadd.f32 %v4434_v1, %v5448_v25  ;;  %v5564_v11 = vadd.f32 %v4435_v55, %v672_v7  ;;  %v5567_v32 = vadd.f32 %v4450_v3, %v5423_v34 }
 0x122   : > { %8433 = vst [vmem:[#allocation33_spill] sm:$0xff] %v5518_v39  ;;  %v5571_v23 = vmul.f32 0.85714287, %v8439_v17  ;;  %v1135_v2 = vperm.slane %v5480_v30, 0  ;;  %v5578_v14 = vmul.f32 0.5714286, %v8435_v43 }
 0x123   : > { %8434 = vst [vmem:[#allocation34_spill] sm:$0xff] %v5521_v45  ;;  %v5556_v45 = vadd.f32 %v4418_v37, %v783_v36  ;;  %v5574_v36 = vadd.f32 %v4451_v6, %v5430_v40  ;;  %v4358_v25 = vrot.slane %v5542_v48, 9  ;;  %v1136_v7 = vperm.slane %v5484_v57, 0  ;;  %v8440_v40 = vld [vmem:[#allocation7_spill] sm:$0xff] }
 0x124   : > { %8436 = vst [vmem:[#allocation6_spill] sm:$0xff] %v5528_v13  ;;  %v1183_v34 = vperm.slane %v5503_v18, 0  ;;  %v1184_v9 = vperm.slane %v5544_v35, 0  ;;  %v4375_v24 = vrot.slane %v5552_v56, 9  ;;  %v5586_v31 = vmul.f32 0.5714286, %v8439_v17 }
 0x125   : > { %8437 = vst [vmem:[#allocation35_spill] sm:$0xff] %v5534_v33  ;;  %v5589_v6 = vmul.f32 0.42857143, %v8440_v40  ;;  %v628_v30 = vadd.f32 %v4359_v58, %v5578_v14  ;;  %v772_v37 = vmul.f32 0.2857143, %v8435_v43  ;;  %v1231_v16 = vperm.slane %v5546_v5, 1 }
 0x126   : > { %8438 = vst [vmem:[#allocation36_spill] sm:$0xff] %v5538_v49  ;;  %v644_v18 = vmul.f32 0.14285715, %v8435_v43  ;;  %v4374_v35 = vrot.slane %v5571_v23, 9  ;;  %v627_v55 = vadd.f32 %v4358_v25, %v5586_v31  ;;  %v771_v3 = vmul.f32 0.2857143, %v8439_v17 }
 0x127   : > { %v643_v15 = vmul.f32 0.14285715, %v8439_v17  ;;  %v5603_v58 = vmul.f32 0.85714287, %v8440_v40  ;;  %v756_v57 = vmul.f32 0.71428573, %v8435_v43  ;;  %v1440_v49 = vsel %vm1427_vm0, %v5377_v19, %v1135_v2 }
 0x128   : > { %v740_v5 = vadd.f32 %v4375_v24, %v644_v18  ;;  %v4361_v29 = vrot.slane %v5589_v6, 9  ;;  %v4391_v13 = vrot.slane %v772_v37, 9  ;;  %v1124_v20 = vperm.slane %v628_v30, 0 }
 0x129   : > { %v739_v61 = vadd.f32 %v4374_v35, %v643_v15  ;;  %v755_v47 = vmul.f32 0.71428573, %v8439_v17  ;;  %v5613_v39 = vmul.f32 0.5714286, %v8440_v40  ;;  %v4390_v24 = vrot.slane %v771_v3, 9 }
 0x12a   : > { %v1123_v60 = vperm.slane %v627_v55, 0  ;;  %v4377_v21 = vrot.slane %v5603_v58, 9  ;;  %v4407_v30 = vrot.slane %v756_v57, 9  ;;  %v1172_v4 = vperm.slane %v740_v5, 0 }
 0x12b   : > { %v630_v1 = vadd.f32 %v4361_v29, %v5613_v39  ;;  %v774_v35 = vmul.f32 0.2857143, %v8440_v40  ;;  %v852_v25 = vadd.f32 %v4391_v13, %v756_v57  ;;  %v1429_v33 = vsel %vm1427_vm0, %v8435_v43, %v1124_v20 }
 0x12c   : > { %v1441_v27 = vsel %vm1427_vm0, %v5412_v46, %v1136_v7  ;;  %v646_v55 = vmul.f32 0.14285715, %v8440_v40  ;;  %v4406_v62 = vrot.slane %v755_v47, 9  ;;  %v1171_v12 = vperm.slane %v739_v61, 0 }
 0x12d   : > { %v1457_v2 = vsel %vm1444_vm1, %v1440_v49, %v1183_v34  ;;  %v851_v59 = vadd.f32 %v4390_v24, %v755_v47  ;;  %v4423_v42 = vrot.slane %v644_v18, 9  ;;  %v1428_v29 = vsel %vm1427_vm0, %v8439_v17, %v1123_v60 }
 0x12e   : > { %v742_v5 = vadd.f32 %v4377_v21, %v646_v55  ;;  %v758_v13 = vmul.f32 0.71428573, %v8440_v40  ;;  %v932_v57 = vadd.f32 %v4407_v30, %v772_v37  ;;  %v1446_v20 = vsel %vm1444_vm1, %v1429_v33, %v1172_v4  ;;  %v4671_v4 = vld [vmem:[%s8277_s6 + $0x38] sm:$0xff] }
 0x12f   : > { %v4393_v50 = vrot.slane %v774_v35, 9  ;;  %v4422_v52 = vrot.slane %v643_v15, 9  ;;  %v1126_v7 = vperm.slane %v630_v1, 0  ;;  %v1220_v44 = vperm.slane %v852_v25, 1  ;;  %3137 = vmatpush.bf16.msrb.mxu0 %v4671_v4  ;;  %4672 = vmatpush.bf16.msra.mxu1 %v4671_v4 }
 0x130   : > { %v1458_v63 = vsel %vm1444_vm1, %v1441_v27, %v1184_v9  ;;  %v931_v61 = vadd.f32 %v4406_v62, %v771_v3  ;;  %v4439_v49 = vrot.slane %v5578_v14, 9  ;;  %v1445_v47 = vsel %vm1444_vm1, %v1428_v29, %v1171_v12  ;;  %4673 = vmatpush.bf16.msra.mxu2 %v4671_v4  ;;  %4674 = vmatpush.bf16.msra.mxu3 %v4671_v4 }
 0x131   : > { %v1474_v34 = vsel %vm1461_vm2, %v1457_v2, %v1231_v16  ;;  %v1012_v21 = vadd.f32 %v4423_v42, %v5552_v56  ;;  %v1219_v60 = vperm.slane %v851_v59, 1  ;;  %v1463_v37 = vsel %vm1461_vm2, %v1446_v20, %v1220_v44 }
 0x132   : > { %v4409_v33 = vrot.slane %v758_v13, 9  ;;  %v4438_v18 = vrot.slane %v5586_v31, 9  ;;  %v1174_v27 = vperm.slane %v742_v5, 0  ;;  %v1268_v62 = vperm.slane %v932_v57, 1 }
 0x133   : > { %v854_v9 = vadd.f32 %v4393_v50, %v758_v13  ;;  %v1011_v14 = vadd.f32 %v4422_v52, %v5571_v23  ;;  %v1431_v12 = vsel %vm1427_vm0, %v8440_v40, %v1126_v7  ;;  %v1462_v42 = vsel %vm1461_vm2, %v1445_v47, %v1219_v60  ;;  %v4670_v7 = vld [vmem:[%s8277_s6 + $0x30] sm:$0xff] }
 0x134   : > { %v8441_v59 = vperm.slane %v5554_v0, 1  ;;  %v1092_v56 = vadd.f32 %v4439_v49, %v5524_v26  ;;  %v1267_v16 = vperm.slane %v931_v61, 1  ;;  %v1480_v31 = vsel %vm1478_vm3, %v1463_v37, %v1268_v62  ;;  %3138 = vmatpush.bf16.msrb.mxu0 %v4670_v7  ;;  %4675 = vmatpush.bf16.msra.mxu1 %v4670_v7 }
 0x135   : > { %v1407_v50 = vperm.slane %v5377_v19, 3  ;;  %v8442_v52 = vperm.slane %v5556_v45, 1  ;;  %v4425_v1 = vrot.slane %v646_v55, 9  ;;  %v1316_v3 = vperm.slane %v1012_v21, 2  ;;  %4676 = vmatpush.bf16.msra.mxu2 %v4670_v7  ;;  %4677 = vmatpush.bf16.msra.mxu3 %v4670_v7 }
 0x136   : > { %v1475_v44 = vsel %vm1461_vm2, %v1458_v63, %v8441_v59  ;;  %v934_v0 = vadd.f32 %v4409_v33, %v774_v35  ;;  %v1091_v63 = vadd.f32 %v4438_v18, %v5542_v48  ;;  %v1448_v15 = vsel %vm1444_vm1, %v1431_v12, %v1174_v27 }
 0x137   : > { %v1491_v23 = vsel %vm1478_vm3, %v1474_v34, %v8442_v52  ;;  %v1479_v26 = vsel %vm1478_vm3, %v1462_v42, %v1267_v16  ;;  %v8443_v25 = vperm.slane %v5558_v22, 1  ;;  %v1222_v19 = vperm.slane %v854_v9, 1 }
 0x138   : > { %v1315_v30 = vperm.slane %v1011_v14, 2  ;;  %v1497_v45 = vsel %vm1495_vm4, %v1480_v31, %v1316_v3  ;;  %v8444_v2 = vperm.slane %v5562_v41, 2  ;;  %v5664_v35 = vrot.slane %v5549_v38, 4  ;;  %v8449_v14 = vld [vmem:[#allocation8_spill] sm:$0xff] }
 0x139   : > { %v1492_v24 = vsel %vm1478_vm3, %v1475_v44, %v8443_v25  ;;  %v4441_v48 = vrot.slane %v5613_v39, 9  ;;  %v1364_v29 = vperm.slane %v1092_v56, 2  ;;  %v1408_v5 = vperm.slane %v5412_v46, 3 }
 0x13a   : > { %v1508_v55 = vsel %vm1495_vm4, %v1491_v23, %v8444_v2  ;;  %v1014_v22 = vadd.f32 %v4425_v1, %v5603_v58  ;;  %v1465_v13 = vsel %vm1461_vm2, %v1448_v15, %v1222_v19  ;;  %v1496_v57 = vsel %vm1495_vm4, %v1479_v26, %v1315_v30  ;;  %v8453_v26 = vld [vmem:[#allocation9_spill] sm:$0xff] }
 0x13b   : > { %v8445_v20 = vperm.slane %v5564_v11, 2  ;;  %v1270_v61 = vperm.slane %v934_v0, 1  ;;  %v1363_v49 = vperm.slane %v1091_v63, 2  ;;  %v1514_v39 = vsel %vm1512_vm5, %v1497_v45, %v1364_v29 }
 0x13c   : > { %v8446_v46 = vperm.slane %v5567_v32, 2  ;;  %v5682_v47 = vmul.f32 0.5714286, %v5549_v38  ;;  %v5685_v34 = vmul.f32 0.42857143, %v5549_v38  ;;  %v1396_v11 = vperm.slane %v8435_v43, 3 }
 0x13d   : > { %v1509_v41 = vsel %vm1495_vm4, %v1492_v24, %v8445_v20  ;;  %v5689_v21 = vmul.f32 0.42857143, %v5664_v35  ;;  %v1094_v60 = vadd.f32 %v4441_v48, %v5589_v6  ;;  %v1482_v37 = vsel %vm1478_vm3, %v1465_v13, %v1270_v61 }
 0x13e   : > { %v1525_v58 = vsel %vm1512_vm5, %v1508_v55, %v8446_v46  ;;  %v1513_v32 = vsel %vm1512_vm5, %v1496_v57, %v1363_v49  ;;  %v8447_v4 = vperm.slane %v5574_v36, 2  ;;  %v1318_v18 = vperm.slane %v1014_v22, 2  ;;  %v8456_v57 = vld [vmem:[#allocation13_spill] sm:$0xff] }
 0x13f   : > { %v1395_v43 = vperm.slane %v8439_v17, 3  ;;  %v1531_v27 = vsel %vm1529_vm6, %v1514_v39, %v1396_v11  ;;  %v5700_v62 = vsel %vm1529_vm6, %v1525_v58, %v1407_v50  ;;  %v5703_v6 = vmul.f32 0.5714286, %v5664_v35 }
 0x140   : > { %v1526_v33 = vsel %vm1512_vm5, %v1509_v41, %v8447_v4  ;;  %8448 = vst [vmem:[#allocation5_spill] sm:$0xff] %v5700_v62  ;;  %v5706_v9 = vmul.f32 0.14285715, %v5549_v38  ;;  %v8450_v36 = vperm.slane %v8449_v14, 2  ;;  %v4372_v42 = vrot.slane %v5685_v34, 9 }
 0x141   : > { %v5714_v17 = vmul.f32 0.85714287, %v5549_v38  ;;  %v1499_v59 = vsel %vm1495_vm4, %v1482_v37, %v1318_v18  ;;  %v5718_v44 = vsel %vm1529_vm6, %v1513_v32, %v1395_v43  ;;  %v5721_v56 = vsel %vm1529_vm6, %v1526_v33, %v1408_v5 }
 0x142   : > { %v1500_v12 = vsel %vm1495_vm4, %v5470_v54, %v8450_v36  ;;  %8451 = vst [vmem:[#allocation7_spill] sm:$0xff] %v5718_v44  ;;  %v5724_v16 = vmul.f32 0.14285715, %v5664_v35  ;;  %v1366_v31 = vperm.slane %v1094_v60, 2  ;;  %v1550_v50 = vmul.f32 0.42857143, %v1531_v27 }
 0x143   : > { %v5727_v54 = vmul.f32 0.5714286, %v5700_v62  ;;  %v4373_v52 = vrot.slane %v5689_v21, 9  ;;  %v5731_v23 = vmul.f32 0.85714287, %v5664_v35  ;;  %v8452_v1 = vperm.slane %v5213_v10, 2 }
 0x144   : > { %v1516_v0 = vsel %vm1512_vm5, %v1499_v59, %v1366_v31  ;;  %v5738_v63 = vmul.f32 0.5714286, %v5718_v44  ;;  %v1562_v15 = vmul.f32 0.85714287, %v1531_v27  ;;  %v1574_v25 = vmul.f32 0.2857143, %v8453_v26 }
 0x145   : > { %v1517_v3 = vsel %vm1512_vm5, %v1500_v12, %v8452_v1  ;;  %v5742_v24 = vmul.f32 0.42857143, %v5721_v56  ;;  %v5745_v19 = vadd.f32 %v4372_v42, %v5682_v47  ;;  %v4388_v30 = vrot.slane %v5714_v17, 9  ;;  %v4669_v10 = vld [vmem:[%s8277_s6 + $0x28] sm:$0xff] }
 0x146   : > { %v1398_v45 = vperm.slane %v8440_v40, 3  ;;  %v8454_v2 = vperm.slane %v4976_v28, 3  ;;  %v5758_v48 = vadd.f32 %v1550_v50, %v5738_v63  ;;  %v5761_v29 = vmul.f32 0.14285715, %v5718_v44  ;;  %3139 = vmatpush.bf16.msrb.mxu0 %v4669_v10  ;;  %4678 = vmatpush.bf16.msra.mxu1 %v4669_v10  ;;  %v4668_v28 = vld [vmem:[%s8277_s6 + $0x20] sm:$0xff]  ;;  %v4667_v50 = vld [vmem:[%s8277_s6 + $0x18] sm:$0xff] }
 0x147   : > { %v1570_v5 = vmul.f32 0.71428573, %v1531_v27  ;;  %v5764_v22 = vmul.f32 0.85714287, %v5721_v56  ;;  %v5767_v13 = vadd.f32 %v4373_v52, %v5703_v6  ;;  %v1551_v20 = vmul.f32 0.42857143, %v8456_v57  ;;  %4679 = vmatpush.bf16.msra.mxu2 %v4669_v10  ;;  %4680 = vmatpush.bf16.msra.mxu3 %v4669_v10 }
 0x148   : > { %v5755_v55 = vsel %vm1529_vm6, %v1517_v3, %v8454_v2  ;;  %v5773_v40 = vsel %vm1529_vm6, %v1516_v0, %v1398_v45  ;;  %v4389_v41 = vrot.slane %v5731_v23, 9  ;;  %v5778_v7 = vadd.f32 %v1562_v15, %v5761_v29  ;;  %v8458_v15 = vld [vmem:[#allocation12_spill] sm:$0xff]  ;;  %v4666_v2 = vld [vmem:[%s8277_s6 + $0x10] sm:$0xff] }
 0x149   : > { %8455 = vst [vmem:[#allocation8_spill] sm:$0xff] %v5773_v40  ;;  %v5780_v61 = vadd.f32 %v1574_v25, %v1570_v5  ;;  %v1586_v49 = vmul.f32 0.71428573, %v8453_v26  ;;  %v5784_v39 = vadd.f32 %v4388_v30, %v5706_v9  ;;  %v769_v46 = vmul.f32 0.71428573, %v5549_v38 }
 0x14a   : > { %v5788_v58 = vmul.f32 0.71428573, %v5664_v35  ;;  %v1547_v11 = vmul.f32 0.5714286, %v5755_v55  ;;  %v1582_v60 = vmul.f32 0.2857143, %v1531_v27  ;;  %3140 = vmatpush.bf16.msrb.mxu0 %v4668_v28  ;;  %4681 = vmatpush.bf16.msra.mxu1 %v4668_v28  ;;  %v5812_v59 = vadd.f32 %v4389_v41, %v5724_v16 }
 0x14b   : > { %8457 = vst [vmem:[#allocation9_spill] sm:$0xff] %v5780_v61  ;;  %v5792_v37 = vmul.f32 0.14285715, %v5773_v40  ;;  %v1757_v32 = vsel %vm1756_vm7, %v5718_v44, 0.0  ;;  %v1758_v4 = vsel %vm1756_vm7, %v5758_v48, 0.0  ;;  %4682 = vmatpush.bf16.msra.mxu2 %v4668_v28  ;;  %4683 = vmatpush.bf16.msra.mxu3 %v4668_v28  ;;  %v1760_v12 = vsel %vm1756_vm7, %v5778_v7, 0.0 }
 0x14c   : > { %v785_v33 = vmul.f32 0.2857143, %v5549_v38  ;;  %v5799_v18 = vadd.f32 %v1551_v20, %v1547_v11  ;;  %v1563_v43 = vmul.f32 0.85714287, %v8456_v57  ;;  %v1759_v14 = vadd.f32 %v1758_v4, %v1757_v32 }
 0x14d   : > { %v5802_v27 = vadd.f32 %v1586_v49, %v1582_v60  ;;  %v5805_v36 = vmul.f32 0.5714286, %v5773_v40  ;;  %v1762_v42 = vsel %vm1756_vm7, %v5780_v61, 0.0  ;;  %v786_v31 = vmul.f32 0.2857143, %v5664_v35 }
 0x14e   : > { %v1559_v52 = vmul.f32 0.14285715, %v5755_v55  ;;  %v1761_v1 = vadd.f32 %v1760_v12, %v1759_v14  ;;  %v4420_v3 = vrot.slane %v769_v46, 9  ;;  %v4436_v0 = vrot.slane %v5706_v9, 9  ;;  %3141 = vmatpush.bf16.msrb.mxu0 %v4667_v50  ;;  %4684 = vmatpush.bf16.msra.mxu1 %v4667_v50 }
 0x14f   : > { %v5822_v25 = vadd.f32 %v5792_v37, %v8458_v15  ;;  %v1606_v30 = vmul.f32 0.42857143, %v8453_v26  ;;  %v4437_v10 = vrot.slane %v5724_v16, 9  ;;  %v4452_v45 = vrot.slane %v5682_v47, 9  ;;  %4685 = vmatpush.bf16.msra.mxu2 %v4667_v50  ;;  %4686 = vmatpush.bf16.msra.mxu3 %v4667_v50 }
 0x150   : > { %v5830_v5 = vadd.f32 %v1563_v43, %v1559_v52  ;;  %v1763_v28 = vadd.f32 %v1762_v42, %v1761_v1  ;;  %v1624_v26 = vmul.f32 0.42857143, %v5755_v55  ;;  %v1625_v16 = vmul.f32 0.42857143, %v5799_v18 }
 0x151   : > { %v5833_v9 = vadd.f32 %v5805_v36, %v1606_v30  ;;  %v1764_v47 = vsel %vm1756_vm7, %v5802_v27, 0.0  ;;  %v4404_v57 = vrot.slane %v785_v33, 9  ;;  %v4405_v20 = vrot.slane %v786_v31, 9 }
 0x152   : > { %v4421_v41 = vrot.slane %v5788_v58, 9  ;;  %v1765_v49 = vadd.f32 %v1764_v47, %v1763_v28  ;;  %v5840_v11 = vadd.f32 %v4420_v3, %v785_v33  ;;  %v4453_v60 = vrot.slane %v5703_v6, 9  ;;  %3142 = vmatpush.bf16.msrb.mxu0 %v4666_v2  ;;  %4687 = vmatpush.bf16.msra.mxu1 %v4666_v2  ;;  %v4665_v3 = vld [vmem:[%s8277_s6 + $0x8] sm:$0xff] }
 0x153   : > { %8459 = vst [vmem:[#allocation13_spill] sm:$0xff] %v5833_v9  ;;  %v1618_v32 = vmul.f32 0.5714286, %v5758_v48  ;;  %v1766_v4 = vsel %vm1756_vm7, %v5822_v25, 0.0  ;;  %v5847_v43 = vadd.f32 %v4436_v0, %v5714_v17  ;;  %v5850_v14 = vadd.f32 %v4437_v10, %v5731_v23  ;;  %4688 = vmatpush.bf16.msra.mxu2 %v4666_v2  ;;  %4689 = vmatpush.bf16.msra.mxu3 %v4666_v2 }
 0x154   : > { %v1626_v12 = vmul.f32 0.42857143, %v5830_v5  ;;  %v1767_v42 = vadd.f32 %v1766_v4, %v1765_v49  ;;  %v1627_v6 = vmul.f32 0.42857143, %v5337_v8  ;;  %v5855_v33 = vadd.f32 %v1624_v26, %v5738_v63 }
 0x155   : > { %v5857_v50 = vadd.f32 %v1625_v16, %v1618_v32  ;;  %v1768_v17 = vsel %vm1756_vm7, %v5833_v9, 0.0  ;;  %v5861_v52 = vadd.f32 %v4404_v57, %v769_v46  ;;  %v5864_v23 = vadd.f32 %v4405_v20, %v5788_v58 }
 0x156   : > { %8460 = vst [vmem:[#allocation12_spill] sm:$0xff] %v5855_v33  ;;  %v5867_v1 = vadd.f32 %v4452_v45, %v5685_v34  ;;  %v1769_v0 = vadd.f32 %v1768_v17, %v1767_v42  ;;  %v5872_v63 = vadd.f32 %v4421_v41, %v786_v31  ;;  %v1619_v15 = vmul.f32 0.5714286, %v5778_v7  ;;  %3143 = vmatpush.bf16.msrb.mxu0 %v4665_v3  ;;  %v4664_v34 = vld [vmem:[%s8277_s6] sm:$0xff] }
 0x157   : > { %8461 = vst [vmem:[#allocation37_spill] sm:$0xff] %v5857_v50  ;;  %v1620_v30 = vmul.f32 0.5714286, %v5780_v61  ;;  %v1770_v46 = vsel %vm1756_vm7, %v5773_v40, 0.0  ;;  %4690 = vmatpush.bf16.msra.mxu1 %v4665_v3  ;;  %v1628_v10 = vmul.f32 0.42857143, %v5346_v51  ;;  %v1891_v31 = vmul.f32 %v5758_v48, %v5758_v48  ;;  %4691 = vmatpush.bf16.msra.mxu2 %v4665_v3 }
 0x158   : > { %v1771_v45 = vadd.f32 %v1770_v46, %v1769_v0  ;;  %4692 = vmatpush.bf16.msra.mxu3 %v4665_v3  ;;  %v5885_v2 = vadd.f32 %v1626_v12, %v1619_v15  ;;  %v1772_v26 = vsel %vm1756_vm7, %v5855_v33, 0.0  ;;  %v1774_v16 = vsel %vm1756_vm7, %v5857_v50, 0.0 }
 0x159   : > { %v5887_v28 = vadd.f32 %v1627_v6, %v1620_v30  ;;  %v1890_v41 = vmul.f32 %v5718_v44, %v5718_v44  ;;  %v5898_v49 = vadd.f32 %v4453_v60, %v5689_v21  ;;  %v1621_v32 = vmul.f32 0.5714286, %v5802_v27  ;;  %v8462_v21 = vld [vmem:[#allocation15_spill] sm:$0xff] }
 0x15a   : > { %v1773_v20 = vadd.f32 %v1772_v26, %v1771_v45  ;;  %v1622_v4 = vmul.f32 0.5714286, %v5822_v25  ;;  %v1629_v12 = vmul.f32 0.42857143, %v5348_v53  ;;  %3144 = vmatpush.bf16.msrb.mxu0 %v4664_v34  ;;  %v1892_v6 = vmul.f32 %v5778_v7, %v5778_v7 }
 0x15b   : > { %4693 = vmatpush.bf16.msra.mxu1 %v4664_v34  ;;  %v1893_v17 = vmul.f32 %v5780_v61, %v5780_v61  ;;  %v1955_v3 = vsel %vm1756_vm7, %v1891_v31, 0.0  ;;  %4694 = vmatpush.bf16.msra.mxu2 %v4664_v34  ;;  %v1630_v60 = vmul.f32 0.42857143, %v8462_v21  ;;  %v5909_v0 = vadd.f32 %v1628_v10, %v1621_v32 }
 0x15c   : > { %v1775_v42 = vadd.f32 %v1774_v16, %v1773_v20  ;;  %4695 = vmatpush.bf16.msra.mxu3 %v4664_v34  ;;  %v1776_v15 = vsel %vm1756_vm7, %v5885_v2, 0.0  ;;  %v1778_v30 = vsel %vm1756_vm7, %v5887_v28, 0.0  ;;  %v1954_v16 = vsel %vm1756_vm7, %v1890_v41, 0.0  ;;  %v8463_v34 = vld [vmem:[#allocation14_spill] sm:$0xff] }
 0x15d   : > { %v1623_v31 = vmul.f32 0.5714286, %v5833_v9  ;;  %v1631_v20 = vmul.f32 0.42857143, %v8463_v34  ;;  %v5920_v57 = vadd.f32 %v1629_v12, %v1622_v4  ;;  %v1956_v10 = vadd.f32 %v1955_v3, %v1954_v16 }
 0x15e   : > { %v1777_v26 = vadd.f32 %v1776_v15, %v1775_v42  ;;  %v1894_v47 = vmul.f32 %v5802_v27, %v5802_v27  ;;  %v1957_v58 = vsel %vm1756_vm7, %v1892_v6, 0.0  ;;  %v1959_v46 = vsel %vm1756_vm7, %v1893_v17, 0.0 }
 0x15f   : > { %v5926_v44 = vadd.f32 %v1630_v60, %v1623_v31  ;;  %v1646_v42 = vmul.f32 0.85714287, %v5755_v55  ;;  %v1780_v41 = vsel %vm1756_vm7, %v5909_v0, 0.0  ;;  %v1958_v15 = vadd.f32 %v1957_v58, %v1956_v10 }
 0x160   : > { %v1779_v32 = vadd.f32 %v1778_v30, %v1777_v26  ;;  %v1640_v4 = vmul.f32 0.14285715, %v5758_v48  ;;  %v1641_v12 = vmul.f32 0.14285715, %v5778_v7  ;;  %v1895_v30 = vmul.f32 %v5822_v25, %v5822_v25 }
 0x161   : > { %v5936_v6 = vadd.f32 %v1631_v20, %v5805_v36  ;;  %v1647_v17 = vmul.f32 0.85714287, %v5799_v18  ;;  %v1782_v60 = vsel %vm1756_vm7, %v5920_v57, 0.0  ;;  %v1960_v26 = vadd.f32 %v1959_v46, %v1958_v15 }
 0x162   : > { %v1781_v3 = vadd.f32 %v1780_v41, %v1779_v32  ;;  %v1642_v16 = vmul.f32 0.14285715, %v5780_v61  ;;  %v1896_v31 = vmul.f32 %v5833_v9, %v5833_v9  ;;  %v1961_v10 = vsel %vm1756_vm7, %v1894_v47, 0.0 }
 0x163   : > { %v1648_v32 = vmul.f32 0.85714287, %v5830_v5  ;;  %v5947_v41 = vadd.f32 %v1646_v42, %v5761_v29  ;;  %v1784_v36 = vsel %vm1756_vm7, %v5926_v44, 0.0  ;;  %v1962_v20 = vadd.f32 %v1961_v10, %v1960_v26 }
 0x164   : > { %v1783_v58 = vadd.f32 %v1782_v60, %v1781_v3  ;;  %v1643_v45 = vmul.f32 0.14285715, %v5802_v27  ;;  %v1897_v15 = vmul.f32 %v5773_v40, %v5773_v40  ;;  %v1963_v3 = vsel %vm1756_vm7, %v1895_v30, 0.0 }
 0x165   : > { %8464 = vst [vmem:[#allocation15_spill] sm:$0xff] %v5947_v41  ;;  %v1649_v60 = vmul.f32 0.85714287, %v5337_v8  ;;  %v5956_v47 = vadd.f32 %v1647_v17, %v1640_v4  ;;  %v1786_v29 = vsel %vm1756_vm7, %v5936_v6, 0.0  ;;  %v1964_v42 = vadd.f32 %v1963_v3, %v1962_v20 }
 0x166   : > { %v1785_v46 = vadd.f32 %v1784_v36, %v1783_v58  ;;  %v1898_v26 = vmul.f32 %v5855_v33, %v5855_v33  ;;  %v1899_v58 = vmul.f32 %v5857_v50, %v5857_v50  ;;  %v1965_v10 = vsel %vm1756_vm7, %v1896_v31, 0.0 }
 0x167   : > { %8465 = vst [vmem:[#allocation14_spill] sm:$0xff] %v5956_v47  ;;  %v1650_v36 = vmul.f32 0.85714287, %v5346_v51  ;;  %v5966_v30 = vadd.f32 %v1648_v32, %v1641_v12  ;;  %v1788_v8 = vsel %vm1756_vm7, %v5947_v41, 0.0  ;;  %v1966_v4 = vadd.f32 %v1965_v10, %v1964_v42 }
 0x168   : > { %v1787_v61 = vadd.f32 %v1786_v29, %v1785_v46  ;;  %v1644_v17 = vmul.f32 0.14285715, %v5822_v25  ;;  %v1651_v20 = vmul.f32 0.85714287, %v5348_v53  ;;  %v1967_v3 = vsel %vm1756_vm7, %v1897_v15, 0.0 }
 0x169   : > { %8466 = vst [vmem:[#allocation38_spill] sm:$0xff] %v5966_v30  ;;  %v5973_v29 = vadd.f32 %v1649_v60, %v1642_v16  ;;  %v1790_v31 = vsel %vm1756_vm7, %v5956_v47, 0.0  ;;  %v1900_v51 = vmul.f32 %v5885_v2, %v5885_v2  ;;  %v1968_v12 = vadd.f32 %v1967_v3, %v1966_v4  ;;  %v8471_v4 = vld [vmem:[#allocation16_spill] sm:$0xff] }
 0x16a   : > { %v1789_v46 = vadd.f32 %v1788_v8, %v1787_v61  ;;  %v1901_v42 = vmul.f32 %v5887_v28, %v5887_v28  ;;  %v1969_v10 = vsel %vm1756_vm7, %v1898_v26, 0.0  ;;  %v1971_v53 = vsel %vm1756_vm7, %v1899_v58, 0.0 }
 0x16b   : > { %8467 = vst [vmem:[#allocation39_spill] sm:$0xff] %v5973_v29  ;;  %v1652_v61 = vmul.f32 0.85714287, %v8462_v21  ;;  %v5984_v15 = vadd.f32 %v1650_v36, %v1643_v45  ;;  %v1792_v16 = vsel %vm1756_vm7, %v5966_v30, 0.0  ;;  %v1970_v60 = vadd.f32 %v1969_v10, %v1968_v12 }
 0x16c   : > { %v1791_v32 = vadd.f32 %v1790_v31, %v1789_v46  ;;  %v1234_v8 = vperm.slane %v5864_v23, 1  ;;  %v1645_v46 = vmul.f32 0.14285715, %v5833_v9  ;;  %v1653_v31 = vmul.f32 0.85714287, %v8463_v34 }
 0x16d   : > { %8468 = vst [vmem:[#allocation40_spill] sm:$0xff] %v5984_v15  ;;  %v5992_v26 = vadd.f32 %v1651_v20, %v1644_v17  ;;  %v1794_v21 = vsel %vm1756_vm7, %v5973_v29, 0.0  ;;  %v1972_v45 = vadd.f32 %v1971_v53, %v1970_v60  ;;  %v1902_v36 = vmul.f32 %v5909_v0, %v5909_v0 }
 0x16e   : > { %v1793_v3 = vadd.f32 %v1792_v16, %v1791_v32  ;;  %v1973_v12 = vsel %vm1756_vm7, %v1900_v51, 0.0  ;;  %v1975_v23 = vsel %vm1756_vm7, %v1901_v42, 0.0  ;;  %v6000_v10 = vadd.f32 %v1652_v61, %v1645_v46  ;;  %v8474_v61 = vld [vmem:[#allocation10_spill] sm:$0xff] }
 0x16f   : > { %8469 = vst [vmem:[#allocation41_spill] sm:$0xff] %v5992_v26  ;;  %v1670_v32 = vmul.f32 0.2857143, %v8471_v4  ;;  %v1796_v17 = vsel %vm1756_vm7, %v5984_v15, 0.0  ;;  %v1974_v20 = vadd.f32 %v1973_v12, %v1972_v45  ;;  %v8472_v16 = vperm.slane %v5745_v19, 0 }
 0x170   : > { %v1795_v58 = vadd.f32 %v1794_v21, %v1793_v3  ;;  %8470 = vst [vmem:[#allocation42_spill] sm:$0xff] %v6000_v10  ;;  %v1662_v60 = vmul.f32 0.71428573, %v5755_v55  ;;  %v1903_v51 = vmul.f32 %v5920_v57, %v5920_v57  ;;  %v6013_v42 = vadd.f32 %v1653_v31, %v5792_v37 }
 0x171   : > { %v1442_v53 = vsel %vm1427_vm0, %v5549_v38, %v8472_v16  ;;  %v1671_v46 = vmul.f32 0.2857143, %v8474_v61  ;;  %v1798_v21 = vsel %vm1756_vm7, %v5992_v26, 0.0  ;;  %v1976_v45 = vadd.f32 %v1975_v23, %v1974_v20 }
 0x172   : > { %v1797_v3 = vadd.f32 %v1796_v17, %v1795_v58  ;;  %8473 = vst [vmem:[#allocation16_spill] sm:$0xff] %v6013_v42  ;;  %v1663_v19 = vmul.f32 0.71428573, %v5799_v18  ;;  %v1904_v16 = vmul.f32 %v5926_v44, %v5926_v44  ;;  %v1977_v58 = vsel %vm1756_vm7, %v1902_v36, 0.0  ;;  %v8475_v17 = vld [vmem:[#allocation18_spill] sm:$0xff] }
 0x173   : > { %v1672_v50 = vmul.f32 0.2857143, %v8475_v17  ;;  %v6023_v33 = vadd.f32 %v1670_v32, %v1662_v60  ;;  %v1800_v37 = vsel %vm1756_vm7, %v6000_v10, 0.0  ;;  %v1978_v31 = vadd.f32 %v1977_v58, %v1976_v45 }
 0x174   : > { %v1799_v12 = vadd.f32 %v1798_v21, %v1797_v3  ;;  %v8477_v40 = vperm.slane %v5767_v13, 0  ;;  %v1905_v3 = vmul.f32 %v5936_v6, %v5936_v6  ;;  %v1979_v21 = vsel %vm1756_vm7, %v1903_v51, 0.0 }
 0x175   : > { %8476 = vst [vmem:[#allocation10_spill] sm:$0xff] %v6023_v33  ;;  %v1664_v36 = vmul.f32 0.71428573, %v5830_v5  ;;  %v6035_v9 = vadd.f32 %v1671_v46, %v1663_v19  ;;  %v1802_v32 = vsel %vm1756_vm7, %v6013_v42, 0.0  ;;  %v1980_v60 = vadd.f32 %v1979_v21, %v1978_v31 }
 0x176   : > { %v1443_v23 = vsel %vm1427_vm0, %v5664_v35, %v8477_v40  ;;  %v1801_v20 = vadd.f32 %v1800_v37, %v1799_v12  ;;  %v1282_v45 = vperm.slane %v5872_v63, 1  ;;  %v1906_v40 = vmul.f32 %v5947_v41, %v5947_v41 }
 0x177   : > { %8478 = vst [vmem:[#allocation18_spill] sm:$0xff] %v6035_v9  ;;  %v1981_v12 = vsel %vm1756_vm7, %v1904_v16, 0.0  ;;  %v8479_v58 = vperm.slane %v5784_v39, 0  ;;  %v6046_v37 = vadd.f32 %v1672_v50, %v1664_v36  ;;  %v1804_v46 = vsel %vm1756_vm7, %v6023_v33, 0.0 }
 0x178   : > { %v1803_v13 = vadd.f32 %v1802_v32, %v1801_v20  ;;  %v1982_v19 = vadd.f32 %v1981_v12, %v1980_v60  ;;  %v8481_v31 = vperm.slane %v5812_v59, 0  ;;  %v1907_v21 = vmul.f32 %v5956_v47, %v5956_v47  ;;  %v8517_v47 = vld [vmem:[#allocation31_spill] sm:$0xff] }
 0x179   : > { %v1459_v51 = vsel %vm1444_vm1, %v1442_v53, %v8479_v58  ;;  %8480 = vst [vmem:[#allocation43_spill] sm:$0xff] %v6046_v37  ;;  %v1983_v16 = vsel %vm1756_vm7, %v1905_v3, 0.0  ;;  %v1329_v39 = vperm.slane %v5847_v43, 2  ;;  %v1330_v53 = vperm.slane %v5850_v14, 2 }
 0x17a   : > { %v1460_v63 = vsel %vm1444_vm1, %v1443_v23, %v8481_v31  ;;  %v1805_v20 = vadd.f32 %v1804_v46, %v1803_v13  ;;  %v1806_v50 = vsel %vm1756_vm7, %v6035_v9, 0.0  ;;  %v1984_v36 = vadd.f32 %v1983_v16, %v1982_v19  ;;  %v8484_v31 = vld [vmem:[#allocation17_spill] sm:$0xff] }
 0x17b   : > { %v8482_v32 = vperm.slane %v5861_v52, 1  ;;  %v1908_v23 = vmul.f32 %v5966_v30, %v5966_v30  ;;  %v1985_v13 = vsel %vm1756_vm7, %v1906_v40, 0.0  ;;  %v1377_v3 = vperm.slane %v5867_v1, 2 }
 0x17c   : > { %v1807_v60 = vadd.f32 %v1806_v50, %v1805_v20  ;;  %v1477_v43 = vsel %vm1461_vm2, %v1460_v63, %v1234_v8  ;;  %v1808_v14 = vsel %vm1756_vm7, %v6046_v37, 0.0  ;;  %v1986_v12 = vadd.f32 %v1985_v13, %v1984_v36  ;;  %v8485_v20 = vld [vmem:[#allocation26_spill] sm:$0xff] }
 0x17d   : > { %v1476_v59 = vsel %vm1461_vm2, %v1459_v51, %v8482_v32  ;;  %v1378_v58 = vperm.slane %v5898_v49, 2  ;;  %v1909_v52 = vmul.f32 %v5973_v29, %v5973_v29  ;;  %v1987_v51 = vsel %vm1756_vm7, %v1907_v21, 0.0  ;;  %v8486_v32 = vld [vmem:[#allocation27_spill] sm:$0xff] }
 0x17e   : > { %v1809_v46 = vadd.f32 %v1808_v14, %v1807_v60  ;;  %v8483_v19 = vperm.slane %v5840_v11, 1  ;;  %v1677_v1 = vmul.f32 0.2857143, %v8484_v31  ;;  %v1810_v8 = vsel %vm1756_vm7, %v8485_v20, 0.0 }
 0x17f   : > { %v1988_v63 = vadd.f32 %v1987_v51, %v1986_v12  ;;  %v1494_v16 = vsel %vm1478_vm3, %v1477_v43, %v1282_v45  ;;  %v1910_v49 = vmul.f32 %v5984_v15, %v5984_v15  ;;  %v1989_v36 = vsel %vm1756_vm7, %v1908_v23, 0.0 }
 0x180   : > { %v1493_v40 = vsel %vm1478_vm3, %v1476_v59, %v8483_v19  ;;  %v1811_v50 = vadd.f32 %v1810_v8, %v1809_v46  ;;  %v1669_v21 = vmul.f32 0.71428573, %v8463_v34  ;;  %v1694_v11 = vmul.f32 0.71428573, %v8471_v4  ;;  %v8487_v46 = vld [vmem:[#allocation28_spill] sm:$0xff] }
 0x181   : > { %v1812_v59 = vsel %vm1756_vm7, %v8486_v32, 0.0  ;;  %v1990_v60 = vadd.f32 %v1989_v36, %v1988_v63  ;;  %v1686_v13 = vmul.f32 0.2857143, %v5755_v55  ;;  %v1911_v45 = vmul.f32 %v5992_v26, %v5992_v26 }
 0x182   : > { %v1813_v14 = vadd.f32 %v1812_v59, %v1811_v50  ;;  %v1991_v43 = vsel %vm1756_vm7, %v1909_v52, 0.0  ;;  %v6092_v12 = vadd.f32 %v1677_v1, %v1669_v21  ;;  %v1695_v23 = vmul.f32 0.71428573, %v8474_v61  ;;  %v8488_v52 = vld [vmem:[#allocation29_spill] sm:$0xff] }
 0x183   : > { %v1814_v34 = vsel %vm1756_vm7, %v8487_v46, 0.0  ;;  %v1992_v51 = vadd.f32 %v1991_v43, %v1990_v60  ;;  %v1687_v19 = vmul.f32 0.2857143, %v5799_v18  ;;  %v1912_v55 = vmul.f32 %v6000_v10, %v6000_v10  ;;  %v8513_v10 = vld [vmem:[#allocation24_spill] sm:$0xff] }
 0x184   : > { %v1815_v8 = vadd.f32 %v1814_v34, %v1813_v14  ;;  %v1993_v63 = vsel %vm1756_vm7, %v1910_v49, 0.0  ;;  %v1696_v50 = vmul.f32 0.71428573, %v8475_v17  ;;  %v6102_v36 = vadd.f32 %v1694_v11, %v1686_v13 }
 0x185   : > { %v1816_v1 = vsel %vm1756_vm7, %v8488_v52, 0.0  ;;  %v1994_v21 = vadd.f32 %v1993_v63, %v1992_v51  ;;  %v1510_v59 = vsel %vm1495_vm4, %v1493_v40, %v1329_v39  ;;  %v1913_v18 = vmul.f32 %v6013_v42, %v6013_v42 }
 0x186   : > { %v1817_v26 = vadd.f32 %v1816_v1, %v1815_v8  ;;  %v1995_v60 = vsel %vm1756_vm7, %v1911_v45, 0.0  ;;  %v1688_v14 = vmul.f32 0.2857143, %v5830_v5  ;;  %v6111_v43 = vadd.f32 %v1695_v23, %v1687_v19 }
 0x187   : > { %v1818_v49 = vsel %vm1756_vm7, %v6092_v12, 0.0  ;;  %v1996_v11 = vadd.f32 %v1995_v60, %v1994_v21  ;;  %v1409_v13 = vperm.slane %v5549_v38, 3  ;;  %v1914_v39 = vmul.f32 %v6023_v33, %v6023_v33 }
 0x188   : > { %v1819_v34 = vadd.f32 %v1818_v49, %v1817_v26  ;;  %v1997_v40 = vsel %vm1756_vm7, %v1912_v55, 0.0  ;;  %v1527_v51 = vsel %vm1512_vm5, %v1510_v59, %v1377_v3  ;;  %v6120_v8 = vadd.f32 %v1696_v50, %v1688_v14 }
 0x189   : > { %v1820_v5 = vsel %vm1756_vm7, %v6102_v36, 0.0  ;;  %v1998_v45 = vadd.f32 %v1997_v40, %v1996_v11  ;;  %v1511_v23 = vsel %vm1495_vm4, %v1494_v16, %v1330_v53  ;;  %v1915_v38 = vmul.f32 %v6035_v9, %v6035_v9 }
 0x18a   : > { %8489 = vst [vmem:[#allocation17_spill] sm:$0xff] %v6120_v8  ;;  %v1821_v19 = vadd.f32 %v1820_v5, %v1819_v34  ;;  %v1999_v26 = vsel %vm1756_vm7, %v1913_v18, 0.0  ;;  %v1561_v63 = vmul.f32 0.14285715, %v5700_v62  ;;  %v1410_v55 = vperm.slane %v5664_v35, 3 }
 0x18b   : > { %v1822_v3 = vsel %vm1756_vm7, %v6111_v43, 0.0  ;;  %v2000_v50 = vadd.f32 %v1999_v26, %v1998_v45  ;;  %v1544_v1 = vsel %vm1529_vm6, %v1527_v51, %v1409_v13  ;;  %v1916_v53 = vmul.f32 %v6046_v37, %v6046_v37 }
 0x18c   : > { %v1823_v21 = vadd.f32 %v1822_v3, %v1821_v19  ;;  %v2001_v16 = vsel %vm1756_vm7, %v1914_v39, 0.0  ;;  %v6138_v59 = vadd.f32 %v5742_v24, %v5727_v54  ;;  %v1528_v18 = vsel %vm1512_vm5, %v1511_v23, %v1378_v58  ;;  %v8492_v24 = vld [vmem:[#allocation30_spill] sm:$0xff]  ;;  %v8494_v23 = vld [vmem:[#allocation32_spill] sm:$0xff] }
 0x18d   : > { %v1824_v35 = vsel %vm1756_vm7, %v6120_v8, 0.0  ;;  %v2002_v60 = vadd.f32 %v2001_v16, %v2000_v50  ;;  %v6144_v14 = vadd.f32 %v5764_v22, %v1561_v63  ;;  %v1917_v11 = vmul.f32 %v8485_v20, %v8485_v20  ;;  %v8495_v50 = vld [vmem:[#allocation33_spill] sm:$0xff] }
 0x18e   : > { %8490 = vst [vmem:[#allocation27_spill] sm:$0xff] %v6138_v59  ;;  %v1825_v49 = vadd.f32 %v1824_v35, %v1823_v21  ;;  %v2003_v13 = vsel %vm1756_vm7, %v1915_v38, 0.0  ;;  %v1573_v34 = vmul.f32 0.71428573, %v5721_v56  ;;  %v1577_v39 = vmul.f32 0.2857143, %v1544_v1 }
 0x18f   : > { %8491 = vst [vmem:[#allocation28_spill] sm:$0xff] %v6144_v14  ;;  %v1826_v40 = vsel %vm1756_vm7, %v8492_v24, 0.0  ;;  %v2004_v58 = vadd.f32 %v2003_v13, %v2002_v60  ;;  %v6153_v51 = vsel %vm1529_vm6, %v1528_v18, %v1410_v55  ;;  %v1918_v22 = vmul.f32 %v8486_v32, %v8486_v32  ;;  %v8496_v55 = vld [vmem:[#allocation35_spill] sm:$0xff] }
 0x190   : > { %8493 = vst [vmem:[#allocation29_spill] sm:$0xff] %v6153_v51  ;;  %v1827_v5 = vadd.f32 %v1826_v40, %v1825_v49  ;;  %v2005_v45 = vsel %vm1756_vm7, %v1916_v53, 0.0  ;;  %v1830_v19 = vsel %vm1756_vm7, %v8494_v23, 0.0  ;;  %v1585_v38 = vmul.f32 0.2857143, %v5721_v56  ;;  %v8498_v56 = vld [vmem:[#allocation19_spill] sm:$0xff] }
 0x191   : > { %v1589_v26 = vmul.f32 0.71428573, %v1544_v1  ;;  %v2006_v3 = vadd.f32 %v2005_v45, %v2004_v58  ;;  %v1832_v21 = vsel %vm1756_vm7, %v8495_v50, 0.0  ;;  %v1718_v16 = vmul.f32 0.14285715, %v6138_v59 }
 0x192   : > { %v1829_v18 = vadd.f32 %v8496_v55, %v1827_v5  ;;  %v2007_v35 = vsel %vm1756_vm7, %v1917_v11, 0.0  ;;  %v6166_v60 = vadd.f32 %v1577_v39, %v1573_v34  ;;  %v1597_v49 = vmul.f32 0.85714287, %v1544_v1  ;;  %v8501_v34 = vld [vmem:[#allocation22_spill] sm:$0xff] }
 0x193   : > { %v1601_v53 = vmul.f32 0.14285715, %v6153_v51  ;;  %v2008_v13 = vadd.f32 %v2007_v35, %v2006_v3  ;;  %v1719_v40 = vmul.f32 0.14285715, %v6144_v14  ;;  %v6171_v20 = vadd.f32 %v8498_v56, %v1561_v63  ;;  %v8503_v35 = vld [vmem:[#allocation6_spill] sm:$0xff] }
 0x194   : > { %8497 = vst [vmem:[#allocation30_spill] sm:$0xff] %v6166_v60  ;;  %v1831_v58 = vadd.f32 %v1830_v19, %v1829_v18  ;;  %v2009_v45 = vsel %vm1756_vm7, %v1918_v22, 0.0  ;;  %v6174_v37 = vadd.f32 %v1589_v26, %v1585_v38  ;;  %v1609_v9 = vmul.f32 0.42857143, %v1544_v1  ;;  %v8505_v38 = vld [vmem:[#allocation11_spill] sm:$0xff] }
 0x195   : > { %8499 = vst [vmem:[#allocation35_spill] sm:$0xff] %v6171_v20  ;;  %v6177_v5 = vmul.f32 0.5714286, %v6153_v51  ;;  %v2010_v11 = vadd.f32 %v2009_v45, %v2008_v13  ;;  %v6180_v39 = vadd.f32 %v1718_v16, %v8501_v34  ;;  %v1921_v3 = vmul.f32 %v6092_v12, %v6092_v12  ;;  %v8506_v13 = vld [vmem:[#allocation36_spill] sm:$0xff] }
 0x196   : > { %8500 = vst [vmem:[#allocation19_spill] sm:$0xff] %v6174_v37  ;;  %v1833_v55 = vadd.f32 %v1832_v21, %v1831_v58  ;;  %v2011_v63 = vsel %vm1756_vm7, %v8503_v35, 0.0  ;;  %v6186_v19 = vadd.f32 %v1601_v53, %v1597_v49  ;;  %v1720_v22 = vmul.f32 0.14285715, %v6166_v60  ;;  %v8507_v58 = vld [vmem:[#allocation23_spill] sm:$0xff] }
 0x197   : > { %8502 = vst [vmem:[#allocation22_spill] sm:$0xff] %v6180_v39  ;;  %v1834_v1 = vsel %vm1756_vm7, %v8505_v38, 0.0  ;;  %v2012_v26 = vadd.f32 %v2011_v63, %v2010_v11  ;;  %v1836_v18 = vsel %vm1756_vm7, %v6171_v20, 0.0  ;;  %v1922_v21 = vmul.f32 %v6102_v36, %v6102_v36  ;;  %v8510_v11 = vld [vmem:[#allocation21_spill] sm:$0xff] }
 0x198   : > { %8504 = vst [vmem:[#allocation6_spill] sm:$0xff] %v6186_v19  ;;  %v1835_v16 = vadd.f32 %v1834_v1, %v1833_v55  ;;  %v2013_v56 = vsel %vm1756_vm7, %v8506_v13, 0.0  ;;  %v6198_v45 = vadd.f32 %v1719_v40, %v8507_v58  ;;  %v6201_v49 = vadd.f32 %v6177_v5, %v1609_v9  ;;  %v8511_v58 = vld [vmem:[#allocation34_spill] sm:$0xff] }
 0x199   : > { %v1721_v34 = vmul.f32 0.14285715, %v6174_v37  ;;  %v2014_v35 = vadd.f32 %v2013_v56, %v2012_v26  ;;  %v1714_v63 = vmul.f32 0.85714287, %v8510_v11  ;;  %v1923_v55 = vmul.f32 %v6111_v43, %v6111_v43 }
 0x19a   : > { %8508 = vst [vmem:[#allocation36_spill] sm:$0xff] %v6198_v45  ;;  %v1837_v33 = vadd.f32 %v1836_v18, %v1835_v16  ;;  %v2015_v1 = vsel %vm1756_vm7, %v1921_v3, 0.0  ;;  %v1838_v13 = vsel %vm1756_vm7, %v6180_v39, 0.0  ;;  %v1722_v40 = vmul.f32 0.14285715, %v6186_v19 }
 0x19b   : > { %8509 = vst [vmem:[#allocation23_spill] sm:$0xff] %v6201_v49  ;;  %v6212_v42 = vadd.f32 %v1720_v22, %v8511_v58  ;;  %v2016_v9 = vadd.f32 %v2015_v1, %v2014_v35  ;;  %v1715_v15 = vmul.f32 0.85714287, %v8513_v10  ;;  %v1924_v18 = vmul.f32 %v6120_v8, %v6120_v8 }
 0x19c   : > { %v1839_v26 = vadd.f32 %v1838_v13, %v1837_v33  ;;  %v2017_v16 = vsel %vm1756_vm7, %v1922_v21, 0.0  ;;  %v1840_v3 = vsel %vm1756_vm7, %v6198_v45, 0.0  ;;  %v1723_v56 = vmul.f32 0.14285715, %v6201_v49  ;;  %v8515_v33 = vld [vmem:[#allocation25_spill] sm:$0xff] }
 0x19d   : > { %8512 = vst [vmem:[#allocation21_spill] sm:$0xff] %v6212_v42  ;;  %v6221_v29 = vadd.f32 %v1721_v34, %v1714_v63  ;;  %v2018_v30 = vadd.f32 %v2017_v16, %v2016_v9  ;;  %v1925_v22 = vmul.f32 %v8492_v24, %v8492_v24  ;;  %v2019_v1 = vsel %vm1756_vm7, %v1923_v55, 0.0 }
 0x19e   : > { %v1841_v35 = vadd.f32 %v1840_v3, %v1839_v26  ;;  %v1716_v13 = vmul.f32 0.85714287, %v8515_v33  ;;  %v6227_v58 = vadd.f32 %v1722_v40, %v1715_v15  ;;  %v1842_v21 = vsel %vm1756_vm7, %v6212_v42, 0.0 }
 0x19f   : > { %8514 = vst [vmem:[#allocation34_spill] sm:$0xff] %v6221_v29  ;;  %v2020_v8 = vadd.f32 %v2019_v1, %v2018_v30  ;;  %v1926_v41 = vmul.f32 %v8517_v47, %v8517_v47  ;;  %v2021_v63 = vsel %vm1756_vm7, %v1924_v18, 0.0  ;;  %v1717_v9 = vmul.f32 0.85714287, %v8484_v31 }
 0x1a0   : > { %8516 = vst [vmem:[#allocation24_spill] sm:$0xff] %v6227_v58  ;;  %v1843_v34 = vadd.f32 %v1842_v21, %v1841_v35  ;;  %v6235_v16 = vadd.f32 %v1723_v56, %v1716_v13  ;;  %v1844_v55 = vsel %vm1756_vm7, %v6221_v29, 0.0  ;;  %v1732_v15 = vmul.f32 0.42857143, %v8471_v4 }
 0x1a1   : > { %v2022_v26 = vadd.f32 %v2021_v63, %v2020_v8  ;;  %v1927_v40 = vmul.f32 %v8494_v23, %v8494_v23  ;;  %v2023_v3 = vsel %vm1756_vm7, %v1925_v22, 0.0  ;;  %v1740_v35 = vmul.f32 0.5714286, %v6138_v59 }
 0x1a2   : > { %v1845_v30 = vadd.f32 %v1844_v55, %v1843_v34  ;;  %v6244_v1 = vadd.f32 %v1717_v9, %v1601_v53  ;;  %v1846_v18 = vsel %vm1756_vm7, %v6227_v58, 0.0  ;;  %v1733_v13 = vmul.f32 0.42857143, %v8474_v61 }
 0x1a3   : > { %v2024_v56 = vadd.f32 %v2023_v3, %v2022_v26  ;;  %v1928_v8 = vmul.f32 %v8495_v50, %v8495_v50  ;;  %v2025_v4 = vsel %vm1756_vm7, %v1926_v41, 0.0  ;;  %v1741_v34 = vmul.f32 0.5714286, %v6144_v14 }
 0x1a4   : > { %v1847_v21 = vadd.f32 %v1846_v18, %v1845_v30  ;;  %v6254_v22 = vadd.f32 %v1732_v15, %v5727_v54  ;;  %v1848_v53 = vsel %vm1756_vm7, %v6235_v16, 0.0  ;;  %v1734_v9 = vmul.f32 0.42857143, %v8475_v17  ;;  %v8518_v30 = vld [vmem:[#allocation20_spill] sm:$0xff] }
 0x1a5   : > { %v2026_v63 = vadd.f32 %v2025_v4, %v2024_v56  ;;  %v2027_v55 = vsel %vm1756_vm7, %v1927_v40, 0.0  ;;  %v1929_v26 = vmul.f32 %v8505_v38, %v8505_v38  ;;  %v6262_v3 = vadd.f32 %v1740_v35, %v1733_v13 }
 0x1a6   : > { %v1849_v61 = vadd.f32 %v1848_v53, %v1847_v21  ;;  %v1742_v41 = vmul.f32 0.5714286, %v6166_v60  ;;  %v1850_v54 = vsel %vm1756_vm7, %v6244_v1, 0.0  ;;  %v1735_v18 = vmul.f32 0.42857143, %v8518_v30 }
 0x1a7   : > { %v2028_v15 = vadd.f32 %v2027_v55, %v2026_v63  ;;  %v2029_v56 = vsel %vm1756_vm7, %v1928_v8, 0.0  ;;  %v1930_v17 = vmul.f32 %v6171_v20, %v6171_v20  ;;  %v6271_v4 = vadd.f32 %v1741_v34, %v1734_v9 }
 0x1a8   : > { %v1851_v40 = vadd.f32 %v1850_v54, %v1849_v61  ;;  %v1852_v35 = vsel %vm1756_vm7, %v6254_v22, 0.0  ;;  %v1743_v13 = vmul.f32 0.5714286, %v6174_v37  ;;  %v1736_v53 = vmul.f32 0.42857143, %v8510_v11 }
 0x1a9   : > { %v2030_v21 = vadd.f32 %v2029_v56, %v2028_v15  ;;  %v1931_v63 = vmul.f32 %v6180_v39, %v6180_v39  ;;  %v2031_v8 = vsel %vm1756_vm7, %v1929_v26, 0.0  ;;  %v1854_v30 = vsel %vm1756_vm7, %v6262_v3, 0.0 }
 0x1aa   : > { %v1853_v55 = vadd.f32 %v1852_v35, %v1851_v40  ;;  %v1744_v34 = vmul.f32 0.5714286, %v6186_v19  ;;  %v6283_v9 = vadd.f32 %v1742_v41, %v1735_v18  ;;  %v1737_v54 = vmul.f32 0.42857143, %v8513_v10 }
 0x1ab   : > { %v2032_v61 = vadd.f32 %v2031_v8, %v2030_v21  ;;  %v1932_v15 = vmul.f32 %v6198_v45, %v6198_v45  ;;  %v2033_v11 = vsel %vm1756_vm7, %v1930_v17, 0.0  ;;  %v1856_v40 = vsel %vm1756_vm7, %v6271_v4, 0.0 }
 0x1ac   : > { %v1855_v56 = vadd.f32 %v1854_v30, %v1853_v55  ;;  %v1745_v26 = vmul.f32 0.5714286, %v6201_v49  ;;  %v6292_v35 = vadd.f32 %v1743_v13, %v1736_v53  ;;  %v2035_v41 = vsel %vm1756_vm7, %v1931_v63, 0.0 }
 0x1ad   : > { %v2034_v39 = vadd.f32 %v2033_v11, %v2032_v61  ;;  %v1933_v18 = vmul.f32 %v6212_v42, %v6212_v42  ;;  %v1738_v21 = vmul.f32 0.42857143, %v8515_v33  ;;  %v6298_v8 = vadd.f32 %v1744_v34, %v1737_v54 }
 0x1ae   : > { %v1857_v10 = vadd.f32 %v1856_v40, %v1855_v56  ;;  %v1858_v17 = vsel %vm1756_vm7, %v6283_v9, 0.0  ;;  %v2037_v30 = vsel %vm1756_vm7, %v1932_v15, 0.0  ;;  %v1934_v13 = vmul.f32 %v6221_v29, %v6221_v29 }
 0x1af   : > { %v2036_v55 = vadd.f32 %v2035_v41, %v2034_v39  ;;  %v1739_v63 = vmul.f32 0.42857143, %v8484_v31  ;;  %v6306_v61 = vadd.f32 %v1745_v26, %v1738_v21  ;;  %v1860_v11 = vsel %vm1756_vm7, %v6292_v35, 0.0 }
 0x1b0   : > { %v1859_v53 = vadd.f32 %v1858_v17, %v1857_v10  ;;  %v1935_v34 = vmul.f32 %v6227_v58, %v6227_v58  ;;  %v2039_v54 = vsel %vm1756_vm7, %v1933_v18, 0.0  ;;  %v1862_v56 = vsel %vm1756_vm7, %v6298_v8, 0.0 }
 0x1b1   : > { %8519 = vst [vmem:[#allocation25_spill] sm:$0xff] %v6306_v61  ;;  %v2038_v33 = vadd.f32 %v2037_v30, %v2036_v55  ;;  %v6314_v15 = vadd.f32 %v1739_v63, %v6177_v5  ;;  %v1936_v31 = vmul.f32 %v6235_v16, %v6235_v16  ;;  %v2041_v26 = vsel %vm1756_vm7, %v1934_v13, 0.0 }
 0x1b2   : > { %v1861_v39 = vadd.f32 %v1860_v11, %v1859_v53  ;;  %v1864_v10 = vsel %vm1756_vm7, %v6306_v61, 0.0  ;;  %v1937_v18 = vmul.f32 %v6244_v1, %v6244_v1  ;;  %v2043_v5 = vsel %vm1756_vm7, %v1935_v34, 0.0 }
 0x1b3   : > { %8520 = vst [vmem:[#allocation20_spill] sm:$0xff] %v6314_v15  ;;  %v2040_v40 = vadd.f32 %v2039_v54, %v2038_v33  ;;  %v1866_v55 = vsel %vm1756_vm7, %v6314_v15, 0.0  ;;  %v1938_v53 = vmul.f32 %v6254_v22, %v6254_v22  ;;  %v2045_v13 = vsel %vm1756_vm7, %v1936_v31, 0.0 }
 0x1b4   : > { %v1863_v41 = vadd.f32 %v1862_v56, %v1861_v39  ;;  %v1868_v11 = vsel %vm1756_vm7, %v5700_v62, 0.0  ;;  %v1939_v54 = vmul.f32 %v6262_v3, %v6262_v3  ;;  %v2047_v34 = vsel %vm1756_vm7, %v1937_v18, 0.0 }
 0x1b5   : > { %v2042_v21 = vadd.f32 %v2041_v26, %v2040_v40  ;;  %v1870_v56 = vsel %vm1756_vm7, %v6138_v59, 0.0  ;;  %v1940_v26 = vmul.f32 %v6271_v4, %v6271_v4  ;;  %v2049_v31 = vsel %vm1756_vm7, %v1938_v53, 0.0 }
 0x1b6   : > { %v1865_v17 = vadd.f32 %v1864_v10, %v1863_v41  ;;  %v1872_v10 = vsel %vm1756_vm7, %v6144_v14, 0.0  ;;  %v1941_v18 = vmul.f32 %v6283_v9, %v6283_v9  ;;  %v1942_v53 = vmul.f32 %v6292_v35, %v6292_v35 }
 0x1b7   : > { %v2044_v30 = vadd.f32 %v2043_v5, %v2042_v21  ;;  %v2051_v5 = vsel %vm1756_vm7, %v1939_v54, 0.0  ;;  %v1943_v54 = vmul.f32 %v6298_v8, %v6298_v8  ;;  %vm4199_vm0 = vcmask 1042434  }
 0x1b8   : > { %v1867_v63 = vadd.f32 %v1866_v55, %v1865_v17  ;;  %v1874_v55 = vsel %vm1756_vm7, %v6166_v60, 0.0  ;;  %vm4201_vm1 = vcmask 1043459   ;;  %vm4203_vm2 = vcmask 1044484  }
 0x1b9   : > { %v2046_v33 = vadd.f32 %v2045_v13, %v2044_v30  ;;  %v2053_v13 = vsel %vm1756_vm7, %v1940_v26, 0.0  ;;  %v1944_v26 = vmul.f32 %v6306_v61, %v6306_v61  ;;  %vm4205_vm3 = vcmask 1045509  }
 0x1ba   : > { %v1869_v39 = vadd.f32 %v1868_v11, %v1867_v63  ;;  %v1876_v11 = vsel %vm1756_vm7, %v6174_v37, 0.0  ;;  %vm4207_vm4 = vcmask 1046534   ;;  %vm4209_vm5 = vcmask 1047559  }
 0x1bb   : > { %v2048_v40 = vadd.f32 %v2047_v34, %v2046_v33  ;;  %v2055_v34 = vsel %vm1756_vm7, %v1941_v18, 0.0  ;;  %v2059_v18 = vsel %vm1756_vm7, %v1943_v54, 0.0  ;;  %v1948_v54 = vmul.f32 %v6144_v14, %v6144_v14 }
 0x1bc   : > { %v1871_v41 = vadd.f32 %v1870_v56, %v1869_v39  ;;  %v1878_v56 = vsel %vm1756_vm7, %v6186_v19, 0.0 }
 0x1bd   : > { %v2050_v21 = vadd.f32 %v2049_v31, %v2048_v40  ;;  %v2057_v31 = vsel %vm1756_vm7, %v1942_v53, 0.0  ;;  %v2061_v53 = vsel %vm1756_vm7, %v1944_v26, 0.0  ;;  %v1949_v26 = vmul.f32 %v6166_v60, %v6166_v60 }
 0x1be   : > { %v1873_v17 = vadd.f32 %v1872_v10, %v1871_v41  ;;  %v1880_v10 = vsel %vm1756_vm7, %v6201_v49, 0.0 }
 0x1bf   : > { %v2052_v30 = vadd.f32 %v2051_v5, %v2050_v21  ;;  %v1945_v5 = vmul.f32 %v6314_v15, %v6314_v15 }
 0x1c0   : > { %v1875_v63 = vadd.f32 %v1874_v55, %v1873_v17  ;;  %v1882_v55 = vsel %vm1756_vm7, %v6153_v51, 0.0 }
 0x1c1   : > { %v2054_v33 = vadd.f32 %v2053_v13, %v2052_v30  ;;  %v1946_v13 = vmul.f32 %v5700_v62, %v5700_v62 }
 0x1c2   : > { %v1877_v39 = vadd.f32 %v1876_v11, %v1875_v63 }
 0x1c3   : > { %v2056_v40 = vadd.f32 %v2055_v34, %v2054_v33  ;;  %v1947_v33 = vmul.f32 %v6138_v59, %v6138_v59  ;;  %v2063_v34 = vsel %vm1756_vm7, %v1945_v5, 0.0  ;;  %v1950_v5 = vmul.f32 %v6174_v37, %v6174_v37 }
 0x1c4   : > { %v1879_v41 = vadd.f32 %v1878_v56, %v1877_v39 }
 0x1c5   : > { %v2058_v21 = vadd.f32 %v2057_v31, %v2056_v40  ;;  %v2065_v40 = vsel %vm1756_vm7, %v1946_v13, 0.0 }
 0x1c6   : > { %v1881_v17 = vadd.f32 %v1880_v10, %v1879_v41  ;;  %v2067_v41 = vsel %vm1756_vm7, %v1947_v33, 0.0  ;;  %v2073_v33 = vsel %vm1756_vm7, %v1950_v5, 0.0 }
 0x1c7   : > { %v2060_v30 = vadd.f32 %v2059_v18, %v2058_v21  ;;  %v2069_v18 = vsel %vm1756_vm7, %v1948_v54, 0.0 }
 0x1c8   : > { %v1883_v63 = vadd.f32 %v1882_v55, %v1881_v17  ;;  %v1951_v55 = vmul.f32 %v6186_v19, %v6186_v19 }
 0x1c9   : > { %v2062_v11 = vadd.f32 %v2061_v53, %v2060_v30  ;;  %v2071_v30 = vsel %vm1756_vm7, %v1949_v26, 0.0 }
 0x1ca   : > { %v1884_v39 = vrot.slane %v1883_v63, 4 }
 0x1cb   : > { %v2064_v56 = vadd.f32 %v2063_v34, %v2062_v11  ;;  %v1952_v11 = vmul.f32 %v6201_v49, %v6201_v49  ;;  %v1953_v34 = vmul.f32 %v6153_v51, %v6153_v51 }
 0x1cc   : > { %v1885_v10 = vadd.f32 %v1884_v39, %v1883_v63  ;;  %v2075_v39 = vsel %vm1756_vm7, %v1951_v55, 0.0 }
 0x1cd   : > { %v2066_v31 = vadd.f32 %v2065_v40, %v2064_v56  ;;  %v2077_v40 = vsel %vm1756_vm7, %v1952_v11, 0.0 }
 0x1ce   : > { %v1886_v13 = vrot.slane %v1885_v10, 2 }
 0x1cf   : > { %v2068_v21 = vadd.f32 %v2067_v41, %v2066_v31  ;;  %v2079_v41 = vsel %vm1756_vm7, %v1953_v34, 0.0  ;;  %v6400_v34 = vpop.permute.xlu2 %2891 }
 0x1d0   : > { %v1887_v56 = vadd.f32 %v1886_v13, %v1885_v10 }
 0x1d1   : > { %v2070_v17 = vadd.f32 %v2069_v18, %v2068_v21 }
 0x1d2   : > { %v1888_v26 = vrot.slane %v1887_v56, 1 }
 0x1d3   : > { %v2072_v53 = vadd.f32 %v2071_v30, %v2070_v17 }
 0x1d4   : > { %v1889_v17 = vadd.f32 %v1888_v26, %v1887_v56  ;;  %v6402_v56 = vpop.permute.xlu1 %2877 }
 0x1d5   : > { %v2074_v63 = vadd.f32 %v2073_v33, %v2072_v53 }
 0x1d6   : > { %v6394_v53 = vmul.f32 0.001953125, %v1889_v17 }
 0x1d7   : > { %v2076_v54 = vadd.f32 %v2075_v39, %v2074_v63  ;;  %v6398_v39 = vpop.permute.xlu0 %2887 }
 0x1d8   : > { %v2089_v10 = vmul.f32 %v6394_v53, %v6394_v53  ;;  %v2103_v26 = vsub.f32 %v5887_v28, %v6394_v53  ;;  %v2138_v17 = vsub.f32 %v6235_v16, %v6394_v53  ;;  %v8522_v28 = vld [vmem:[#allocation9_spill] sm:$0xff]  ;;  %v6471_v16 = vld [vmem:[%s8275_s4] ss:$0 sm:$0xff] }
 0x1d9   : > { %v2078_v31 = vadd.f32 %v2077_v40, %v2076_v54 }
 0x1db   : > { %v2080_v21 = vadd.f32 %v2079_v41, %v2078_v31  ;;  %v2093_v31 = vsub.f32 %v5758_v48, %v6394_v53  ;;  %v2139_v48 = vsub.f32 %v6244_v1, %v6394_v53 }
 0x1dd   : > { %v2081_v18 = vrot.slane %v2080_v21, 4 }
 0x1df   : > { %v2082_v30 = vadd.f32 %v2081_v18, %v2080_v21  ;;  %v2120_v21 = vsub.f32 %v8486_v32, %v6394_v53  ;;  %v2121_v18 = vsub.f32 %v8487_v46, %v6394_v53  ;;  %v8523_v46 = vld [vmem:[#allocation13_spill] sm:$0xff]  ;;  %v8524_v32 = vld [vmem:[#allocation8_spill] sm:$0xff] }
 0x1e1   : > { %v2083_v49 = vrot.slane %v2082_v30, 2 }
 0x1e3   : > { %v2084_v5 = vadd.f32 %v2083_v49, %v2082_v30  ;;  %v8521_v49 = vld [vmem:[#allocation7_spill] sm:$0xff]  ;;  %v6418_v30 = vpop.permute.xlu0 %2889 }
 0x1e4   : > { %v2092_v40 = vsub.f32 %v8521_v49, %v6394_v53  ;;  %v6440_v49 = vpop.permute.xlu2 %2879 }
 0x1e5   : > { %v2085_v33 = vrot.slane %v2084_v5, 1 }
 0x1e7   : > { %v2086_v51 = vadd.f32 %v2085_v33, %v2084_v5  ;;  %v8525_v33 = vld [vmem:[#allocation15_spill] sm:$0xff] }
 0x1e9   : > { %v2088_v55 = vmul.f32 0.001953125, %v2086_v51  ;;  %v2102_v51 = vsub.f32 %v5885_v2, %v6394_v53 }
 0x1eb   : > { %v2090_v13 = vsub.f32 %v2088_v55, %v2089_v10  ;;  %v6498_v19 = vpop.permute.xlu0 %2907 }
 0x1ec   : > { %v6512_v62 = vpop.permute.xlu2 %2881 }
 0x1ed   : > { %v2091_v11 = vmax.f32 %v2090_v13, 0.0  ;;  %v8526_v13 = vld [vmem:[#allocation14_spill] sm:$0xff] }
 0x1ef   : > { %v2156_v63 = vadd.f32 1e-05, %v2091_v11  ;;  %v8527_v11 = vld [vmem:[#allocation17_spill] sm:$0xff] }
 0x1f1   : > { %4742 = vrsqrt.f32 %v2156_v63  ;;  %vm2163_vm9 = vweird.f32 %v2156_v63 }
 0x1f7   : > { %v4743_v54 = vpop.eup %4742 }
 0x1f8   : > { %v2158_v41 = vmul.f32 %v4743_v54, %v2156_v63  ;;  %vm2164_vm8 = vweird.f32 %v4743_v54  ;;  %v6494_v63 = vld [vmem:[%s8276_s5] ss:$0 sm:$0xff] }
 0x1f9   : > { %vm2165_vm10 = vmor %vm2163_vm9, %vm2164_vm8 }
 0x1fa   : > { %v2159_v5 = vmul.f32 %v4743_v54, %v2158_v41 }
 0x1fc   : > { %v2160_v55 = vmul.f32 0.5, %v2159_v5 }
 0x1fe   : > { %v2161_v10 = vsub.f32 1.5, %v2160_v55  ;;  %v6462_v55 = vpop.permute.xlu1 %2905 }
 0x200   : > { %v2162_v2 = vmul.f32 %v4743_v54, %v2161_v10  ;;  %v8528_v10 = vld [vmem:[#allocation12_spill] sm:$0xff] }
 0x202   : > { %v6481_v41 = vsel %vm2165_vm10, %v4743_v54, %v2162_v2 }
 0x203   : > { %v2167_v60 = vmul.f32 %v6481_v41, %v2092_v40  ;;  %v2168_v1 = vmul.f32 %v6481_v41, %v2093_v31  ;;  %v2177_v54 = vmul.f32 %v6481_v41, %v2102_v51  ;;  %v2178_v2 = vmul.f32 %v6481_v41, %v2103_v26 }
 0x204   : > { %v2195_v42 = vmul.f32 %v6481_v41, %v2120_v21  ;;  %v2196_v58 = vmul.f32 %v6481_v41, %v2121_v18  ;;  %v2213_v5 = vmul.f32 %v6481_v41, %v2138_v17  ;;  %v2214_v40 = vmul.f32 %v6481_v41, %v2139_v48 }
 0x205   : > { %v2234_v31 = vmul.f32 %v6471_v16, %v2167_v60  ;;  %v2235_v14 = vmul.f32 %v6471_v16, %v2168_v1  ;;  %v2244_v20 = vmul.f32 %v6471_v16, %v2177_v54  ;;  %v2245_v51 = vmul.f32 %v6471_v16, %v2178_v2 }
 0x206   : > { %v2262_v26 = vmul.f32 %v6471_v16, %v2195_v42  ;;  %v2263_v59 = vmul.f32 %v6471_v16, %v2196_v58  ;;  %v2280_v21 = vmul.f32 %v6471_v16, %v2213_v5  ;;  %v2281_v18 = vmul.f32 %v6471_v16, %v2214_v40  ;;  %v6522_v15 = vpop.permute.xlu1 %2893 }
 0x207   : > { %v2301_v17 = vadd.f32 %v6494_v63, %v2234_v31  ;;  %v2302_v60 = vadd.f32 %v6494_v63, %v2235_v14  ;;  %v2311_v48 = vadd.f32 %v6494_v63, %v2244_v20  ;;  %v2312_v1 = vadd.f32 %v6494_v63, %v2245_v51  ;;  %8532 = vst [vmem:[#allocation7_spill] sm:$0xff] %v6522_v15 }
 0x208   : > { %v2329_v54 = vadd.f32 %v6494_v63, %v2262_v26  ;;  %v2330_v42 = vadd.f32 %v6494_v63, %v2263_v59  ;;  %v2347_v58 = vadd.f32 %v6494_v63, %v2280_v21  ;;  %v2348_v5 = vadd.f32 %v6494_v63, %v2281_v18 }
 0x209   : > { %v2365_v2 = vmax.f32 %v2301_v17, 0.0  ;;  %v2366_v40 = vmax.f32 %v2302_v60, 0.0  ;;  %v2375_v38 = vmax.f32 %v2311_v48, 0.0  ;;  %v2376_v50 = vmax.f32 %v2312_v1, 0.0  ;;  %v6524_v48 = vpop.permute.xlu0 %2909 }
 0x20a   : > { %v2393_v31 = vmax.f32 %v2329_v54, 0.0  ;;  %v2394_v14 = vmax.f32 %v2330_v42, 0.0  ;;  %v2411_v61 = vmax.f32 %v2347_v58, 0.0  ;;  %v2412_v20 = vmax.f32 %v2348_v5, 0.0 }
 0x20b   : > { %v2493_v45 = vpack.c.bf16 %v2365_v2, %v2365_v2  ;;  %v2494_v51 = vpack.c.bf16 %v2366_v40, %v2366_v40  ;;  %v2503_v37 = vpack.c.bf16 %v2375_v38, %v2375_v38  ;;  %v2504_v26 = vpack.c.bf16 %v2376_v50, %v2376_v50 }
 0x20c   : > { %v2521_v23 = vpack.c.bf16 %v2393_v31, %v2393_v31  ;;  %v2522_v59 = vpack.c.bf16 %v2394_v14, %v2394_v14  ;;  %v2539_v29 = vpack.c.bf16 %v2411_v61, %v2411_v61  ;;  %v2540_v21 = vpack.c.bf16 %v2412_v20, %v2412_v20 }
 0x20d   : > { %v2621_v47 = vunpack.c.l.b16 %v2493_v45  ;;  %v2622_v18 = vunpack.c.l.b16 %v2494_v51  ;;  %v2631_v17 = vunpack.c.l.b16 %v2503_v37  ;;  %v2632_v60 = vunpack.c.l.b16 %v2504_v26 }
 0x20e   : > { %v2649_v1 = vunpack.c.l.b16 %v2521_v23  ;;  %v2650_v15 = vunpack.c.l.b16 %v2522_v59  ;;  %v2667_v54 = vunpack.c.l.b16 %v2539_v29  ;;  %v2668_v42 = vunpack.c.l.b16 %v2540_v21  ;;  %v6555_v26 = vpop.permute.xlu1 %2895 }
 0x20f   : > { %v2685_v58 = vpack.c.b16 %v2622_v18, %v2621_v47  ;;  %v2690_v5 = vpack.c.b16 %v2632_v60, %v2631_v17  ;;  %v8533_v38 = vsub.f32 %v5778_v7, %v6394_v53  ;;  %v8534_v61 = vsub.f32 %v8522_v28, %v6394_v53  ;;  %v2924_v7 = vpop.permute.xlu2 %2923 }
 0x210   : > { %v2699_v37 = vpack.c.b16 %v2650_v15, %v2649_v1  ;;  %v2708_v2 = vpack.c.b16 %v2668_v42, %v2667_v54  ;;  %v8535_v23 = vsub.f32 %v5909_v0, %v6394_v53  ;;  %v8536_v47 = vsub.f32 %v5920_v57, %v6394_v53 }
 0x211   : > { %v2169_v50 = vmul.f32 %v6481_v41, %v8533_v38  ;;  %v2170_v45 = vmul.f32 %v6481_v41, %v8534_v61  ;;  %v2943_v31 = vsel %vm1756_vm7, %v2685_v58, %v6402_v56  ;;  %v2963_v28 = vsel %vm1756_vm7, %v2690_v5, %v6398_v39 }
 0x212   : > { %v2179_v29 = vmul.f32 %v6481_v41, %v8535_v23  ;;  %v2180_v40 = vmul.f32 %v6481_v41, %v8536_v47  ;;  %3145 = vmatmul.bf16.vlgmr.msrb.gmra.mxu0 %v2943_v31  ;;  %3170 = vmatmul.bf16.vlgmr.msra.gmra.mxu1 %v2963_v28  ;;  %v2999_v0 = vsel %vm1756_vm7, %v2699_v37, %v6462_v55  ;;  %v6579_v23 = vpop.permute.xlu0 %2883 }
 0x213   : > { %v2236_v15 = vmul.f32 %v6471_v16, %v2169_v50  ;;  %v2237_v14 = vmul.f32 %v6471_v16, %v2170_v45  ;;  %v3035_v57 = vsel %vm1756_vm7, %v2708_v2, %v2924_v7  ;;  %3215 = vmatmul.bf16.vlgmr.msra.gmra.mxu2 %v2999_v0  ;;  %v8537_v21 = vsub.f32 %v8488_v52, %v6394_v53 }
 0x214   : > { %v2246_v20 = vmul.f32 %v6471_v16, %v2179_v29  ;;  %3260 = vmatmul.bf16.vlgmr.msra.gmra.mxu3 %v3035_v57  ;;  %v2247_v39 = vmul.f32 %v6471_v16, %v2180_v40  ;;  %v8538_v18 = vsub.f32 %v6092_v12, %v6394_v53  ;;  %v8539_v60 = vsub.f32 %v6254_v22, %v6394_v53 }
 0x215   : > { %v2303_v56 = vadd.f32 %v6494_v63, %v2236_v15  ;;  %v2304_v51 = vadd.f32 %v6494_v63, %v2237_v14  ;;  %v2197_v55 = vmul.f32 %v6481_v41, %v8537_v21  ;;  %v8540_v5 = vsub.f32 %v6262_v3, %v6394_v53 }
 0x216   : > { %v2313_v59 = vadd.f32 %v6494_v63, %v2246_v20  ;;  %v2198_v17 = vmul.f32 %v6481_v41, %v8538_v18  ;;  %v2215_v1 = vmul.f32 %v6481_v41, %v8539_v60  ;;  %v2314_v58 = vadd.f32 %v6494_v63, %v2247_v39 }
 0x217   : > { %v2367_v54 = vmax.f32 %v2303_v56, 0.0  ;;  %v2368_v42 = vmax.f32 %v2304_v51, 0.0  ;;  %v2216_v52 = vmul.f32 %v6481_v41, %v8540_v5  ;;  %v2264_v50 = vmul.f32 %v6471_v16, %v2197_v55 }
 0x218   : > { %v2377_v38 = vmax.f32 %v2313_v59, 0.0  ;;  %v2265_v12 = vmul.f32 %v6471_v16, %v2198_v17  ;;  %v2282_v61 = vmul.f32 %v6471_v16, %v2215_v1  ;;  %v2378_v37 = vmax.f32 %v2314_v58, 0.0 }
 0x219   : > { %v2495_v45 = vpack.c.bf16 %v2367_v54, %v2367_v54  ;;  %v2496_v22 = vpack.c.bf16 %v2368_v42, %v2368_v42  ;;  %v2283_v2 = vmul.f32 %v6471_v16, %v2216_v52  ;;  %v2331_v47 = vadd.f32 %v6494_v63, %v2264_v50  ;;  %v6596_v52 = vpop.permute.xlu1 %2911 }
 0x21a   : > { %v2505_v29 = vpack.c.bf16 %v2377_v38, %v2377_v38  ;;  %v2332_v3 = vadd.f32 %v6494_v63, %v2265_v12  ;;  %v2349_v40 = vadd.f32 %v6494_v63, %v2282_v61  ;;  %v2506_v28 = vpack.c.bf16 %v2378_v37, %v2378_v37 }
 0x21b   : > { %v2623_v7 = vunpack.c.l.b16 %v2495_v45  ;;  %v2624_v31 = vunpack.c.l.b16 %v2496_v22  ;;  %v2350_v15 = vadd.f32 %v6494_v63, %v2283_v2  ;;  %v2395_v0 = vmax.f32 %v2331_v47, 0.0 }
 0x21c   : > { %v2633_v14 = vunpack.c.l.b16 %v2505_v29  ;;  %v2396_v57 = vmax.f32 %v2332_v3, 0.0  ;;  %v2413_v20 = vmax.f32 %v2349_v40, 0.0  ;;  %v2634_v51 = vunpack.c.l.b16 %v2506_v28 }
 0x21d   : > { %v2686_v56 = vpack.c.b16 %v2624_v31, %v2623_v7  ;;  %v2414_v39 = vmax.f32 %v2350_v15, 0.0  ;;  %v8541_v59 = vsub.f32 %v5802_v27, %v6394_v53  ;;  %v2523_v55 = vpack.c.bf16 %v2395_v0, %v2395_v0  ;;  %v2926_v15 = vpop.permute.xlu0 %2925 }
 0x21e   : > { %v2524_v18 = vpack.c.bf16 %v2396_v57, %v2396_v57  ;;  %v2541_v17 = vpack.c.bf16 %v2413_v20, %v2413_v20  ;;  %v8542_v60 = vsub.f32 %v5822_v25, %v6394_v53  ;;  %v2691_v42 = vpack.c.b16 %v2634_v51, %v2633_v14 }
 0x21f   : > { %v2171_v21 = vmul.f32 %v6481_v41, %v8541_v59  ;;  %v2947_v54 = vsel %vm1756_vm7, %v2686_v56, %v6440_v49  ;;  %v2542_v58 = vpack.c.bf16 %v2414_v39, %v2414_v39  ;;  %v2651_v27 = vunpack.c.l.b16 %v2523_v55 }
 0x220   : > { %v2172_v1 = vmul.f32 %v6481_v41, %v8542_v60  ;;  %v2652_v38 = vunpack.c.l.b16 %v2524_v18  ;;  %v2669_v50 = vunpack.c.l.b16 %v2541_v17  ;;  %v2967_v61 = vsel %vm1756_vm7, %v2691_v42, %v6418_v30 }
 0x221   : > { %v2238_v5 = vmul.f32 %v6471_v16, %v2171_v21  ;;  %v2670_v25 = vunpack.c.l.b16 %v2542_v58  ;;  %v8543_v49 = vsub.f32 %v5926_v44, %v6394_v53  ;;  %v8544_v29 = vsub.f32 %v5936_v6, %v6394_v53 }
 0x222   : > { %v2239_v12 = vmul.f32 %v6471_v16, %v2172_v1  ;;  %v2700_v37 = vpack.c.b16 %v2652_v38, %v2651_v27  ;;  %v8545_v3 = vsub.f32 %v6102_v36, %v6394_v53  ;;  %v8546_v44 = vsub.f32 %v6111_v43, %v6394_v53  ;;  %3150 = vmatmul.bf16.gmra.mxu0 %v2947_v54 }
 0x223   : > { %v2305_v45 = vadd.f32 %v6494_v63, %v2238_v5  ;;  %v2181_v22 = vmul.f32 %v6481_v41, %v8543_v49  ;;  %v2182_v47 = vmul.f32 %v6481_v41, %v8544_v29  ;;  %v2709_v40 = vpack.c.b16 %v2670_v25, %v2669_v50  ;;  %3175 = vmatmul.bf16.gmra.mxu1 %v2967_v61  ;;  %v6644_v61 = vpop.permute.xlu1 %2885 }
 0x224   : > { %v2306_v2 = vadd.f32 %v6494_v63, %v2239_v12  ;;  %v2199_v30 = vmul.f32 %v6481_v41, %v8545_v3  ;;  %v2200_v28 = vmul.f32 %v6481_v41, %v8546_v44  ;;  %v3003_v6 = vsel %vm1756_vm7, %v2700_v37, %v6498_v19 }
 0x225   : > { %v2369_v7 = vmax.f32 %v2305_v45, 0.0  ;;  %v2248_v31 = vmul.f32 %v6471_v16, %v2181_v22  ;;  %v2249_v36 = vmul.f32 %v6471_v16, %v2182_v47  ;;  %3220 = vmatmul.bf16.gmra.mxu2 %v3003_v6  ;;  %v3039_v57 = vsel %vm1756_vm7, %v2709_v40, %v2926_v15 }
 0x226   : > { %v2370_v14 = vmax.f32 %v2306_v2, 0.0  ;;  %v2266_v0 = vmul.f32 %v6471_v16, %v2199_v30  ;;  %v2267_v43 = vmul.f32 %v6471_v16, %v2200_v28  ;;  %3265 = vmatmul.bf16.gmra.mxu3 %v3039_v57  ;;  %v8547_v19 = vsub.f32 %v6271_v4, %v6394_v53 }
 0x227   : > { %v2497_v20 = vpack.c.bf16 %v2369_v7, %v2369_v7  ;;  %v2315_v56 = vadd.f32 %v6494_v63, %v2248_v31  ;;  %v2316_v39 = vadd.f32 %v6494_v63, %v2249_v36  ;;  %v8548_v60 = vsub.f32 %v6283_v9, %v6394_v53 }
 0x228   : > { %v2498_v51 = vpack.c.bf16 %v2370_v14, %v2370_v14  ;;  %v2333_v59 = vadd.f32 %v6494_v63, %v2266_v0  ;;  %v2217_v21 = vmul.f32 %v6481_v41, %v8547_v19  ;;  %v2334_v17 = vadd.f32 %v6494_v63, %v2267_v43 }
 0x229   : > { %v2625_v55 = vunpack.c.l.b16 %v2497_v20  ;;  %v2379_v18 = vmax.f32 %v2315_v56, 0.0  ;;  %v2218_v1 = vmul.f32 %v6481_v41, %v8548_v60  ;;  %v2380_v42 = vmax.f32 %v2316_v39, 0.0 }
 0x22a   : > { %v2626_v54 = vunpack.c.l.b16 %v2498_v51  ;;  %v2397_v58 = vmax.f32 %v2333_v59, 0.0  ;;  %v2284_v5 = vmul.f32 %v6471_v16, %v2217_v21  ;;  %v2398_v38 = vmax.f32 %v2334_v17, 0.0 }
 0x22b   : > { %v2507_v27 = vpack.c.bf16 %v2379_v18, %v2379_v18  ;;  %v2285_v4 = vmul.f32 %v6471_v16, %v2218_v1  ;;  %v8549_v50 = vsub.f32 %v8523_v46, %v6394_v53  ;;  %v2508_v9 = vpack.c.bf16 %v2380_v42, %v2380_v42 }
 0x22c   : > { %v2687_v25 = vpack.c.b16 %v2626_v54, %v2625_v55  ;;  %v2525_v45 = vpack.c.bf16 %v2397_v58, %v2397_v58  ;;  %v2351_v49 = vadd.f32 %v6494_v63, %v2284_v5  ;;  %v2526_v37 = vpack.c.bf16 %v2398_v38, %v2398_v38 }
 0x22d   : > { %v2173_v12 = vmul.f32 %v6481_v41, %v8549_v50  ;;  %v2635_v22 = vunpack.c.l.b16 %v2507_v27  ;;  %v2352_v2 = vadd.f32 %v6494_v63, %v2285_v4  ;;  %v8550_v29 = vsub.f32 %v8524_v32, %v6394_v53  ;;  %v2928_v27 = vpop.permute.xlu1 %2927 }
 0x22e   : > { %v2951_v46 = vsel %vm1756_vm7, %v2687_v25, %v6512_v62  ;;  %v2636_v3 = vunpack.c.l.b16 %v2508_v9  ;;  %v2653_v30 = vunpack.c.l.b16 %v2525_v45  ;;  %v2415_v40 = vmax.f32 %v2351_v49, 0.0 }
 0x22f   : > { %v2174_v47 = vmul.f32 %v6481_v41, %v8550_v29  ;;  %v2654_v7 = vunpack.c.l.b16 %v2526_v37  ;;  %v2416_v31 = vmax.f32 %v2352_v2, 0.0  ;;  %v2240_v44 = vmul.f32 %v6471_v16, %v2173_v12 }
 0x230   : > { %v2692_v15 = vpack.c.b16 %v2636_v3, %v2635_v22  ;;  %v2543_v6 = vpack.c.bf16 %v2415_v40, %v2415_v40  ;;  %v8551_v14 = vsub.f32 %v8525_v33, %v6394_v53  ;;  %v8552_v36 = vsub.f32 %v8526_v13, %v6394_v53 }
 0x231   : > { %v2241_v28 = vmul.f32 %v6471_v16, %v2174_v47  ;;  %v2701_v0 = vpack.c.b16 %v2654_v7, %v2653_v30  ;;  %v2544_v57 = vpack.c.bf16 %v2416_v31, %v2416_v31  ;;  %v2307_v20 = vadd.f32 %v6494_v63, %v2240_v44 }
 0x232   : > { %v2183_v32 = vmul.f32 %v6481_v41, %v8551_v14  ;;  %v2184_v62 = vmul.f32 %v6481_v41, %v8552_v36  ;;  %v2971_v43 = vsel %vm1756_vm7, %v2692_v15, %v6400_v34  ;;  %v2671_v51 = vunpack.c.l.b16 %v2543_v6  ;;  %3155 = vmatmul.bf16.gmra.mxu0 %v2951_v46  ;;  %v8559_v15 = vld [vmem:[#allocation37_spill] sm:$0xff] }
 0x233   : > { %v2308_v56 = vadd.f32 %v6494_v63, %v2241_v28  ;;  %v3007_v59 = vsel %vm1756_vm7, %v2701_v0, %v6524_v48  ;;  %v2672_v13 = vunpack.c.l.b16 %v2544_v57  ;;  %v2371_v19 = vmax.f32 %v2307_v20, 0.0  ;;  %3180 = vmatmul.bf16.gmra.mxu1 %v2971_v43 }
 0x234   : > { %v2250_v39 = vmul.f32 %v6471_v16, %v2183_v32  ;;  %v2251_v33 = vmul.f32 %v6471_v16, %v2184_v62  ;;  %v8553_v17 = vsub.f32 %v8527_v11, %v6394_v53  ;;  %v8554_v60 = vsub.f32 %v8492_v24, %v6394_v53 }
 0x235   : > { %v2372_v21 = vmax.f32 %v2308_v56, 0.0  ;;  %v2710_v54 = vpack.c.b16 %v2672_v13, %v2671_v51  ;;  %v2499_v42 = vpack.c.bf16 %v2371_v19, %v2371_v19  ;;  %v8555_v58 = vsub.f32 %v6292_v35, %v6394_v53  ;;  %3225 = vmatmul.bf16.gmra.mxu2 %v3007_v59  ;;  %v8562_v51 = vld [vmem:[#allocation38_spill] sm:$0xff] }
 0x236   : > { %v2317_v55 = vadd.f32 %v6494_v63, %v2250_v39  ;;  %v2318_v18 = vadd.f32 %v6494_v63, %v2251_v33  ;;  %v2201_v34 = vmul.f32 %v6481_v41, %v8553_v17  ;;  %v2202_v1 = vmul.f32 %v6481_v41, %v8554_v60 }
 0x237   : > { %v2500_v48 = vpack.c.bf16 %v2372_v21, %v2372_v21  ;;  %v2219_v5 = vmul.f32 %v6481_v41, %v8555_v58  ;;  %v3043_v24 = vsel %vm1756_vm7, %v2710_v54, %v2928_v27  ;;  %v2627_v12 = vunpack.c.l.b16 %v2499_v42 }
 0x238   : > { %v2381_v38 = vmax.f32 %v2317_v55, 0.0  ;;  %v2382_v11 = vmax.f32 %v2318_v18, 0.0  ;;  %v2268_v4 = vmul.f32 %v6471_v16, %v2201_v34  ;;  %v2269_v50 = vmul.f32 %v6471_v16, %v2202_v1  ;;  %3270 = vmatmul.bf16.gmra.mxu3 %v3043_v24  ;;  %v8564_v34 = vld [vmem:[#allocation39_spill] sm:$0xff] }
 0x239   : > { %v2628_v25 = vunpack.c.l.b16 %v2500_v48  ;;  %v8556_v9 = vsub.f32 %v6298_v8, %v6394_v53  ;;  %v2286_v2 = vmul.f32 %v6471_v16, %v2219_v5  ;;  %v8557_v47 = vsub.f32 %v8528_v10, %v6394_v53  ;;  %v8558_v8 = vld [vmem:[#allocation31_spill] sm:$0xff]  ;;  %v8561_v10 = vld [vmem:[#allocation32_spill] sm:$0xff] }
 0x23a   : > { %v2509_v45 = vpack.c.bf16 %v2381_v38, %v2381_v38  ;;  %v2510_v49 = vpack.c.bf16 %v2382_v11, %v2382_v11  ;;  %v2335_v22 = vadd.f32 %v6494_v63, %v2268_v4  ;;  %v2336_v37 = vadd.f32 %v6494_v63, %v2269_v50  ;;  %v6726_v4 = vpop.permute.xlu2 %2897 }
 0x23b   : > { %v2220_v35 = vmul.f32 %v6481_v41, %v8556_v9  ;;  %v2175_v46 = vmul.f32 %v6481_v41, %v8557_v47  ;;  %v2128_v3 = vsub.f32 %v8558_v8, %v6394_v53  ;;  %v2353_v44 = vadd.f32 %v6494_v63, %v2286_v2  ;;  %v8567_v8 = vld [vmem:[#allocation25_spill] sm:$0xff] }
 0x23c   : > { %v2637_v30 = vunpack.c.l.b16 %v2509_v45  ;;  %v2638_v40 = vunpack.c.l.b16 %v2510_v49  ;;  %v2399_v7 = vmax.f32 %v2335_v22, 0.0  ;;  %v2400_v31 = vmax.f32 %v2336_v37, 0.0 }
 0x23d   : > { %v2287_v29 = vmul.f32 %v6471_v16, %v2220_v35  ;;  %v8560_v6 = vsub.f32 %v8559_v15, %v6394_v53  ;;  %v2129_v32 = vsub.f32 %v8561_v10, %v6394_v53  ;;  %v2688_v36 = vpack.c.b16 %v2628_v25, %v2627_v12  ;;  %v8566_v25 = vld [vmem:[#allocation7_spill] sm:$0xff] }
 0x23e   : > { %v2527_v62 = vpack.c.bf16 %v2399_v7, %v2399_v7  ;;  %v2528_v0 = vpack.c.bf16 %v2400_v31, %v2400_v31  ;;  %v2242_v57 = vmul.f32 %v6471_v16, %v2175_v46  ;;  %v2417_v20 = vmax.f32 %v2353_v44, 0.0  ;;  %v8568_v31 = vld [vmem:[#allocation20_spill] sm:$0xff] }
 0x23f   : > { %v2354_v28 = vadd.f32 %v6494_v63, %v2287_v29  ;;  %v2176_v14 = vmul.f32 %v6481_v41, %v8560_v6  ;;  %v8563_v39 = vsub.f32 %v8562_v51, %v6394_v53  ;;  %v2693_v59 = vpack.c.b16 %v2638_v40, %v2637_v30  ;;  %v2930_v30 = vpop.permute.xlu1 %2929 }
 0x240   : > { %v2655_v13 = vunpack.c.l.b16 %v2527_v62  ;;  %v2656_v19 = vunpack.c.l.b16 %v2528_v0  ;;  %v2309_v21 = vadd.f32 %v6494_v63, %v2242_v57  ;;  %v2545_v55 = vpack.c.bf16 %v2417_v20, %v2417_v20  ;;  %v8569_v62 = vld [vmem:[#allocation40_spill] sm:$0xff] }
 0x241   : > { %v2418_v56 = vmax.f32 %v2354_v28, 0.0  ;;  %v2243_v43 = vmul.f32 %v6471_v16, %v2176_v14  ;;  %v2185_v33 = vmul.f32 %v6481_v41, %v8563_v39  ;;  %v8565_v60 = vsub.f32 %v8564_v34, %v6394_v53  ;;  %v6747_v14 = vpop.permute.xlu0 %2899 }
 0x242   : > { %v2702_v54 = vpack.c.b16 %v2656_v19, %v2655_v13  ;;  %v2373_v42 = vmax.f32 %v2309_v21, 0.0  ;;  %v2203_v58 = vmul.f32 %v6481_v41, %v2128_v3  ;;  %v2673_v5 = vunpack.c.l.b16 %v2545_v55  ;;  %v2914_v34 = vpop.permute.xlu2 %2913 }
 0x243   : > { %v2546_v18 = vpack.c.bf16 %v2418_v56, %v2418_v56  ;;  %v2310_v17 = vadd.f32 %v6494_v63, %v2243_v43  ;;  %v2186_v1 = vmul.f32 %v6481_v41, %v8565_v60  ;;  %v2252_v48 = vmul.f32 %v6471_v16, %v2185_v33  ;;  %v8570_v33 = vld [vmem:[#allocation41_spill] sm:$0xff] }
 0x244   : > { %v2955_v50 = vsel %vm1756_vm7, %v2688_v36, %v6579_v23  ;;  %v2204_v12 = vmul.f32 %v6481_v41, %v2129_v32  ;;  %v2975_v9 = vsel %vm1756_vm7, %v2693_v59, %v8566_v25  ;;  %v2270_v49 = vmul.f32 %v6471_v16, %v2203_v58  ;;  %v8572_v58 = vld [vmem:[#allocation11_spill] sm:$0xff] }
 0x245   : > { %v2674_v27 = vunpack.c.l.b16 %v2546_v18  ;;  %v2374_v38 = vmax.f32 %v2310_v17, 0.0  ;;  %v2253_v11 = vmul.f32 %v6471_v16, %v2186_v1  ;;  %v2319_v24 = vadd.f32 %v6494_v63, %v2252_v48  ;;  %3160 = vmatmul.bf16.gmra.mxu0 %v2955_v50  ;;  %3185 = vmatmul.bf16.gmra.mxu1 %v2975_v9  ;;  %v8571_v18 = vld [vmem:[#allocation33_spill] sm:$0xff] }
 0x246   : > { %v3011_v22 = vsel %vm1756_vm7, %v2702_v54, %v6596_v52  ;;  %v2501_v37 = vpack.c.bf16 %v2373_v42, %v2373_v42  ;;  %v2271_v29 = vmul.f32 %v6471_v16, %v2204_v12  ;;  %v2337_v46 = vadd.f32 %v6494_v63, %v2270_v49 }
 0x247   : > { %v2711_v35 = vpack.c.b16 %v2674_v27, %v2673_v5  ;;  %v2320_v45 = vadd.f32 %v6494_v63, %v2253_v11  ;;  %v2383_v2 = vmax.f32 %v2319_v24, 0.0  ;;  %v2502_v23 = vpack.c.bf16 %v2374_v38, %v2374_v38  ;;  %3230 = vmatmul.bf16.gmra.mxu2 %v3011_v22 }
 0x248   : > { %v2146_v3 = vsub.f32 %v8567_v8, %v6394_v53  ;;  %v2338_v7 = vadd.f32 %v6494_v63, %v2271_v29  ;;  %v2147_v52 = vsub.f32 %v8568_v31, %v6394_v53  ;;  %v2401_v15 = vmax.f32 %v2337_v46, 0.0  ;;  %v8574_v46 = vld [vmem:[#allocation27_spill] sm:$0xff] }
 0x249   : > { %v2384_v47 = vmax.f32 %v2320_v45, 0.0  ;;  %v2511_v40 = vpack.c.bf16 %v2383_v2, %v2383_v2  ;;  %v3047_v44 = vsel %vm1756_vm7, %v2711_v35, %v2930_v30  ;;  %v2629_v10 = vunpack.c.l.b16 %v2501_v37  ;;  %v8573_v37 = vld [vmem:[#allocation5_spill] sm:$0xff] }
 0x24a   : > { %v2221_v6 = vmul.f32 %v6481_v41, %v2146_v3  ;;  %3275 = vmatmul.bf16.gmra.mxu3 %v3047_v44  ;;  %v2402_v32 = vmax.f32 %v2338_v7, 0.0  ;;  %v2222_v36 = vmul.f32 %v6481_v41, %v2147_v52  ;;  %v2112_v0 = vsub.f32 %v8569_v62, %v6394_v53  ;;  %v6777_v3 = vpop.permute.xlu0 %2901 }
 0x24b   : > { %v2512_v28 = vpack.c.bf16 %v2384_v47, %v2384_v47  ;;  %v2630_v57 = vunpack.c.l.b16 %v2502_v23  ;;  %v2639_v20 = vunpack.c.l.b16 %v2511_v40  ;;  %v2529_v56 = vpack.c.bf16 %v2401_v15, %v2401_v15 }
 0x24c   : > { %v2288_v43 = vmul.f32 %v6471_v16, %v2221_v6  ;;  %v2530_v51 = vpack.c.bf16 %v2402_v32, %v2402_v32  ;;  %v2289_v39 = vmul.f32 %v6471_v16, %v2222_v36  ;;  %v2113_v59 = vsub.f32 %v8570_v33, %v6394_v53 }
 0x24d   : > { %v2187_v13 = vmul.f32 %v6481_v41, %v2112_v0  ;;  %v2640_v19 = vunpack.c.l.b16 %v2512_v28  ;;  %v2657_v21 = vunpack.c.l.b16 %v2529_v56  ;;  %v2130_v17 = vsub.f32 %v8571_v18, %v6394_v53  ;;  %v8577_v18 = vld [vmem:[#allocation35_spill] sm:$0xff] }
 0x24e   : > { %v2355_v55 = vadd.f32 %v6494_v63, %v2288_v43  ;;  %v2658_v60 = vunpack.c.l.b16 %v2530_v51  ;;  %v2356_v1 = vadd.f32 %v6494_v63, %v2289_v39  ;;  %v2188_v54 = vmul.f32 %v6481_v41, %v2113_v59  ;;  %v8576_v59 = vld [vmem:[#allocation16_spill] sm:$0xff] }
 0x24f   : > { %v2254_v42 = vmul.f32 %v6471_v16, %v2187_v13  ;;  %v2131_v5 = vsub.f32 %v8572_v58, %v6394_v53  ;;  %v2205_v27 = vmul.f32 %v6481_v41, %v2130_v17  ;;  %v2689_v38 = vpack.c.b16 %v2630_v57, %v2629_v10  ;;  %v2916_v57 = vpop.permute.xlu2 %2915 }
 0x250   : > { %v2419_v48 = vmax.f32 %v2355_v55, 0.0  ;;  %v2420_v11 = vmax.f32 %v2356_v1, 0.0  ;;  %v2255_v50 = vmul.f32 %v6471_v16, %v2188_v54  ;;  %v2694_v12 = vpack.c.b16 %v2640_v19, %v2639_v20  ;;  %v2932_v20 = vpop.permute.xlu1 %2931  ;;  %v8578_v54 = vld [vmem:[#allocation22_spill] sm:$0xff] }
 0x251   : > { %v2321_v24 = vadd.f32 %v6494_v63, %v2254_v42  ;;  %v2206_v9 = vmul.f32 %v6481_v41, %v2131_v5  ;;  %v2272_v35 = vmul.f32 %v6471_v16, %v2205_v27  ;;  %v2703_v45 = vpack.c.b16 %v2658_v60, %v2657_v21 }
 0x252   : > { %v2547_v25 = vpack.c.bf16 %v2419_v48, %v2419_v48  ;;  %v2548_v49 = vpack.c.bf16 %v2420_v11, %v2420_v11  ;;  %v2322_v22 = vadd.f32 %v6494_v63, %v2255_v50  ;;  %v2148_v2 = vsub.f32 %v8573_v37, %v6394_v53  ;;  %v8580_v37 = vld [vmem:[#allocation30_spill] sm:$0xff] }
 0x253   : > { %v2273_v23 = vmul.f32 %v6471_v16, %v2206_v9  ;;  %v2339_v47 = vadd.f32 %v6494_v63, %v2272_v35  ;;  %v2149_v8 = vsub.f32 %v8574_v46, %v6394_v53  ;;  %v2385_v40 = vmax.f32 %v2321_v24, 0.0  ;;  %v8579_v24 = vld [vmem:[#allocation28_spill] sm:$0xff] }
 0x254   : > { %v2675_v29 = vunpack.c.l.b16 %v2547_v25  ;;  %v2676_v30 = vunpack.c.l.b16 %v2548_v49  ;;  %v2223_v7 = vmul.f32 %v6481_v41, %v2148_v2  ;;  %v2386_v31 = vmax.f32 %v2322_v22, 0.0 }
 0x255   : > { %v2340_v52 = vadd.f32 %v6494_v63, %v2273_v23  ;;  %v2224_v44 = vmul.f32 %v6481_v41, %v2149_v8  ;;  %v2959_v28 = vsel %vm1756_vm7, %v2689_v38, %v6644_v61  ;;  %v2403_v6 = vmax.f32 %v2339_v47, 0.0  ;;  %v8575_v61 = vld [vmem:[#allocation42_spill] sm:$0xff]  ;;  %v6804_v38 = vpop.permute.xlu0 %2903 }
 0x256   : > { %v2712_v15 = vpack.c.b16 %v2676_v30, %v2675_v29  ;;  %v2290_v10 = vmul.f32 %v6471_v16, %v2223_v7  ;;  %v2979_v32 = vsel %vm1756_vm7, %v2694_v12, %v6555_v26  ;;  %v3015_v36 = vsel %vm1756_vm7, %v2703_v45, %v2914_v34  ;;  %3165 = vmatmul.bf16.gmra.mxu0 %v2959_v28 }
 0x257   : > { %v2404_v62 = vmax.f32 %v2340_v52, 0.0  ;;  %v2291_v0 = vmul.f32 %v6471_v16, %v2224_v44  ;;  %3190 = vmatmul.bf16.gmra.mxu1 %v2979_v32  ;;  %v2513_v56 = vpack.c.bf16 %v2385_v40, %v2385_v40  ;;  %v2114_v51 = vsub.f32 %v8575_v61, %v6394_v53  ;;  %3235 = vmatmul.bf16.gmra.mxu2 %v3015_v36  ;;  %v6815_v46 = vpop.permute.xlu2 %2917 }
 0x258   : > { %v2357_v43 = vadd.f32 %v6494_v63, %v2290_v10  ;;  %v3051_v39 = vsel %vm1756_vm7, %v2712_v15, %v2932_v20  ;;  %v2514_v33 = vpack.c.bf16 %v2386_v31, %v2386_v31  ;;  %v2115_v13 = vsub.f32 %v8576_v59, %v6394_v53 }
 0x259   : > { %v2358_v26 = vadd.f32 %v6494_v63, %v2291_v0  ;;  %v2531_v19 = vpack.c.bf16 %v2403_v6, %v2403_v6  ;;  %v2189_v55 = vmul.f32 %v6481_v41, %v2114_v51  ;;  %v2132_v17 = vsub.f32 %v8577_v18, %v6394_v53  ;;  %v8581_v51 = vld [vmem:[#allocation10_spill] sm:$0xff]  ;;  %v8584_v18 = vld [vmem:[#allocation21_spill] sm:$0xff] }
 0x25a   : > { %3280 = vmatmul.bf16.gmra.mxu3 %v3051_v39  ;;  %v2421_v21 = vmax.f32 %v2357_v43, 0.0  ;;  %v2532_v34 = vpack.c.bf16 %v2404_v62, %v2404_v62  ;;  %v2190_v1 = vmul.f32 %v6481_v41, %v2115_v13  ;;  %v2133_v42 = vsub.f32 %v8578_v54, %v6394_v53 }
 0x25b   : > { %v2422_v60 = vmax.f32 %v2358_v26, 0.0  ;;  %v2207_v48 = vmul.f32 %v6481_v41, %v2132_v17  ;;  %v2641_v11 = vunpack.c.l.b16 %v2513_v56  ;;  %v2642_v50 = vunpack.c.l.b16 %v2514_v33  ;;  %v8582_v33 = vld [vmem:[#allocation18_spill] sm:$0xff] }
 0x25c   : > { %v2549_v58 = vpack.c.bf16 %v2421_v21, %v2421_v21  ;;  %v2208_v27 = vmul.f32 %v6481_v41, %v2133_v42  ;;  %v2150_v12 = vsub.f32 %v8579_v24, %v6394_v53  ;;  %v2659_v25 = vunpack.c.l.b16 %v2531_v19  ;;  %v8583_v21 = vld [vmem:[#allocation36_spill] sm:$0xff]  ;;  %v8586_v42 = vld [vmem:[#allocation6_spill] sm:$0xff] }
 0x25d   : > { %v2550_v5 = vpack.c.bf16 %v2422_v60, %v2422_v60  ;;  %v2660_v9 = vunpack.c.l.b16 %v2532_v34  ;;  %v2256_v35 = vmul.f32 %v6471_v16, %v2189_v55  ;;  %v2257_v45 = vmul.f32 %v6471_v16, %v2190_v1  ;;  %v2934_v56 = vpop.permute.xlu0 %2933  ;;  %v8585_v1 = vld [vmem:[#allocation19_spill] sm:$0xff] }
 0x25e   : > { %v2274_v49 = vmul.f32 %v6471_v16, %v2207_v48  ;;  %v2275_v22 = vmul.f32 %v6471_v16, %v2208_v27  ;;  %v2151_v2 = vsub.f32 %v8580_v37, %v6394_v53  ;;  %v2225_v29 = vmul.f32 %v6481_v41, %v2150_v12 }
 0x25f   : > { %v2677_v23 = vunpack.c.l.b16 %v2549_v58  ;;  %v2678_v47 = vunpack.c.l.b16 %v2550_v5  ;;  %v2695_v40 = vpack.c.b16 %v2642_v50, %v2641_v11  ;;  %v2704_v7 = vpack.c.b16 %v2660_v9, %v2659_v25  ;;  %v6844_v58 = vpop.permute.xlu2 %2919 }
 0x260   : > { %v2226_v8 = vmul.f32 %v6481_v41, %v2151_v2  ;;  %v2292_v30 = vmul.f32 %v6471_v16, %v2225_v29  ;;  %v2323_v31 = vadd.f32 %v6494_v63, %v2256_v35  ;;  %v2324_v52 = vadd.f32 %v6494_v63, %v2257_v45 }
 0x261   : > { %v2341_v44 = vadd.f32 %v6494_v63, %v2274_v49  ;;  %v2342_v28 = vadd.f32 %v6494_v63, %v2275_v22  ;;  %v2713_v6 = vpack.c.b16 %v2678_v47, %v2677_v23  ;;  %v2983_v36 = vsel %vm1756_vm7, %v2695_v40, %v6726_v4 }
 0x262   : > { %v2293_v15 = vmul.f32 %v6471_v16, %v2226_v8  ;;  %v2359_v10 = vadd.f32 %v6494_v63, %v2292_v30  ;;  %v3019_v62 = vsel %vm1756_vm7, %v2704_v7, %v2916_v57  ;;  %v2387_v0 = vmax.f32 %v2323_v31, 0.0 }
 0x263   : > { %v2388_v20 = vmax.f32 %v2324_v52, 0.0  ;;  %v2405_v43 = vmax.f32 %v2341_v44, 0.0  ;;  %v2406_v61 = vmax.f32 %v2342_v28, 0.0  ;;  %v2116_v39 = vsub.f32 %v8581_v51, %v6394_v53  ;;  %v8587_v51 = vld [vmem:[#allocation43_spill] sm:$0xff] }
 0x264   : > { %v2360_v32 = vadd.f32 %v6494_v63, %v2293_v15  ;;  %v2117_v26 = vsub.f32 %v8582_v33, %v6394_v53  ;;  %v3055_v59 = vsel %vm1756_vm7, %v2713_v6, %v2934_v56  ;;  %v2423_v13 = vmax.f32 %v2359_v10, 0.0 }
 0x265   : > { %v2191_v4 = vmul.f32 %v6481_v41, %v2116_v39  ;;  %v2134_v55 = vsub.f32 %v8583_v21, %v6394_v53  ;;  %v2135_v17 = vsub.f32 %v8584_v18, %v6394_v53  ;;  %v2515_v34 = vpack.c.bf16 %v2387_v0, %v2387_v0 }
 0x266   : > { %v2424_v19 = vmax.f32 %v2360_v32, 0.0  ;;  %v2192_v57 = vmul.f32 %v6481_v41, %v2117_v26  ;;  %v2516_v60 = vpack.c.bf16 %v2388_v20, %v2388_v20  ;;  %v2152_v54 = vsub.f32 %v8585_v1, %v6394_v53  ;;  %v8592_v1 = vld [vmem:[#allocation29_spill] sm:$0xff] }
 0x267   : > { %3195 = vmatmul.bf16.gmra.mxu1 %v2983_v36  ;;  %3240 = vmatmul.bf16.gmra.mxu2 %v3019_v62  ;;  %v2153_v48 = vsub.f32 %v8586_v42, %v6394_v53  ;;  %v2533_v5 = vpack.c.bf16 %v2405_v43, %v2405_v43  ;;  %v2534_v27 = vpack.c.bf16 %v2406_v61, %v2406_v61  ;;  %v2643_v49 = vunpack.c.l.b16 %v2515_v34  ;;  %v2936_v36 = vpop.permute.xlu2 %2935  ;;  %v8591_v34 = vld [vmem:[#allocation23_spill] sm:$0xff] }
 0x268   : > { %v2209_v11 = vmul.f32 %v6481_v41, %v2134_v55  ;;  %v2210_v50 = vmul.f32 %v6481_v41, %v2135_v17  ;;  %v2551_v24 = vpack.c.bf16 %v2423_v13, %v2423_v13  ;;  %v2552_v12 = vpack.c.bf16 %v2424_v19, %v2424_v19  ;;  %v8588_v13 = vld [vmem:[#allocation26_spill] sm:$0xff] }
 0x269   : > { %v2227_v25 = vmul.f32 %v6481_v41, %v2152_v54  ;;  %v2228_v9 = vmul.f32 %v6481_v41, %v2153_v48  ;;  %v2258_v35 = vmul.f32 %v6471_v16, %v2191_v4  ;;  %v2259_v45 = vmul.f32 %v6471_v16, %v2192_v57  ;;  %v8589_v57 = vld [vmem:[#allocation34_spill] sm:$0xff] }
 0x26a   : > { %3285 = vmatmul.bf16.gmra.mxu3 %v3055_v59  ;;  %v2644_v22 = vunpack.c.l.b16 %v2516_v60  ;;  %v2661_v37 = vunpack.c.l.b16 %v2533_v5  ;;  %v2662_v2 = vunpack.c.l.b16 %v2534_v27  ;;  %v2276_v29 = vmul.f32 %v6471_v16, %v2209_v11 }
 0x26b   : > { %v2277_v23 = vmul.f32 %v6471_v16, %v2210_v50  ;;  %v2679_v47 = vunpack.c.l.b16 %v2551_v24  ;;  %v2680_v8 = vunpack.c.l.b16 %v2552_v12  ;;  %v2294_v30 = vmul.f32 %v6471_v16, %v2227_v25 }
 0x26c   : > { %v2295_v40 = vmul.f32 %v6471_v16, %v2228_v9  ;;  %v2325_v7 = vadd.f32 %v6494_v63, %v2258_v35  ;;  %v2326_v31 = vadd.f32 %v6494_v63, %v2259_v45  ;;  %v2696_v52 = vpack.c.b16 %v2644_v22, %v2643_v49 }
 0x26d   : > { %v2705_v44 = vpack.c.b16 %v2662_v2, %v2661_v37  ;;  %v2343_v28 = vadd.f32 %v6494_v63, %v2276_v29  ;;  %v2344_v15 = vadd.f32 %v6494_v63, %v2277_v23  ;;  %v2714_v6 = vpack.c.b16 %v2680_v8, %v2679_v47 }
 0x26e   : > { %v2361_v10 = vadd.f32 %v6494_v63, %v2294_v30  ;;  %v2362_v32 = vadd.f32 %v6494_v63, %v2295_v40  ;;  %v2389_v62 = vmax.f32 %v2325_v7, 0.0  ;;  %v2390_v0 = vmax.f32 %v2326_v31, 0.0 }
 0x26f   : > { %v2987_v20 = vsel %vm1756_vm7, %v2696_v52, %v6747_v14  ;;  %v3023_v56 = vsel %vm1756_vm7, %v2705_v44, %v6815_v46  ;;  %v2407_v43 = vmax.f32 %v2343_v28, 0.0  ;;  %v2408_v61 = vmax.f32 %v2344_v15, 0.0  ;;  %v8590_v46 = vld [vmem:[#allocation24_spill] sm:$0xff]  ;;  %v2938_v15 = vpop.permute.xlu0 %2937 }
 0x270   : > { %v2118_v39 = vsub.f32 %v8587_v51, %v6394_v53  ;;  %v3059_v33 = vsel %vm1756_vm7, %v2714_v6, %v2936_v36  ;;  %v2425_v26 = vmax.f32 %v2361_v10, 0.0  ;;  %v2426_v59 = vmax.f32 %v2362_v32, 0.0 }
 0x271   : > { %v2119_v19 = vsub.f32 %v8588_v13, %v6394_v53  ;;  %v2517_v4 = vpack.c.bf16 %v2389_v62, %v2389_v62  ;;  %v2518_v14 = vpack.c.bf16 %v2390_v0, %v2390_v0  ;;  %v2136_v21 = vsub.f32 %v8589_v57, %v6394_v53 }
 0x272   : > { %v2137_v55 = vsub.f32 %v8590_v46, %v6394_v53  ;;  %v2193_v18 = vmul.f32 %v6481_v41, %v2118_v39  ;;  %v2154_v60 = vsub.f32 %v8591_v34, %v6394_v53  ;;  %v2155_v54 = vsub.f32 %v8592_v1, %v6394_v53 }
 0x273   : > { %v2194_v17 = vmul.f32 %v6481_v41, %v2119_v19  ;;  %v2535_v42 = vpack.c.bf16 %v2407_v43, %v2407_v43  ;;  %v2536_v48 = vpack.c.bf16 %v2408_v61, %v2408_v61  ;;  %v2211_v5 = vmul.f32 %v6481_v41, %v2136_v21  ;;  %v2922_v61 = vpop.permute.xlu1 %2921 }
 0x274   : > { %v2212_v27 = vmul.f32 %v6481_v41, %v2137_v55  ;;  %v2553_v11 = vpack.c.bf16 %v2425_v26, %v2425_v26  ;;  %v2554_v50 = vpack.c.bf16 %v2426_v59, %v2426_v59  ;;  %v2229_v24 = vmul.f32 %v6481_v41, %v2154_v60 }
 0x275   : > { %v2230_v12 = vmul.f32 %v6481_v41, %v2155_v54  ;;  %v2645_v25 = vunpack.c.l.b16 %v2517_v4  ;;  %v2646_v9 = vunpack.c.l.b16 %v2518_v14  ;;  %v2260_v35 = vmul.f32 %v6471_v16, %v2193_v18 }
 0x276   : > { %v2261_v45 = vmul.f32 %v6471_v16, %v2194_v17  ;;  %v2663_v49 = vunpack.c.l.b16 %v2535_v42  ;;  %v2664_v53 = vunpack.c.l.b16 %v2536_v48  ;;  %v2278_v22 = vmul.f32 %v6471_v16, %v2211_v5 }
 0x277   : > { %3200 = vmatmul.bf16.gmra.mxu1 %v2987_v20  ;;  %3245 = vmatmul.bf16.gmra.mxu2 %v3023_v56  ;;  %v2279_v37 = vmul.f32 %v6471_v16, %v2212_v27  ;;  %v2681_v2 = vunpack.c.l.b16 %v2553_v11  ;;  %v2682_v29 = vunpack.c.l.b16 %v2554_v50  ;;  %v2296_v23 = vmul.f32 %v6471_v16, %v2229_v24 }
 0x278   : > { %v2297_v47 = vmul.f32 %v6471_v16, %v2230_v12  ;;  %v2697_v8 = vpack.c.b16 %v2646_v9, %v2645_v25  ;;  %v2327_v41 = vadd.f32 %v6494_v63, %v2260_v35  ;;  %v2328_v30 = vadd.f32 %v6494_v63, %v2261_v45 }
 0x279   : > { %v2706_v40 = vpack.c.b16 %v2664_v53, %v2663_v49  ;;  %v2345_v7 = vadd.f32 %v6494_v63, %v2278_v22  ;;  %v2346_v31 = vadd.f32 %v6494_v63, %v2279_v37  ;;  %v2715_v52 = vpack.c.b16 %v2682_v29, %v2681_v2  ;;  %v6939_v29 = vld [vmem:[%s8278_s7] ss:$0 sm:$0xff] }
 0x27a   : > { %3290 = vmatmul.bf16.gmra.mxu3 %v3059_v33  ;;  %v2363_v44 = vadd.f32 %v6494_v63, %v2296_v23  ;;  %v2364_v28 = vadd.f32 %v6494_v63, %v2297_v47  ;;  %v2991_v6 = vsel %vm1756_vm7, %v2697_v8, %v6777_v3  ;;  %v2391_v16 = vmax.f32 %v2327_v41, 0.0 }
 0x27b   : > { %v2392_v10 = vmax.f32 %v2328_v30, 0.0  ;;  %v3027_v32 = vsel %vm1756_vm7, %v2706_v40, %v6844_v58  ;;  %v2409_v36 = vmax.f32 %v2345_v7, 0.0  ;;  %v2410_v62 = vmax.f32 %v2346_v31, 0.0  ;;  %v2940_v18 = vpop.permute.xlu1 %2939 }
 0x27c   : > { %v3063_v0 = vsel %vm1756_vm7, %v2715_v52, %v2938_v15  ;;  %v2427_v20 = vmax.f32 %v2363_v44, 0.0  ;;  %v2428_v56 = vmax.f32 %v2364_v28, 0.0  ;;  %v2519_v43 = vpack.c.bf16 %v2391_v16, %v2391_v16 }
 0x27d   : > { %v2520_v63 = vpack.c.bf16 %v2392_v10, %v2392_v10  ;;  %v2537_v51 = vpack.c.bf16 %v2409_v36, %v2409_v36  ;;  %v2538_v39 = vpack.c.bf16 %v2410_v62, %v2410_v62 }
 0x27e   : > { %v2555_v3 = vpack.c.bf16 %v2427_v20, %v2427_v20  ;;  %v2556_v33 = vpack.c.bf16 %v2428_v56, %v2428_v56  ;;  %v2647_v26 = vunpack.c.l.b16 %v2519_v43 }
 0x27f   : > { %v2648_v59 = vunpack.c.l.b16 %v2520_v63  ;;  %v2665_v13 = vunpack.c.l.b16 %v2537_v51  ;;  %v2666_v19 = vunpack.c.l.b16 %v2538_v39 }
 0x280   : > { %v2683_v58 = vunpack.c.l.b16 %v2555_v3  ;;  %v2684_v4 = vunpack.c.l.b16 %v2556_v33 }
 0x281   : > { %v2698_v14 = vpack.c.b16 %v2648_v59, %v2647_v26  ;;  %v2707_v57 = vpack.c.b16 %v2666_v19, %v2665_v13 }
 0x282   : > { %v2716_v55 = vpack.c.b16 %v2684_v4, %v2683_v58 }
 0x283   : > { %v2995_v17 = vsel %vm1756_vm7, %v2698_v14, %v6804_v38  ;;  %v3031_v34 = vsel %vm1756_vm7, %v2707_v57, %v2922_v61 }
 0x284   : > { %v3067_v60 = vsel %vm1756_vm7, %v2716_v55, %v2940_v18 }
 0x287   : > { %3205 = vmatmul.bf16.gmra.mxu1 %v2991_v6  ;;  %3250 = vmatmul.bf16.gmra.mxu2 %v3027_v32 }
 0x28a   : > { %3295 = vmatmul.bf16.gmra.mxu3 %v3063_v0 }
 0x28f   : > { %v3146_v21 = vpop.f32.mrf.mxu0  ;;  %v6902_v46 = vpop.f32.mrf.mxu1 }
 0x290   : > { %v6947_v8 = vadd.f32 %v6939_v29, %v3146_v21 }
 0x292   : > { %v3441_v44 = vmul.f32 %v6947_v8, %v6947_v8  ;;  %v3308_v16 = vsel %vm1756_vm7, %v6947_v8, 0.0 }
 0x294   : > { %v3505_v0 = vsel %vm1756_vm7, %v3441_v44, 0.0 }
 0x296   : > { %v6908_v1 = vpop.f32.mrf.mxu2 }
 0x297   : > { %3210 = vmatmul.bf16.gmra.mxu1 %v2995_v17  ;;  %3255 = vmatmul.bf16.gmra.mxu2 %v3031_v34  ;;  %v3148_v54 = vpop.f32.mrf.mxu0  ;;  %v6910_v42 = vpop.f32.mrf.mxu1 }
 0x298   : > { %v6922_v25 = vpop.f32.mrf.mxu3  ;;  %v6944_v47 = vadd.f32 %v6939_v29, %v3148_v54 }
 0x29a   : > { %3300 = vmatmul.bf16.gmra.mxu3 %v3067_v60  ;;  %v3442_v31 = vmul.f32 %v6944_v47, %v6944_v47  ;;  %v3309_v28 = vsel %vm1756_vm7, %v6944_v47, 0.0 }
 0x29b   : > { %v3310_v20 = vadd.f32 %v3309_v28, %v3308_v16 }
 0x29c   : > { %v3506_v10 = vsel %vm1756_vm7, %v3442_v31, 0.0 }
 0x29d   : > { %v3507_v3 = vadd.f32 %v3506_v10, %v3505_v0 }
 0x29e   : > { %v6912_v48 = vpop.f32.mrf.mxu2 }
 0x29f   : > { %v3151_v5 = vpop.f32.mrf.mxu0 }
 0x2a0   : > { %v6914_v27 = vpop.f32.mrf.mxu1  ;;  %v6930_v53 = vpop.f32.mrf.mxu3  ;;  %v6950_v41 = vadd.f32 %v6939_v29, %v3151_v5 }
 0x2a2   : > { %v3443_v15 = vmul.f32 %v6950_v41, %v6950_v41  ;;  %v3311_v32 = vsel %vm1756_vm7, %v6950_v41, 0.0 }
 0x2a3   : > { %v3312_v33 = vadd.f32 %v3311_v32, %v3310_v20 }
 0x2a4   : > { %v3508_v43 = vsel %vm1756_vm7, %v3443_v15, 0.0 }
 0x2a5   : > { %v3509_v4 = vadd.f32 %v3508_v43, %v3507_v3 }
 0x2a7   : > { %v3153_v38 = vpop.f32.mrf.mxu0 }
 0x2a8   : > { %v6916_v11 = vpop.f32.mrf.mxu2  ;;  %v6918_v50 = vpop.f32.mrf.mxu1  ;;  %v6959_v52 = vadd.f32 %v6939_v29, %v3153_v38 }
 0x2a9   : > { %v6941_v23 = vpop.f32.mrf.mxu3 }
 0x2aa   : > { %v3444_v36 = vmul.f32 %v6959_v52, %v6959_v52  ;;  %v3313_v63 = vsel %vm1756_vm7, %v6959_v52, 0.0 }
 0x2ab   : > { %v3314_v14 = vadd.f32 %v3313_v63, %v3312_v33 }
 0x2ac   : > { %v3510_v59 = vsel %vm1756_vm7, %v3444_v36, 0.0 }
 0x2ad   : > { %v3511_v34 = vadd.f32 %v3510_v59, %v3509_v4 }
 0x2af   : > { %v3156_v12 = vpop.f32.mrf.mxu0 }
 0x2b0   : > { %v6920_v24 = vpop.f32.mrf.mxu2  ;;  %v6924_v9 = vpop.f32.mrf.mxu1  ;;  %v6968_v6 = vadd.f32 %v6939_v29, %v3156_v12 }
 0x2b1   : > { %v6981_v56 = vpop.f32.mrf.mxu3 }
 0x2b2   : > { %v3445_v61 = vmul.f32 %v6968_v6, %v6968_v6  ;;  %v3315_v13 = vsel %vm1756_vm7, %v6968_v6, 0.0 }
 0x2b3   : > { %v3316_v60 = vadd.f32 %v3315_v13, %v3314_v14 }
 0x2b4   : > { %v3512_v21 = vsel %vm1756_vm7, %v3445_v61, 0.0  ;;  %v7035_v61 = vadd.f32 %v6939_v29, %v6902_v46  ;;  %v7047_v46 = vadd.f32 %v6939_v29, %v6910_v42 }
 0x2b5   : > { %v3513_v12 = vadd.f32 %v3512_v21, %v3511_v34 }
 0x2b6   : > { %v3451_v21 = vmul.f32 %v7035_v61, %v7035_v61  ;;  %v3327_v34 = vsel %vm1756_vm7, %v7035_v61, 0.0 }
 0x2b7   : > { %v3158_v45 = vpop.f32.mrf.mxu0 }
 0x2b8   : > { %v6926_v35 = vpop.f32.mrf.mxu2  ;;  %v6928_v49 = vpop.f32.mrf.mxu1  ;;  %v6978_v62 = vadd.f32 %v6939_v29, %v3158_v45 }
 0x2ba   : > { %v3446_v19 = vmul.f32 %v6978_v62, %v6978_v62  ;;  %v3317_v55 = vsel %vm1756_vm7, %v6978_v62, 0.0 }
 0x2bb   : > { %v3318_v45 = vadd.f32 %v3317_v55, %v3316_v60  ;;  %v7021_v28 = vpop.f32.mrf.mxu3 }
 0x2bc   : > { %v3514_v54 = vsel %vm1756_vm7, %v3446_v19, 0.0 }
 0x2bd   : > { %v3515_v15 = vadd.f32 %v3514_v54, %v3513_v12  ;;  %v7060_v12 = vadd.f32 %v6939_v29, %v6914_v27 }
 0x2bf   : > { %v3331_v27 = vsel %vm1756_vm7, %v7060_v12, 0.0 }
 0x2c0   : > { %v6932_v22 = vpop.f32.mrf.mxu2 }
 0x2c2   : > { %v3161_v37 = vpop.f32.mrf.mxu0  ;;  %v6934_v2 = vpop.f32.mrf.mxu1 }
 0x2c3   : > { %v6989_v51 = vadd.f32 %v6939_v29, %v3161_v37  ;;  %v7053_v60 = vpop.f32.mrf.mxu3 }
 0x2c5   : > { %v3447_v18 = vmul.f32 %v6989_v51, %v6989_v51  ;;  %v3319_v5 = vsel %vm1756_vm7, %v6989_v51, 0.0 }
 0x2c6   : > { %v3320_v16 = vadd.f32 %v3319_v5, %v3318_v45  ;;  %v3524_v5 = vsel %vm1756_vm7, %v3451_v21, 0.0  ;;  %v3329_v45 = vsel %vm1756_vm7, %v7047_v46, 0.0 }
 0x2c7   : > { %v3516_v37 = vsel %vm1756_vm7, %v3447_v18, 0.0 }
 0x2c8   : > { %v3517_v20 = vadd.f32 %v3516_v37, %v3515_v15  ;;  %v7071_v15 = vadd.f32 %v6939_v29, %v6918_v50 }
 0x2ca   : > { %v3163_v30 = vpop.f32.mrf.mxu0  ;;  %v6952_v40 = vpop.f32.mrf.mxu2  ;;  %v3333_v50 = vsel %vm1756_vm7, %v7071_v15, 0.0 }
 0x2cb   : > { %v6954_v7 = vpop.f32.mrf.mxu1  ;;  %v6999_v58 = vadd.f32 %v6939_v29, %v3163_v30 }
 0x2cd   : > { %v3448_v38 = vmul.f32 %v6999_v58, %v6999_v58  ;;  %v3321_v30 = vsel %vm1756_vm7, %v6999_v58, 0.0 }
 0x2ce   : > { %v3322_v43 = vadd.f32 %v3321_v30, %v3320_v16 }
 0x2cf   : > { %v3518_v36 = vsel %vm1756_vm7, %v3448_v38, 0.0  ;;  %v3452_v38 = vmul.f32 %v7047_v46, %v7047_v46 }
 0x2d0   : > { %v3519_v33 = vadd.f32 %v3518_v36, %v3517_v20 }
 0x2d2   : > { %v7001_v57 = vpop.f32.mrf.mxu2 }
 0x2d3   : > { %v3166_v39 = vpop.f32.mrf.mxu0 }
 0x2d4   : > { %v6991_v26 = vpop.f32.mrf.mxu1  ;;  %v7009_v17 = vadd.f32 %v6939_v29, %v3166_v39 }
 0x2d6   : > { %v3449_v31 = vmul.f32 %v7009_v17, %v7009_v17  ;;  %v3323_v0 = vsel %vm1756_vm7, %v7009_v17, 0.0 }
 0x2d7   : > { %v3324_v59 = vadd.f32 %v3323_v0, %v3322_v43  ;;  %v3454_v43 = vmul.f32 %v7071_v15, %v7071_v15 }
 0x2d8   : > { %v3520_v39 = vsel %vm1756_vm7, %v3449_v31, 0.0  ;;  %v3526_v31 = vsel %vm1756_vm7, %v3452_v38, 0.0  ;;  %v7102_v38 = vadd.f32 %v6939_v29, %v6934_v2 }
 0x2d9   : > { %v3521_v4 = vadd.f32 %v3520_v39, %v3519_v33  ;;  %v7082_v39 = vpop.f32.mrf.mxu3 }
 0x2da   : > { %v7040_v13 = vpop.f32.mrf.mxu2  ;;  %v3339_v2 = vsel %vm1756_vm7, %v7102_v38, 0.0 }
 0x2db   : > { %v3168_v44 = vpop.f32.mrf.mxu0 }
 0x2dc   : > { %v7024_v10 = vadd.f32 %v6939_v29, %v3168_v44  ;;  %v7026_v32 = vpop.f32.mrf.mxu1  ;;  %v3453_v44 = vmul.f32 %v7060_v12, %v7060_v12 }
 0x2de   : > { %v3450_v63 = vmul.f32 %v7024_v10, %v7024_v10  ;;  %v3325_v3 = vsel %vm1756_vm7, %v7024_v10, 0.0  ;;  %v3528_v20 = vsel %vm1756_vm7, %v3453_v44, 0.0  ;;  %v3457_v44 = vmul.f32 %v7102_v38, %v7102_v38 }
 0x2df   : > { %v3326_v14 = vadd.f32 %v3325_v3, %v3324_v59  ;;  %v3530_v59 = vsel %vm1756_vm7, %v3454_v43, 0.0 }
 0x2e0   : > { %v3522_v19 = vsel %vm1756_vm7, %v3450_v63, 0.0  ;;  %v7080_v63 = vadd.f32 %v6939_v29, %v6924_v9 }
 0x2e1   : > { %v3523_v55 = vadd.f32 %v3522_v19, %v3521_v4  ;;  %v3328_v54 = vadd.f32 %v3327_v34, %v3326_v14  ;;  %v7091_v4 = vadd.f32 %v6939_v29, %v6928_v49 }
 0x2e2   : > { %v7064_v30 = vpop.f32.mrf.mxu2  ;;  %v3455_v19 = vmul.f32 %v7080_v63, %v7080_v63 }
 0x2e3   : > { %v3525_v42 = vadd.f32 %v3524_v5, %v3523_v55  ;;  %v3330_v37 = vadd.f32 %v3329_v45, %v3328_v54  ;;  %v3335_v55 = vsel %vm1756_vm7, %v7080_v63, 0.0  ;;  %v3456_v5 = vmul.f32 %v7091_v4, %v7091_v4  ;;  %v7106_v45 = vpop.f32.mrf.mxu3 }
 0x2e4   : > { %v7049_v18 = vpop.f32.mrf.mxu1  ;;  %v3532_v54 = vsel %vm1756_vm7, %v3455_v19, 0.0  ;;  %v3337_v49 = vsel %vm1756_vm7, %v7091_v4, 0.0 }
 0x2e5   : > { %v3527_v16 = vadd.f32 %v3526_v31, %v3525_v42  ;;  %v3332_v0 = vadd.f32 %v3331_v27, %v3330_v37  ;;  %v3534_v31 = vsel %vm1756_vm7, %v3456_v5, 0.0 }
 0x2e7   : > { %v3529_v3 = vadd.f32 %v3528_v20, %v3527_v16  ;;  %v3334_v33 = vadd.f32 %v3333_v50, %v3332_v0  ;;  %v7113_v16 = vadd.f32 %v6939_v29, %v6954_v7 }
 0x2e9   : > { %v3531_v14 = vadd.f32 %v3530_v59, %v3529_v3  ;;  %v3336_v34 = vadd.f32 %v3335_v55, %v3334_v33  ;;  %v3536_v3 = vsel %vm1756_vm7, %v3457_v44, 0.0  ;;  %v3458_v50 = vmul.f32 %v7113_v16, %v7113_v16 }
 0x2ea   : > { %v7093_v21 = vpop.f32.mrf.mxu2  ;;  %v7124_v33 = vadd.f32 %v6939_v29, %v6991_v26  ;;  %v3341_v7 = vsel %vm1756_vm7, %v7113_v16, 0.0  ;;  %v7144_v44 = vadd.f32 %v6939_v29, %v7049_v18 }
 0x2eb   : > { %v3533_v42 = vadd.f32 %v3532_v54, %v3531_v14  ;;  %v3338_v37 = vadd.f32 %v3337_v49, %v3336_v34  ;;  %v3538_v14 = vsel %vm1756_vm7, %v3458_v50, 0.0  ;;  %v7133_v34 = vadd.f32 %v6939_v29, %v7026_v32  ;;  %v7135_v54 = vpop.f32.mrf.mxu3 }
 0x2ec   : > { %v3198_v36 = vpop.f32.mrf.mxu1  ;;  %v3459_v55 = vmul.f32 %v7124_v33, %v7124_v33  ;;  %v3343_v26 = vsel %vm1756_vm7, %v7124_v33, 0.0  ;;  %8594 = vst [vmem:[#allocation13_spill] sm:$0xff] %v7144_v44  ;;  %v3461_v50 = vmul.f32 %v7144_v44, %v7144_v44  ;;  %v3347_v18 = vsel %vm1756_vm7, %v7144_v44, 0.0 }
 0x2ed   : > { %v3535_v27 = vadd.f32 %v3534_v31, %v3533_v42  ;;  %v3340_v20 = vadd.f32 %v3339_v2, %v3338_v37  ;;  %8593 = vst [vmem:[#allocation9_spill] sm:$0xff] %v7133_v34  ;;  %v3460_v31 = vmul.f32 %v7133_v34, %v7133_v34  ;;  %v3345_v2 = vsel %vm1756_vm7, %v7133_v34, 0.0 }
 0x2ee   : > { %v3540_v37 = vsel %vm1756_vm7, %v3459_v55, 0.0 }
 0x2ef   : > { %v3537_v59 = vadd.f32 %v3536_v3, %v3535_v27  ;;  %v3342_v19 = vadd.f32 %v3341_v7, %v3340_v20  ;;  %v3542_v3 = vsel %vm1756_vm7, %v3460_v31, 0.0 }
 0x2f1   : > { %v3539_v5 = vadd.f32 %v3538_v14, %v3537_v59  ;;  %v3344_v49 = vadd.f32 %v3343_v26, %v3342_v19  ;;  %v7154_v59 = vadd.f32 %v6939_v29, %v3198_v36 }
 0x2f2   : > { %v7117_v43 = vpop.f32.mrf.mxu2 }
 0x2f3   : > { %v3541_v27 = vadd.f32 %v3540_v37, %v3539_v5  ;;  %v3346_v20 = vadd.f32 %v3345_v2, %v3344_v49  ;;  %8595 = vst [vmem:[#allocation8_spill] sm:$0xff] %v7154_v59  ;;  %v7158_v14 = vpop.f32.mrf.mxu3  ;;  %v3544_v5 = vsel %vm1756_vm7, %v3461_v50, 0.0  ;;  %v3462_v26 = vmul.f32 %v7154_v59, %v7154_v59 }
 0x2f4   : > { %v3201_v9 = vpop.f32.mrf.mxu1  ;;  %v3349_v31 = vsel %vm1756_vm7, %v7154_v59, 0.0 }
 0x2f5   : > { %v3543_v7 = vadd.f32 %v3542_v3, %v3541_v27  ;;  %v3348_v55 = vadd.f32 %v3347_v18, %v3346_v20  ;;  %v7164_v49 = vadd.f32 %v6939_v29, %v3201_v9  ;;  %v3546_v3 = vsel %vm1756_vm7, %v3462_v26, 0.0 }
 0x2f7   : > { %8596 = vst [vmem:[#allocation15_spill] sm:$0xff] %v7164_v49  ;;  %v3545_v36 = vadd.f32 %v3544_v5, %v3543_v7  ;;  %v3350_v2 = vadd.f32 %v3349_v31, %v3348_v55  ;;  %v3463_v50 = vmul.f32 %v7164_v49, %v7164_v49 }
 0x2f9   : > { %v3547_v7 = vadd.f32 %v3546_v3, %v3545_v36  ;;  %v3548_v59 = vsel %vm1756_vm7, %v3463_v50, 0.0 }
 0x2fa   : > { %v7146_v32 = vpop.f32.mrf.mxu2 }
 0x2fc   : > { %v3203_v0 = vpop.f32.mrf.mxu1 }
 0x2fd   : > { %v7167_v37 = vadd.f32 %v6939_v29, %v3203_v0 }
 0x2ff   : > { %8597 = vst [vmem:[#allocation14_spill] sm:$0xff] %v7167_v37  ;;  %v3464_v9 = vmul.f32 %v7167_v37, %v7167_v37  ;;  %v3353_v55 = vsel %vm1756_vm7, %v7167_v37, 0.0  ;;  %v3549_v37 = vadd.f32 %v3548_v59, %v3547_v7 }
 0x302   : > { %v7174_v20 = vpop.f32.mrf.mxu2 }
 0x304   : > { %v3206_v42 = vpop.f32.mrf.mxu1 }
 0x305   : > { %v7172_v27 = vadd.f32 %v6939_v29, %v3206_v42  ;;  %v3351_v42 = vsel %vm1756_vm7, %v7164_v49, 0.0  ;;  %v7199_v49 = vpop.f32.mrf.mxu3 }
 0x306   : > { %v3352_v31 = vadd.f32 %v3351_v42, %v3350_v2  ;;  %v7208_v42 = vadd.f32 %v6939_v29, %v6908_v1 }
 0x307   : > { %8598 = vst [vmem:[#allocation17_spill] sm:$0xff] %v7172_v27  ;;  %v3465_v5 = vmul.f32 %v7172_v27, %v7172_v27  ;;  %v3355_v36 = vsel %vm1756_vm7, %v7172_v27, 0.0 }
 0x308   : > { %v3354_v44 = vadd.f32 %v3353_v55, %v3352_v31 }
 0x309   : > { %v3552_v34 = vsel %vm1756_vm7, %v3465_v5, 0.0 }
 0x30a   : > { %v7213_v55 = vpop.f32.mrf.mxu2 }
 0x30c   : > { %v3208_v19 = vpop.f32.mrf.mxu1 }
 0x30d   : > { %v7182_v0 = vadd.f32 %v6939_v29, %v3208_v19  ;;  %v3550_v19 = vsel %vm1756_vm7, %v3464_v9, 0.0  ;;  %v3356_v9 = vadd.f32 %v3355_v36, %v3354_v44  ;;  %v3469_v36 = vmul.f32 %v7208_v42, %v7208_v42 }
 0x30e   : > { %v3551_v50 = vadd.f32 %v3550_v19, %v3549_v37 }
 0x30f   : > { %8599 = vst [vmem:[#allocation12_spill] sm:$0xff] %v7182_v0  ;;  %v3466_v3 = vmul.f32 %v7182_v0, %v7182_v0 }
 0x310   : > { %v3553_v7 = vadd.f32 %v3552_v34, %v3551_v50  ;;  %v7227_v34 = vadd.f32 %v6939_v29, %v6916_v11  ;;  %v3363_v50 = vsel %vm1756_vm7, %v7208_v42, 0.0 }
 0x311   : > { %v3554_v27 = vsel %vm1756_vm7, %v3466_v3, 0.0 }
 0x312   : > { %v3555_v1 = vadd.f32 %v3554_v27, %v3553_v7 }
 0x314   : > { %v3211_v18 = vpop.f32.mrf.mxu1 }
 0x315   : > { %v7191_v26 = vadd.f32 %v6939_v29, %v3211_v18  ;;  %v3357_v18 = vsel %vm1756_vm7, %v7182_v0, 0.0  ;;  %v7217_v0 = vadd.f32 %v6939_v29, %v6912_v48 }
 0x316   : > { %v3358_v5 = vadd.f32 %v3357_v18, %v3356_v9  ;;  %v7239_v9 = vadd.f32 %v6939_v29, %v6920_v24 }
 0x317   : > { %v3467_v2 = vmul.f32 %v7191_v26, %v7191_v26  ;;  %v3359_v59 = vsel %vm1756_vm7, %v7191_v26, 0.0  ;;  %8600 = vst [vmem:[#allocation31_spill] sm:$0xff] %v7217_v0  ;;  %v3470_v27 = vmul.f32 %v7217_v0, %v7217_v0 }
 0x318   : > { %v3360_v19 = vadd.f32 %v3359_v59, %v3358_v5  ;;  %8601 = vst [vmem:[#allocation37_spill] sm:$0xff] %v7239_v9  ;;  %v7242_v59 = vpop.f32.mrf.mxu3 }
 0x319   : > { %v3556_v44 = vsel %vm1756_vm7, %v3467_v2, 0.0 }
 0x31a   : > { %v3557_v18 = vadd.f32 %v3556_v44, %v3555_v1  ;;  %v3365_v44 = vsel %vm1756_vm7, %v7217_v0, 0.0  ;;  %v3471_v1 = vmul.f32 %v7227_v34, %v7227_v34 }
 0x31c   : > { %v3213_v31 = vpop.f32.mrf.mxu1 }
 0x31d   : > { %v7221_v37 = vadd.f32 %v6939_v29, %v3213_v31  ;;  %v3560_v31 = vsel %vm1756_vm7, %v3469_v36, 0.0  ;;  %v3472_v36 = vmul.f32 %v7239_v9, %v7239_v9 }
 0x31f   : > { %v3361_v3 = vsel %vm1756_vm7, %v7221_v37, 0.0  ;;  %v3468_v48 = vmul.f32 %v7221_v37, %v7221_v37 }
 0x320   : > { %v3362_v2 = vadd.f32 %v3361_v3, %v3360_v19  ;;  %v7251_v19 = vadd.f32 %v6939_v29, %v6926_v35  ;;  %v3564_v35 = vsel %vm1756_vm7, %v3471_v1, 0.0 }
 0x321   : > { %v3558_v11 = vsel %vm1756_vm7, %v3468_v48, 0.0  ;;  %v3562_v48 = vsel %vm1756_vm7, %v3470_v27, 0.0 }
 0x322   : > { %v3364_v7 = vadd.f32 %v3363_v50, %v3362_v2  ;;  %v3559_v5 = vadd.f32 %v3558_v11, %v3557_v18  ;;  %v3367_v2 = vsel %vm1756_vm7, %v7227_v34, 0.0  ;;  %v7260_v18 = vadd.f32 %v6939_v29, %v6932_v22  ;;  %v7262_v50 = vpop.f32.mrf.mxu2 }
 0x323   : > { %v3473_v27 = vmul.f32 %v7251_v19, %v7251_v19  ;;  %v3566_v22 = vsel %vm1756_vm7, %v3472_v36, 0.0  ;;  %v7289_v36 = vadd.f32 %v6939_v29, %v7040_v13 }
 0x324   : > { %v3366_v24 = vadd.f32 %v3365_v44, %v3364_v7  ;;  %v3561_v3 = vadd.f32 %v3560_v31, %v3559_v5  ;;  %8602 = vst [vmem:[#allocation32_spill] sm:$0xff] %v7260_v18  ;;  %v3369_v7 = vsel %vm1756_vm7, %v7239_v9, 0.0  ;;  %v7271_v5 = vadd.f32 %v6939_v29, %v6952_v40 }
 0x325   : > { %v3474_v1 = vmul.f32 %v7260_v18, %v7260_v18  ;;  %v3568_v9 = vsel %vm1756_vm7, %v3473_v27, 0.0  ;;  %v3373_v40 = vsel %vm1756_vm7, %v7260_v18, 0.0 }
 0x326   : > { %v3368_v11 = vadd.f32 %v3367_v2, %v3366_v24  ;;  %v3563_v0 = vadd.f32 %v3562_v48, %v3561_v3  ;;  %8603 = vst [vmem:[#allocation38_spill] sm:$0xff] %v7271_v5  ;;  %v3371_v24 = vsel %vm1756_vm7, %v7251_v19, 0.0  ;;  %v7280_v3 = vadd.f32 %v6939_v29, %v7001_v57 }
 0x327   : > { %v3570_v57 = vsel %vm1756_vm7, %v3474_v1, 0.0  ;;  %v7309_v1 = vadd.f32 %v6939_v29, %v7093_v21 }
 0x328   : > { %v3370_v31 = vadd.f32 %v3369_v7, %v3368_v11  ;;  %v3565_v44 = vadd.f32 %v3564_v35, %v3563_v0  ;;  %8604 = vst [vmem:[#allocation39_spill] sm:$0xff] %v7280_v3  ;;  %v3475_v0 = vmul.f32 %v7271_v5, %v7271_v5  ;;  %v7291_v11 = vpop.f32.mrf.mxu3  ;;  %v3476_v27 = vmul.f32 %v7280_v3, %v7280_v3 }
 0x32a   : > { %v3372_v48 = vadd.f32 %v3371_v24, %v3370_v31  ;;  %v3567_v2 = vadd.f32 %v3566_v22, %v3565_v44  ;;  %v3375_v31 = vsel %vm1756_vm7, %v7271_v5, 0.0  ;;  %v7300_v44 = vadd.f32 %v6939_v29, %v7064_v30 }
 0x32b   : > { %v3572_v13 = vsel %vm1756_vm7, %v3475_v0, 0.0  ;;  %v3574_v30 = vsel %vm1756_vm7, %v3476_v27, 0.0  ;;  %v3479_v27 = vmul.f32 %v7309_v1, %v7309_v1 }
 0x32c   : > { %v3374_v35 = vadd.f32 %v3373_v40, %v3372_v48  ;;  %v3569_v7 = vadd.f32 %v3568_v9, %v3567_v2  ;;  %v3377_v48 = vsel %vm1756_vm7, %v7280_v3, 0.0  ;;  %v3477_v9 = vmul.f32 %v7289_v36, %v7289_v36  ;;  %v3256_v2 = vpop.f32.mrf.mxu2 }
 0x32d   : > { %v3478_v0 = vmul.f32 %v7300_v44, %v7300_v44 }
 0x32e   : > { %v3376_v22 = vadd.f32 %v3375_v31, %v3374_v35  ;;  %v3571_v24 = vadd.f32 %v3570_v57, %v3569_v7  ;;  %v3379_v35 = vsel %vm1756_vm7, %v7289_v36, 0.0  ;;  %v7318_v7 = vadd.f32 %v6939_v29, %v7117_v43 }
 0x32f   : > { %v3576_v21 = vsel %vm1756_vm7, %v3477_v9, 0.0  ;;  %v3578_v3 = vsel %vm1756_vm7, %v3478_v0, 0.0  ;;  %v3383_v43 = vsel %vm1756_vm7, %v7309_v1, 0.0  ;;  %v7336_v9 = vadd.f32 %v6939_v29, %v7174_v20 }
 0x330   : > { %v3378_v40 = vadd.f32 %v3377_v48, %v3376_v22  ;;  %v3573_v5 = vadd.f32 %v3572_v13, %v3571_v24  ;;  %v3381_v22 = vsel %vm1756_vm7, %v7300_v44, 0.0  ;;  %v7327_v24 = vadd.f32 %v6939_v29, %v7146_v32 }
 0x331   : > { %v3580_v32 = vsel %vm1756_vm7, %v3479_v27, 0.0  ;;  %v7356_v27 = vadd.f32 %v6939_v29, %v7262_v50 }
 0x332   : > { %v3575_v57 = vadd.f32 %v3574_v30, %v3573_v5  ;;  %v3380_v31 = vadd.f32 %v3379_v35, %v3378_v40  ;;  %8605 = vst [vmem:[#allocation7_spill] sm:$0xff] %v7327_v24  ;;  %v3480_v5 = vmul.f32 %v7318_v7, %v7318_v7  ;;  %v7338_v40 = vpop.f32.mrf.mxu3  ;;  %v3481_v0 = vmul.f32 %v7327_v24, %v7327_v24 }
 0x333   : > { %8607 = vst [vmem:[#allocation20_spill] sm:$0xff] %v7356_v27 }
 0x334   : > { %v3382_v13 = vadd.f32 %v3381_v22, %v3380_v31  ;;  %v3577_v48 = vadd.f32 %v3576_v21, %v3575_v57  ;;  %v3385_v57 = vsel %vm1756_vm7, %v7318_v7, 0.0  ;;  %v7347_v31 = vadd.f32 %v6939_v29, %v7213_v55 }
 0x335   : > { %v3582_v20 = vsel %vm1756_vm7, %v3480_v5, 0.0  ;;  %v3584_v55 = vsel %vm1756_vm7, %v3481_v0, 0.0 }
 0x336   : > { %v3384_v30 = vadd.f32 %v3383_v43, %v3382_v13  ;;  %v3579_v35 = vadd.f32 %v3578_v3, %v3577_v48  ;;  %8606 = vst [vmem:[#allocation25_spill] sm:$0xff] %v7347_v31  ;;  %v3387_v13 = vsel %vm1756_vm7, %v7327_v24, 0.0  ;;  %v3482_v3 = vmul.f32 %v7336_v9, %v7336_v9  ;;  %v3258_v48 = vpop.f32.mrf.mxu2 }
 0x337   : > { %v3483_v5 = vmul.f32 %v7347_v31, %v7347_v31  ;;  %v3391_v50 = vsel %vm1756_vm7, %v7347_v31, 0.0  ;;  %v7372_v0 = vadd.f32 %v6939_v29, %v3258_v48  ;;  %v7387_v48 = vadd.f32 %v6939_v29, %v6930_v53 }
 0x338   : > { %v3386_v21 = vadd.f32 %v3385_v57, %v3384_v30  ;;  %v3581_v22 = vadd.f32 %v3580_v32, %v3579_v35  ;;  %v3389_v30 = vsel %vm1756_vm7, %v7336_v9, 0.0  ;;  %v7364_v35 = vadd.f32 %v6939_v29, %v3256_v2 }
 0x339   : > { %v3586_v24 = vsel %vm1756_vm7, %v3482_v3, 0.0  ;;  %v3588_v2 = vsel %vm1756_vm7, %v3483_v5, 0.0  ;;  %v3486_v5 = vmul.f32 %v7372_v0, %v7372_v0 }
 0x33a   : > { %v3388_v43 = vadd.f32 %v3387_v13, %v3386_v21  ;;  %v3583_v18 = vadd.f32 %v3582_v20, %v3581_v22  ;;  %v3484_v21 = vmul.f32 %v7356_v27, %v7356_v27  ;;  %v7376_v13 = vadd.f32 %v6939_v29, %v6922_v25 }
 0x33b   : > { %v3485_v3 = vmul.f32 %v7364_v35, %v7364_v35  ;;  %v3395_v25 = vsel %vm1756_vm7, %v7364_v35, 0.0 }
 0x33c   : > { %v3390_v32 = vadd.f32 %v3389_v30, %v3388_v43  ;;  %v3585_v57 = vadd.f32 %v3584_v55, %v3583_v18  ;;  %v3393_v18 = vsel %vm1756_vm7, %v7356_v27, 0.0  ;;  %v7383_v43 = vpop.f32.mrf.mxu3 }
 0x33d   : > { %v3592_v53 = vsel %vm1756_vm7, %v3485_v3, 0.0 }
 0x33e   : > { %v3392_v22 = vadd.f32 %v3391_v50, %v3390_v32  ;;  %v3587_v20 = vadd.f32 %v3586_v24, %v3585_v57  ;;  %v3590_v24 = vsel %vm1756_vm7, %v3484_v21, 0.0  ;;  %v3487_v50 = vmul.f32 %v7376_v13, %v7376_v13 }
 0x33f   : > { %v3397_v21 = vsel %vm1756_vm7, %v7372_v0, 0.0 }
 0x340   : > { %v3394_v55 = vadd.f32 %v3393_v18, %v3392_v22  ;;  %v3589_v30 = vadd.f32 %v3588_v2, %v3587_v20  ;;  %v7398_v22 = vadd.f32 %v6939_v29, %v6941_v23  ;;  %v3399_v18 = vsel %vm1756_vm7, %v7376_v13, 0.0 }
 0x341   : > { %v3594_v23 = vsel %vm1756_vm7, %v3486_v5, 0.0  ;;  %v3596_v3 = vsel %vm1756_vm7, %v3487_v50, 0.0 }
 0x342   : > { %v3396_v32 = vadd.f32 %v3395_v25, %v3394_v55  ;;  %v3591_v57 = vadd.f32 %v3590_v24, %v3589_v30  ;;  %8608 = vst [vmem:[#allocation40_spill] sm:$0xff] %v7398_v22  ;;  %v3488_v55 = vmul.f32 %v7387_v48, %v7387_v48  ;;  %v7409_v30 = vadd.f32 %v6939_v29, %v6981_v56 }
 0x343   : > { %v3403_v5 = vsel %vm1756_vm7, %v7398_v22, 0.0 }
 0x344   : > { %v3398_v20 = vadd.f32 %v3397_v21, %v3396_v32  ;;  %v3593_v2 = vadd.f32 %v3592_v53, %v3591_v57  ;;  %8609 = vst [vmem:[#allocation41_spill] sm:$0xff] %v7409_v30  ;;  %v3401_v32 = vsel %vm1756_vm7, %v7387_v48, 0.0  ;;  %v3489_v57 = vmul.f32 %v7398_v22, %v7398_v22 }
 0x345   : > { %v7419_v53 = vadd.f32 %v6939_v29, %v7021_v28  ;;  %v3598_v56 = vsel %vm1756_vm7, %v3488_v55, 0.0  ;;  %v3490_v50 = vmul.f32 %v7409_v30, %v7409_v30 }
 0x346   : > { %v3400_v24 = vadd.f32 %v3399_v18, %v3398_v20  ;;  %v3595_v25 = vadd.f32 %v3594_v23, %v3593_v2  ;;  %v7428_v20 = vadd.f32 %v6939_v29, %v7053_v60  ;;  %v3298_v2 = vpop.f32.mrf.mxu3  ;;  %v3600_v28 = vsel %vm1756_vm7, %v3489_v57, 0.0 }
 0x347   : > { %8610 = vst [vmem:[#allocation33_spill] sm:$0xff] %v7419_v53  ;;  %v3491_v55 = vmul.f32 %v7419_v53, %v7419_v53  ;;  %v3602_v60 = vsel %vm1756_vm7, %v3490_v50, 0.0  ;;  %v7446_v57 = vadd.f32 %v6939_v29, %v7106_v45 }
 0x348   : > { %v3402_v21 = vadd.f32 %v3401_v32, %v3400_v24  ;;  %v3597_v27 = vadd.f32 %v3596_v3, %v3595_v25  ;;  %8611 = vst [vmem:[#allocation11_spill] sm:$0xff] %v7428_v20  ;;  %v3405_v24 = vsel %vm1756_vm7, %v7409_v30, 0.0  ;;  %v7437_v25 = vadd.f32 %v6939_v29, %v7082_v39 }
 0x349   : > { %v3604_v30 = vsel %vm1756_vm7, %v3491_v55, 0.0  ;;  %v3409_v39 = vsel %vm1756_vm7, %v7428_v20, 0.0  ;;  %v3494_v55 = vmul.f32 %v7446_v57, %v7446_v57 }
 0x34a   : > { %v3404_v18 = vadd.f32 %v3403_v5, %v3402_v21  ;;  %v3599_v23 = vadd.f32 %v3598_v56, %v3597_v27  ;;  %v3407_v21 = vsel %vm1756_vm7, %v7419_v53, 0.0  ;;  %v3492_v27 = vmul.f32 %v7428_v20, %v7428_v20 }
 0x34b   : > { %v3493_v50 = vmul.f32 %v7437_v25, %v7437_v25  ;;  %v3411_v45 = vsel %vm1756_vm7, %v7437_v25, 0.0 }
 0x34c   : > { %v3406_v3 = vadd.f32 %v3405_v24, %v3404_v18  ;;  %v3601_v32 = vadd.f32 %v3600_v28, %v3599_v23  ;;  %v7455_v18 = vadd.f32 %v6939_v29, %v7135_v54  ;;  %v3606_v24 = vsel %vm1756_vm7, %v3492_v27, 0.0 }
 0x34d   : > { %v3413_v54 = vsel %vm1756_vm7, %v7446_v57, 0.0  ;;  %v7473_v27 = vadd.f32 %v6939_v29, %v7199_v49 }
 0x34e   : > { %v3408_v56 = vadd.f32 %v3407_v21, %v3406_v3  ;;  %v3603_v5 = vadd.f32 %v3602_v60, %v3601_v32  ;;  %v7464_v3 = vadd.f32 %v6939_v29, %v7158_v14  ;;  %v3608_v21 = vsel %vm1756_vm7, %v3493_v50, 0.0 }
 0x34f   : > { %8612 = vst [vmem:[#allocation5_spill] sm:$0xff] %v7473_v27  ;;  %v3610_v14 = vsel %vm1756_vm7, %v3494_v55, 0.0  ;;  %v3497_v55 = vmul.f32 %v7473_v27, %v7473_v27 }
 0x350   : > { %v3410_v23 = vadd.f32 %v3409_v39, %v3408_v56  ;;  %v3605_v28 = vadd.f32 %v3604_v30, %v3603_v5  ;;  %v3495_v30 = vmul.f32 %v7455_v18, %v7455_v18  ;;  %v3301_v56 = vpop.f32.mrf.mxu3  ;;  %v3496_v50 = vmul.f32 %v7464_v3, %v7464_v3 }
 0x352   : > { %v3412_v32 = vadd.f32 %v3411_v45, %v3410_v23  ;;  %v3607_v60 = vadd.f32 %v3606_v24, %v3605_v28  ;;  %v3415_v23 = vsel %vm1756_vm7, %v7455_v18, 0.0  ;;  %v7482_v28 = vadd.f32 %v6939_v29, %v7242_v59 }
 0x353   : > { %v3612_v49 = vsel %vm1756_vm7, %v3495_v30, 0.0  ;;  %v3614_v20 = vsel %vm1756_vm7, %v3496_v50, 0.0  ;;  %v3419_v59 = vsel %vm1756_vm7, %v7473_v27, 0.0 }
 0x354   : > { %v3414_v5 = vadd.f32 %v3413_v54, %v3412_v32  ;;  %v3609_v39 = vadd.f32 %v3608_v21, %v3607_v60  ;;  %8613 = vst [vmem:[#allocation27_spill] sm:$0xff] %v7482_v28  ;;  %v3417_v32 = vsel %vm1756_vm7, %v7464_v3, 0.0  ;;  %v7491_v60 = vadd.f32 %v6939_v29, %v7291_v11 }
 0x355   : > { %v3498_v30 = vmul.f32 %v7482_v28, %v7482_v28  ;;  %v3421_v11 = vsel %vm1756_vm7, %v7482_v28, 0.0 }
 0x356   : > { %v3611_v24 = vadd.f32 %v3610_v14, %v3609_v39  ;;  %v3416_v45 = vadd.f32 %v3415_v23, %v3414_v5  ;;  %8614 = vst [vmem:[#allocation42_spill] sm:$0xff] %v7491_v60  ;;  %v7500_v5 = vadd.f32 %v6939_v29, %v7338_v40  ;;  %v3616_v23 = vsel %vm1756_vm7, %v3497_v55, 0.0 }
 0x357   : > { %v3499_v50 = vmul.f32 %v7491_v60, %v7491_v60  ;;  %v3423_v40 = vsel %vm1756_vm7, %v7491_v60, 0.0  ;;  %v7517_v55 = vadd.f32 %v6939_v29, %v3298_v2 }
 0x358   : > { %v3418_v21 = vadd.f32 %v3417_v32, %v3416_v45  ;;  %v3613_v54 = vadd.f32 %v3612_v49, %v3611_v24  ;;  %8615 = vst [vmem:[#allocation16_spill] sm:$0xff] %v7500_v5  ;;  %v7509_v24 = vadd.f32 %v6939_v29, %v7383_v43  ;;  %v3618_v32 = vsel %vm1756_vm7, %v3498_v30, 0.0 }
 0x359   : > { %v3620_v28 = vsel %vm1756_vm7, %v3499_v50, 0.0  ;;  %v3425_v43 = vsel %vm1756_vm7, %v7500_v5, 0.0 }
 0x35a   : > { %v3420_v39 = vadd.f32 %v3419_v59, %v3418_v21  ;;  %v3615_v14 = vadd.f32 %v3614_v20, %v3613_v54  ;;  %v3500_v20 = vmul.f32 %v7500_v5, %v7500_v5  ;;  %v3303_v21 = vpop.f32.mrf.mxu3  ;;  %v3501_v30 = vmul.f32 %v7509_v24, %v7509_v24 }
 0x35b   : > { %v3427_v2 = vsel %vm1756_vm7, %v7509_v24, 0.0  ;;  %v7533_v50 = vadd.f32 %v6939_v29, %v3303_v21 }
 0x35c   : > { %v3422_v45 = vadd.f32 %v3421_v11, %v3420_v39  ;;  %v3617_v49 = vadd.f32 %v3616_v23, %v3615_v14  ;;  %v7525_v39 = vadd.f32 %v6939_v29, %v3301_v56  ;;  %v3622_v11 = vsel %vm1756_vm7, %v3500_v20, 0.0 }
 0x35d   : > { %v3429_v56 = vsel %vm1756_vm7, %v7517_v55, 0.0  ;;  %v3504_v29 = vmul.f32 %v7533_v50, %v7533_v50 }
 0x35e   : > { %v3424_v54 = vadd.f32 %v3423_v40, %v3422_v45  ;;  %v3619_v59 = vadd.f32 %v3618_v32, %v3617_v49  ;;  %v3502_v45 = vmul.f32 %v7517_v55, %v7517_v55  ;;  %v3624_v40 = vsel %vm1756_vm7, %v3501_v30, 0.0 }
 0x360   : > { %v3426_v14 = vadd.f32 %v3425_v43, %v3424_v54  ;;  %v3621_v23 = vadd.f32 %v3620_v28, %v3619_v59  ;;  %v3503_v28 = vmul.f32 %v7525_v39, %v7525_v39  ;;  %v3626_v59 = vsel %vm1756_vm7, %v3502_v45, 0.0 }
 0x361   : > { %v3431_v43 = vsel %vm1756_vm7, %v7525_v39, 0.0 }
 0x362   : > { %v3428_v49 = vadd.f32 %v3427_v2, %v3426_v14  ;;  %v3623_v32 = vadd.f32 %v3622_v11, %v3621_v23  ;;  %v3628_v30 = vsel %vm1756_vm7, %v3503_v28, 0.0  ;;  %v3433_v23 = vsel %vm1756_vm7, %v7533_v50, 0.0 }
 0x364   : > { %v3430_v20 = vadd.f32 %v3429_v56, %v3428_v49  ;;  %v3625_v54 = vadd.f32 %v3624_v40, %v3623_v32  ;;  %v3630_v49 = vsel %vm1756_vm7, %v3504_v29, 0.0 }
 0x366   : > { %v3432_v21 = vadd.f32 %v3431_v43, %v3430_v20  ;;  %v3627_v14 = vadd.f32 %v3626_v59, %v3625_v54 }
 0x368   : > { %v3434_v11 = vadd.f32 %v3433_v23, %v3432_v21  ;;  %v3629_v2 = vadd.f32 %v3628_v30, %v3627_v14 }
 0x36a   : > { %v3435_v32 = vrot.slane %v3434_v11, 4  ;;  %v3631_v40 = vadd.f32 %v3630_v49, %v3629_v2 }
 0x36c   : > { %v3436_v45 = vadd.f32 %v3435_v32, %v3434_v11  ;;  %v3632_v56 = vrot.slane %v3631_v40, 4 }
 0x36e   : > { %v3437_v5 = vrot.slane %v3436_v45, 2  ;;  %v3633_v60 = vadd.f32 %v3632_v56, %v3631_v40 }
 0x370   : > { %v3438_v27 = vadd.f32 %v3437_v5, %v3436_v45  ;;  %v3634_v53 = vrot.slane %v3633_v60, 2 }
 0x372   : > { %v3439_v22 = vrot.slane %v3438_v27, 1  ;;  %v3635_v20 = vadd.f32 %v3634_v53, %v3633_v60 }
 0x374   : > { %v3440_v54 = vadd.f32 %v3439_v22, %v3438_v27  ;;  %v3636_v59 = vrot.slane %v3635_v20, 1 }
 0x376   : > { %v3637_v28 = vadd.f32 %v3636_v59, %v3635_v20  ;;  %v7549_v43 = vmul.f32 0.001953125, %v3440_v54  ;;  %v7606_v54 = vld [vmem:[%s8279_s8] ss:$0 sm:$0xff] }
 0x378   : > { %v3639_v31 = vmul.f32 0.001953125, %v3637_v28  ;;  %v3640_v21 = vmul.f32 %v7549_v43, %v7549_v43  ;;  %v3679_v5 = vsub.f32 %v7289_v36, %v7549_v43  ;;  %v3680_v22 = vsub.f32 %v7300_v44, %v7549_v43 }
 0x379   : > { %v3681_v53 = vsub.f32 %v7309_v1, %v7549_v43  ;;  %v3682_v27 = vsub.f32 %v7318_v7, %v7549_v43  ;;  %v3688_v49 = vsub.f32 %v7372_v0, %v7549_v43  ;;  %v3689_v32 = vsub.f32 %v7376_v13, %v7549_v43 }
 0x37a   : > { %v3641_v29 = vsub.f32 %v3639_v31, %v3640_v21  ;;  %v3687_v31 = vsub.f32 %v7364_v35, %v7549_v43  ;;  %v3690_v36 = vsub.f32 %v7387_v48, %v7549_v43  ;;  %v3695_v44 = vsub.f32 %v7437_v25, %v7549_v43 }
 0x37b   : > { %v3696_v1 = vsub.f32 %v7446_v57, %v7549_v43  ;;  %v3697_v7 = vsub.f32 %v7455_v18, %v7549_v43  ;;  %v3698_v0 = vsub.f32 %v7464_v3, %v7549_v43  ;;  %v3703_v13 = vsub.f32 %v7509_v24, %v7549_v43 }
 0x37c   : > { %v3642_v14 = vmax.f32 %v3641_v29, 0.0  ;;  %v3704_v48 = vsub.f32 %v7517_v55, %v7549_v43  ;;  %v3705_v25 = vsub.f32 %v7525_v39, %v7549_v43  ;;  %v3706_v57 = vsub.f32 %v7533_v50, %v7549_v43 }
 0x37d   : > { %v3643_v18 = vsub.f32 %v6947_v8, %v7549_v43  ;;  %v8642_v8 = vsub.f32 %v6968_v6, %v7549_v43  ;;  %v8646_v6 = vsub.f32 %v7009_v17, %v7549_v43 }
 0x37e   : > { %v3707_v30 = vadd.f32 1e-05, %v3642_v14 }
 0x380   : > { %4744 = vrsqrt.f32 %v3707_v30  ;;  %vm3714_vm12 = vweird.f32 %v3707_v30 }
 0x386   : > { %v4745_v23 = vpop.eup %4744 }
 0x387   : > { %v3709_v11 = vmul.f32 %v4745_v23, %v3707_v30  ;;  %vm3715_vm11 = vweird.f32 %v4745_v23 }
 0x388   : > { %vm3716_vm13 = vmor %vm3714_vm12, %vm3715_vm11 }
 0x389   : > { %v3710_v2 = vmul.f32 %v4745_v23, %v3709_v11 }
 0x38b   : > { %v3711_v60 = vmul.f32 0.5, %v3710_v2 }
 0x38d   : > { %v3712_v35 = vsub.f32 1.5, %v3711_v60 }
 0x38f   : > { %v3713_v40 = vmul.f32 %v4745_v23, %v3712_v35 }
 0x391   : > { %v7595_v45 = vsel %vm3716_vm13, %v4745_v23, %v3713_v40 }
 0x392   : > { %v3754_v59 = vmul.f32 %v7595_v45, %v3679_v5  ;;  %v3755_v28 = vmul.f32 %v7595_v45, %v3680_v22  ;;  %v3756_v14 = vmul.f32 %v7595_v45, %v3681_v53  ;;  %v3757_v30 = vmul.f32 %v7595_v45, %v3682_v27 }
 0x393   : > { %v3762_v23 = vmul.f32 %v7595_v45, %v3687_v31  ;;  %v3763_v11 = vmul.f32 %v7595_v45, %v3688_v49  ;;  %v3764_v2 = vmul.f32 %v7595_v45, %v3689_v32  ;;  %v3765_v5 = vmul.f32 %v7595_v45, %v3690_v36  ;;  %v7629_v31 = vld [vmem:[%s8280_s9] ss:$0 sm:$0xff] }
 0x394   : > { %v3770_v22 = vmul.f32 %v7595_v45, %v3695_v44  ;;  %v3771_v60 = vmul.f32 %v7595_v45, %v3696_v1  ;;  %v3772_v35 = vmul.f32 %v7595_v45, %v3697_v7  ;;  %v3773_v40 = vmul.f32 %v7595_v45, %v3698_v0 }
 0x395   : > { %v3778_v53 = vmul.f32 %v7595_v45, %v3703_v13  ;;  %v3779_v27 = vmul.f32 %v7595_v45, %v3704_v48  ;;  %v3780_v49 = vmul.f32 %v7595_v45, %v3705_v25  ;;  %v3781_v32 = vmul.f32 %v7595_v45, %v3706_v57 }
 0x396   : > { %v3821_v36 = vmul.f32 %v7606_v54, %v3754_v59  ;;  %v3822_v44 = vmul.f32 %v7606_v54, %v3755_v28  ;;  %v3823_v1 = vmul.f32 %v7606_v54, %v3756_v14  ;;  %v3824_v7 = vmul.f32 %v7606_v54, %v3757_v30 }
 0x397   : > { %v3829_v0 = vmul.f32 %v7606_v54, %v3762_v23  ;;  %v3830_v13 = vmul.f32 %v7606_v54, %v3763_v11  ;;  %v3831_v48 = vmul.f32 %v7606_v54, %v3764_v2  ;;  %v3832_v29 = vmul.f32 %v7606_v54, %v3765_v5 }
 0x398   : > { %v3837_v25 = vmul.f32 %v7606_v54, %v3770_v22  ;;  %v3838_v57 = vmul.f32 %v7606_v54, %v3771_v60  ;;  %v3839_v59 = vmul.f32 %v7606_v54, %v3772_v35  ;;  %v3840_v28 = vmul.f32 %v7606_v54, %v3773_v40 }
 0x399   : > { %v3845_v14 = vmul.f32 %v7606_v54, %v3778_v53  ;;  %v3846_v30 = vmul.f32 %v7606_v54, %v3779_v27  ;;  %v3847_v23 = vmul.f32 %v7606_v54, %v3780_v49  ;;  %v3848_v11 = vmul.f32 %v7606_v54, %v3781_v32 }
 0x39a   : > { %v3888_v2 = vadd.f32 %v7629_v31, %v3821_v36  ;;  %v3889_v5 = vadd.f32 %v7629_v31, %v3822_v44  ;;  %v3890_v22 = vadd.f32 %v7629_v31, %v3823_v1  ;;  %v3891_v60 = vadd.f32 %v7629_v31, %v3824_v7 }
 0x39b   : > { %v3896_v35 = vadd.f32 %v7629_v31, %v3829_v0  ;;  %v3897_v40 = vadd.f32 %v7629_v31, %v3830_v13  ;;  %v3898_v53 = vadd.f32 %v7629_v31, %v3831_v48  ;;  %v3899_v27 = vadd.f32 %v7629_v31, %v3832_v29 }
 0x39c   : > { %v3904_v49 = vadd.f32 %v7629_v31, %v3837_v25  ;;  %v3905_v32 = vadd.f32 %v7629_v31, %v3838_v57  ;;  %v3906_v36 = vadd.f32 %v7629_v31, %v3839_v59  ;;  %v3907_v44 = vadd.f32 %v7629_v31, %v3840_v28 }
 0x39d   : > { %v3912_v1 = vadd.f32 %v7629_v31, %v3845_v14  ;;  %v3913_v7 = vadd.f32 %v7629_v31, %v3846_v30  ;;  %v3914_v0 = vadd.f32 %v7629_v31, %v3847_v23  ;;  %v3915_v13 = vadd.f32 %v7629_v31, %v3848_v11 }
 0x39e   : > { %v3952_v21 = vmax.f32 %v3888_v2, 0.0  ;;  %v3953_v48 = vmax.f32 %v3889_v5, 0.0  ;;  %v3954_v20 = vmax.f32 %v3890_v22, 0.0  ;;  %v3955_v29 = vmax.f32 %v3891_v60, 0.0 }
 0x39f   : > { %v3960_v56 = vmax.f32 %v3896_v35, 0.0  ;;  %v3961_v25 = vmax.f32 %v3897_v40, 0.0  ;;  %v3962_v50 = vmax.f32 %v3898_v53, 0.0  ;;  %v3963_v57 = vmax.f32 %v3899_v27, 0.0 }
 0x3a0   : > { %v3968_v39 = vmax.f32 %v3904_v49, 0.0  ;;  %v3969_v59 = vmax.f32 %v3905_v32, 0.0  ;;  %v3970_v55 = vmax.f32 %v3906_v36, 0.0  ;;  %v3971_v28 = vmax.f32 %v3907_v44, 0.0 }
 0x3a1   : > { %v3976_v24 = vmax.f32 %v3912_v1, 0.0  ;;  %v3977_v14 = vmax.f32 %v3913_v7, 0.0  ;;  %v3978_v3 = vmax.f32 %v3914_v0, 0.0  ;;  %v4064_v30 = vsel %vm1756_vm7, %v3952_v21, -inf }
 0x3a2   : > { %v4065_v23 = vsel %vm1756_vm7, %v3960_v56, -inf  ;;  %v4071_v11 = vsel %vm1756_vm7, %v3953_v48, -inf  ;;  %v3979_v2 = vmax.f32 %v3915_v13, 0.0  ;;  %v4067_v22 = vsel %vm1756_vm7, %v3968_v39, -inf }
 0x3a3   : > { %v4066_v5 = vmax.f32 %v4064_v30, %v4065_v23  ;;  %v4072_v60 = vsel %vm1756_vm7, %v3961_v25, -inf  ;;  %v4069_v35 = vsel %vm1756_vm7, %v3976_v24, -inf  ;;  %v4078_v53 = vsel %vm1756_vm7, %v3954_v20, -inf }
 0x3a4   : > { %v4073_v40 = vmax.f32 %v4071_v11, %v4072_v60  ;;  %v4079_v27 = vsel %vm1756_vm7, %v3962_v50, -inf  ;;  %v4074_v21 = vsel %vm1756_vm7, %v3969_v59, -inf  ;;  %v4076_v56 = vsel %vm1756_vm7, %v3977_v14, -inf }
 0x3a5   : > { %v4068_v49 = vmax.f32 %v4066_v5, %v4067_v22  ;;  %v4080_v32 = vmax.f32 %v4078_v53, %v4079_v27  ;;  %v4081_v44 = vsel %vm1756_vm7, %v3970_v55, -inf  ;;  %v4085_v39 = vsel %vm1756_vm7, %v3955_v29, -inf  ;;  %v8619_v53 = vld [vmem:[#allocation15_spill] sm:$0xff] }
 0x3a6   : > { %v4075_v36 = vmax.f32 %v4073_v40, %v4074_v21  ;;  %v4086_v1 = vsel %vm1756_vm7, %v3963_v57, -inf  ;;  %v4083_v0 = vsel %vm1756_vm7, %v3978_v3, -inf  ;;  %v4088_v50 = vsel %vm1756_vm7, %v3971_v28, -inf  ;;  %v8618_v40 = vld [vmem:[#allocation8_spill] sm:$0xff] }
 0x3a7   : > { %v4070_v7 = vmax.f32 %v4068_v49, %v4069_v35  ;;  %v4082_v24 = vmax.f32 %v4080_v32, %v4081_v44  ;;  %v4087_v20 = vmax.f32 %v4085_v39, %v4086_v1  ;;  %v4090_v48 = vsel %vm1756_vm7, %v3979_v2, -inf  ;;  %v8617_v35 = vld [vmem:[#allocation13_spill] sm:$0xff] }
 0x3a8   : > { %v4077_v13 = vmax.f32 %v4075_v36, %v4076_v56  ;;  %v3653_v25 = vsub.f32 %v7035_v61, %v7549_v43  ;;  %v3654_v29 = vsub.f32 %v7047_v46, %v7549_v43  ;;  %v3655_v3 = vsub.f32 %v7060_v12, %v7549_v43  ;;  %v8622_v56 = vld [vmem:[#allocation12_spill] sm:$0xff] }
 0x3a9   : > { %v4084_v59 = vmax.f32 %v4082_v24, %v4083_v0  ;;  %v4089_v14 = vmax.f32 %v4087_v20, %v4088_v50  ;;  %v4113_v55 = vsel %vm1756_vm7, %v4070_v7, -inf  ;;  %v3656_v28 = vsub.f32 %v7071_v15, %v7549_v43  ;;  %v8616_v15 = vld [vmem:[#allocation9_spill] sm:$0xff]  ;;  %v8623_v7 = vld [vmem:[#allocation31_spill] sm:$0xff] }
 0x3aa   : > { %v4114_v57 = vsel %vm1756_vm7, %v4077_v13, -inf  ;;  %v3657_v30 = vsub.f32 %v7080_v63, %v7549_v43  ;;  %v3658_v11 = vsub.f32 %v7091_v4, %v7549_v43  ;;  %v3659_v2 = vsub.f32 %v7102_v38, %v7549_v43  ;;  %v8624_v20 = vld [vmem:[#allocation37_spill] sm:$0xff] }
 0x3ab   : > { %v4091_v23 = vmax.f32 %v4089_v14, %v4090_v48  ;;  %v4115_v61 = vmax.f32 %v4113_v55, %v4114_v57  ;;  %v4116_v46 = vsel %vm1756_vm7, %v4084_v59, -inf  ;;  %v3660_v5 = vsub.f32 %v7113_v16, %v7549_v43  ;;  %v8620_v16 = vld [vmem:[#allocation14_spill] sm:$0xff]  ;;  %v8628_v55 = vld [vmem:[#allocation7_spill] sm:$0xff] }
 0x3ac   : > { %v3661_v12 = vsub.f32 %v7124_v33, %v7549_v43  ;;  %v3662_v22 = vsub.f32 %v8616_v15, %v7549_v43  ;;  %v3663_v4 = vsub.f32 %v8617_v35, %v7549_v43  ;;  %v3664_v38 = vsub.f32 %v8618_v40, %v7549_v43  ;;  %v8621_v33 = vld [vmem:[#allocation17_spill] sm:$0xff]  ;;  %v8631_v15 = vld [vmem:[#allocation40_spill] sm:$0xff] }
 0x3ad   : > { %v4117_v63 = vmax.f32 %v4115_v61, %v4116_v46  ;;  %v4118_v60 = vsel %vm1756_vm7, %v4091_v23, -inf  ;;  %v3665_v27 = vsub.f32 %v8619_v53, %v7549_v43  ;;  %v3666_v49 = vsub.f32 %v8620_v16, %v7549_v43  ;;  %v8629_v23 = vld [vmem:[#allocation25_spill] sm:$0xff]  ;;  %v8634_v16 = vld [vmem:[#allocation11_spill] sm:$0xff] }
 0x3ae   : > { %v3667_v21 = vsub.f32 %v8621_v33, %v7549_v43  ;;  %v3668_v32 = vsub.f32 %v8622_v56, %v7549_v43  ;;  %v3669_v44 = vsub.f32 %v7191_v26, %v7549_v43  ;;  %v3670_v39 = vsub.f32 %v7221_v37, %v7549_v43  ;;  %v8625_v26 = vld [vmem:[#allocation32_spill] sm:$0xff]  ;;  %v8626_v37 = vld [vmem:[#allocation38_spill] sm:$0xff]  ;;  %v8633_v40 = vld [vmem:[#allocation33_spill] sm:$0xff] }
 0x3af   : > { %v7717_v36 = vmax.f32 %v4117_v63, %v4118_v60  ;;  %v3671_v1 = vsub.f32 %v7208_v42, %v7549_v43  ;;  %v3672_v24 = vsub.f32 %v8623_v7, %v7549_v43  ;;  %v3673_v0 = vsub.f32 %v7227_v34, %v7549_v43  ;;  %v8627_v42 = vld [vmem:[#allocation39_spill] sm:$0xff]  ;;  %v8632_v60 = vld [vmem:[#allocation41_spill] sm:$0xff] }
 0x3b0   : > { %v3674_v13 = vsub.f32 %v8624_v20, %v7549_v43  ;;  %v3675_v50 = vsub.f32 %v7251_v19, %v7549_v43  ;;  %v3676_v48 = vsub.f32 %v8625_v26, %v7549_v43  ;;  %v3677_v59 = vsub.f32 %v8626_v37, %v7549_v43  ;;  %v8630_v19 = vld [vmem:[#allocation20_spill] sm:$0xff]  ;;  %v8636_v7 = vld [vmem:[#allocation27_spill] sm:$0xff]  ;;  %v8637_v26 = vld [vmem:[#allocation42_spill] sm:$0xff] }
 0x3b1   : > { %v3678_v14 = vsub.f32 %v8627_v42, %v7549_v43  ;;  %v3683_v57 = vsub.f32 %v8628_v55, %v7549_v43  ;;  %v3684_v34 = vsub.f32 %v7336_v9, %v7549_v43  ;;  %v3685_v61 = vsub.f32 %v8629_v23, %v7549_v43  ;;  %v8635_v9 = vld [vmem:[#allocation5_spill] sm:$0xff]  ;;  %v8638_v42 = vld [vmem:[#allocation16_spill] sm:$0xff] }
 0x3b2   : > { %v3686_v46 = vsub.f32 %v8630_v19, %v7549_v43  ;;  %v3691_v63 = vsub.f32 %v8631_v15, %v7549_v43  ;;  %v3692_v35 = vsub.f32 %v8632_v60, %v7549_v43  ;;  %v3693_v53 = vsub.f32 %v8633_v40, %v7549_v43 }
 0x3b3   : > { %v3694_v33 = vsub.f32 %v8634_v16, %v7549_v43  ;;  %v3699_v56 = vsub.f32 %v8635_v9, %v7549_v43  ;;  %v3700_v20 = vsub.f32 %v8636_v7, %v7549_v43  ;;  %v3701_v37 = vsub.f32 %v8637_v26, %v7549_v43 }
 0x3b4   : > { %v3702_v55 = vsub.f32 %v8638_v42, %v7549_v43  ;;  %v3718_v23 = vmul.f32 %v7595_v45, %v3643_v18  ;;  %v8639_v19 = vsub.f32 %v6944_v47, %v7549_v43  ;;  %v8640_v60 = vsub.f32 %v6950_v41, %v7549_v43 }
 0x3b5   : > { %v8641_v16 = vsub.f32 %v6959_v52, %v7549_v43  ;;  %v3722_v18 = vmul.f32 %v7595_v45, %v8642_v8  ;;  %v8643_v47 = vsub.f32 %v6978_v62, %v7549_v43  ;;  %v8644_v41 = vsub.f32 %v6989_v51, %v7549_v43 }
 0x3b6   : > { %v3719_v15 = vmul.f32 %v7595_v45, %v8639_v19  ;;  %v3720_v40 = vmul.f32 %v7595_v45, %v8640_v60  ;;  %v8645_v52 = vsub.f32 %v6999_v58, %v7549_v43  ;;  %v3726_v19 = vmul.f32 %v7595_v45, %v8646_v6 }
 0x3b7   : > { %v3721_v9 = vmul.f32 %v7595_v45, %v8641_v16  ;;  %v3723_v7 = vmul.f32 %v7595_v45, %v8643_v47  ;;  %v3724_v26 = vmul.f32 %v7595_v45, %v8644_v41  ;;  %v8647_v62 = vsub.f32 %v7024_v10, %v7549_v43 }
 0x3b8   : > { %v3725_v42 = vmul.f32 %v7595_v45, %v8645_v52  ;;  %v3728_v16 = vmul.f32 %v7595_v45, %v3653_v25  ;;  %v3729_v51 = vmul.f32 %v7595_v45, %v3654_v29  ;;  %v3730_v8 = vmul.f32 %v7595_v45, %v3655_v3 }
 0x3b9   : > { %v3727_v60 = vmul.f32 %v7595_v45, %v8647_v62  ;;  %v3731_v58 = vmul.f32 %v7595_v45, %v3656_v28  ;;  %v3732_v47 = vmul.f32 %v7595_v45, %v3657_v30  ;;  %v3733_v41 = vmul.f32 %v7595_v45, %v3658_v11 }
 0x3ba   : > { %v3734_v17 = vmul.f32 %v7595_v45, %v3659_v2  ;;  %v3735_v52 = vmul.f32 %v7595_v45, %v3660_v5  ;;  %v3736_v10 = vmul.f32 %v7595_v45, %v3661_v12  ;;  %v3737_v43 = vmul.f32 %v7595_v45, %v3662_v22 }
 0x3bb   : > { %v3738_v25 = vmul.f32 %v7595_v45, %v3663_v4  ;;  %v3739_v29 = vmul.f32 %v7595_v45, %v3664_v38  ;;  %v3740_v3 = vmul.f32 %v7595_v45, %v3665_v27  ;;  %v3741_v28 = vmul.f32 %v7595_v45, %v3666_v49 }
 0x3bc   : > { %v3742_v30 = vmul.f32 %v7595_v45, %v3667_v21  ;;  %v3743_v11 = vmul.f32 %v7595_v45, %v3668_v32  ;;  %v3744_v2 = vmul.f32 %v7595_v45, %v3669_v44  ;;  %v3745_v5 = vmul.f32 %v7595_v45, %v3670_v39 }
 0x3bd   : > { %v3746_v12 = vmul.f32 %v7595_v45, %v3671_v1  ;;  %v3747_v22 = vmul.f32 %v7595_v45, %v3672_v24  ;;  %v3748_v4 = vmul.f32 %v7595_v45, %v3673_v0  ;;  %v3749_v38 = vmul.f32 %v7595_v45, %v3674_v13 }
 0x3be   : > { %v3750_v27 = vmul.f32 %v7595_v45, %v3675_v50  ;;  %v3751_v49 = vmul.f32 %v7595_v45, %v3676_v48  ;;  %v3752_v21 = vmul.f32 %v7595_v45, %v3677_v59  ;;  %v3753_v32 = vmul.f32 %v7595_v45, %v3678_v14 }
 0x3bf   : > { %v3758_v44 = vmul.f32 %v7595_v45, %v3683_v57  ;;  %v3759_v39 = vmul.f32 %v7595_v45, %v3684_v34  ;;  %v3760_v1 = vmul.f32 %v7595_v45, %v3685_v61  ;;  %v3761_v24 = vmul.f32 %v7595_v45, %v3686_v46 }
 0x3c0   : > { %v3766_v0 = vmul.f32 %v7595_v45, %v3691_v63  ;;  %v3767_v13 = vmul.f32 %v7595_v45, %v3692_v35  ;;  %v3768_v50 = vmul.f32 %v7595_v45, %v3693_v53  ;;  %v3769_v48 = vmul.f32 %v7595_v45, %v3694_v33 }
 0x3c1   : > { %v3774_v59 = vmul.f32 %v7595_v45, %v3699_v56  ;;  %v3775_v14 = vmul.f32 %v7595_v45, %v3700_v20  ;;  %v3776_v57 = vmul.f32 %v7595_v45, %v3701_v37  ;;  %v3777_v34 = vmul.f32 %v7595_v45, %v3702_v55 }
 0x3c2   : > { %v3785_v61 = vmul.f32 %v7606_v54, %v3718_v23  ;;  %v3786_v46 = vmul.f32 %v7606_v54, %v3719_v15  ;;  %v3787_v63 = vmul.f32 %v7606_v54, %v3720_v40  ;;  %v3788_v35 = vmul.f32 %v7606_v54, %v3721_v9 }
 0x3c3   : > { %v3789_v53 = vmul.f32 %v7606_v54, %v3722_v18  ;;  %v3790_v33 = vmul.f32 %v7606_v54, %v3723_v7  ;;  %v3791_v56 = vmul.f32 %v7606_v54, %v3724_v26  ;;  %v3792_v20 = vmul.f32 %v7606_v54, %v3725_v42 }
 0x3c4   : > { %v3793_v37 = vmul.f32 %v7606_v54, %v3726_v19  ;;  %v3794_v45 = vmul.f32 %v7606_v54, %v3727_v60  ;;  %v3795_v55 = vmul.f32 %v7606_v54, %v3728_v16  ;;  %v3796_v23 = vmul.f32 %v7606_v54, %v3729_v51 }
 0x3c5   : > { %v3797_v15 = vmul.f32 %v7606_v54, %v3730_v8  ;;  %v3798_v40 = vmul.f32 %v7606_v54, %v3731_v58  ;;  %v3799_v9 = vmul.f32 %v7606_v54, %v3732_v47  ;;  %v3800_v18 = vmul.f32 %v7606_v54, %v3733_v41 }
 0x3c6   : > { %v3801_v7 = vmul.f32 %v7606_v54, %v3734_v17  ;;  %v3802_v26 = vmul.f32 %v7606_v54, %v3735_v52  ;;  %v3803_v42 = vmul.f32 %v7606_v54, %v3736_v10  ;;  %v3804_v6 = vmul.f32 %v7606_v54, %v3737_v43 }
 0x3c7   : > { %v3805_v19 = vmul.f32 %v7606_v54, %v3738_v25  ;;  %v3806_v62 = vmul.f32 %v7606_v54, %v3739_v29  ;;  %v3807_v60 = vmul.f32 %v7606_v54, %v3740_v3  ;;  %v3808_v16 = vmul.f32 %v7606_v54, %v3741_v28 }
 0x3c8   : > { %v3809_v51 = vmul.f32 %v7606_v54, %v3742_v30  ;;  %v3810_v8 = vmul.f32 %v7606_v54, %v3743_v11  ;;  %v3811_v58 = vmul.f32 %v7606_v54, %v3744_v2  ;;  %v3812_v47 = vmul.f32 %v7606_v54, %v3745_v5 }
 0x3c9   : > { %v3813_v41 = vmul.f32 %v7606_v54, %v3746_v12  ;;  %v3814_v17 = vmul.f32 %v7606_v54, %v3747_v22  ;;  %v3815_v52 = vmul.f32 %v7606_v54, %v3748_v4  ;;  %v3816_v10 = vmul.f32 %v7606_v54, %v3749_v38 }
 0x3ca   : > { %v3817_v43 = vmul.f32 %v7606_v54, %v3750_v27  ;;  %v3818_v25 = vmul.f32 %v7606_v54, %v3751_v49  ;;  %v3819_v29 = vmul.f32 %v7606_v54, %v3752_v21  ;;  %v3820_v3 = vmul.f32 %v7606_v54, %v3753_v32 }
 0x3cb   : > { %v3825_v28 = vmul.f32 %v7606_v54, %v3758_v44  ;;  %v3826_v30 = vmul.f32 %v7606_v54, %v3759_v39  ;;  %v3827_v11 = vmul.f32 %v7606_v54, %v3760_v1  ;;  %v3828_v2 = vmul.f32 %v7606_v54, %v3761_v24 }
 0x3cc   : > { %v3833_v5 = vmul.f32 %v7606_v54, %v3766_v0  ;;  %v3834_v12 = vmul.f32 %v7606_v54, %v3767_v13  ;;  %v3835_v22 = vmul.f32 %v7606_v54, %v3768_v50  ;;  %v3836_v4 = vmul.f32 %v7606_v54, %v3769_v48 }
 0x3cd   : > { %v3841_v38 = vmul.f32 %v7606_v54, %v3774_v59  ;;  %v3842_v27 = vmul.f32 %v7606_v54, %v3775_v14  ;;  %v3843_v49 = vmul.f32 %v7606_v54, %v3776_v57  ;;  %v3844_v21 = vmul.f32 %v7606_v54, %v3777_v34 }
 0x3ce   : > { %v7890_v32 = vadd.f32 %v7629_v31, %v3785_v61  ;;  %v7893_v44 = vadd.f32 %v7629_v31, %v3786_v46  ;;  %v7896_v39 = vadd.f32 %v7629_v31, %v3787_v63  ;;  %v7899_v1 = vadd.f32 %v7629_v31, %v3788_v35 }
 0x3cf   : > { %v7902_v24 = vadd.f32 %v7629_v31, %v3789_v53  ;;  %v7905_v0 = vadd.f32 %v7629_v31, %v3790_v33  ;;  %v7908_v54 = vadd.f32 %v7629_v31, %v3791_v56  ;;  %v7911_v13 = vadd.f32 %v7629_v31, %v3792_v20 }
 0x3d0   : > { %v7914_v50 = vadd.f32 %v7629_v31, %v3793_v37  ;;  %v7917_v48 = vadd.f32 %v7629_v31, %v3794_v45  ;;  %v7920_v59 = vadd.f32 %v7629_v31, %v3795_v55  ;;  %v7923_v14 = vadd.f32 %v7629_v31, %v3796_v23 }
 0x3d1   : > { %v7926_v57 = vadd.f32 %v7629_v31, %v3797_v15  ;;  %v7929_v34 = vadd.f32 %v7629_v31, %v3798_v40  ;;  %v7932_v61 = vadd.f32 %v7629_v31, %v3799_v9  ;;  %v7935_v46 = vadd.f32 %v7629_v31, %v3800_v18 }
 0x3d2   : > { %v7938_v63 = vadd.f32 %v7629_v31, %v3801_v7  ;;  %v7941_v35 = vadd.f32 %v7629_v31, %v3802_v26  ;;  %v7944_v53 = vadd.f32 %v7629_v31, %v3803_v42  ;;  %v7947_v33 = vadd.f32 %v7629_v31, %v3804_v6 }
 0x3d3   : > { %v7950_v56 = vadd.f32 %v7629_v31, %v3805_v19  ;;  %v7953_v20 = vadd.f32 %v7629_v31, %v3806_v62  ;;  %v7956_v37 = vadd.f32 %v7629_v31, %v3807_v60  ;;  %v7959_v45 = vadd.f32 %v7629_v31, %v3808_v16 }
 0x3d4   : > { %v7962_v55 = vadd.f32 %v7629_v31, %v3809_v51  ;;  %v7965_v23 = vadd.f32 %v7629_v31, %v3810_v8  ;;  %v7968_v15 = vadd.f32 %v7629_v31, %v3811_v58  ;;  %v7971_v40 = vadd.f32 %v7629_v31, %v3812_v47 }
 0x3d5   : > { %v7974_v9 = vadd.f32 %v7629_v31, %v3813_v41  ;;  %v7977_v18 = vadd.f32 %v7629_v31, %v3814_v17  ;;  %v7980_v7 = vadd.f32 %v7629_v31, %v3815_v52  ;;  %v7983_v26 = vadd.f32 %v7629_v31, %v3816_v10 }
 0x3d6   : > { %v7986_v42 = vadd.f32 %v7629_v31, %v3817_v43  ;;  %v7989_v6 = vadd.f32 %v7629_v31, %v3818_v25  ;;  %v7992_v19 = vadd.f32 %v7629_v31, %v3819_v29  ;;  %v7995_v62 = vadd.f32 %v7629_v31, %v3820_v3 }
 0x3d7   : > { %v7998_v60 = vadd.f32 %v7629_v31, %v3825_v28  ;;  %v8001_v16 = vadd.f32 %v7629_v31, %v3826_v30  ;;  %v8004_v51 = vadd.f32 %v7629_v31, %v3827_v11  ;;  %v8007_v8 = vadd.f32 %v7629_v31, %v3828_v2 }
 0x3d8   : > { %v8010_v58 = vadd.f32 %v7629_v31, %v3833_v5  ;;  %v8013_v47 = vadd.f32 %v7629_v31, %v3834_v12  ;;  %v8016_v41 = vadd.f32 %v7629_v31, %v3835_v22  ;;  %v8019_v17 = vadd.f32 %v7629_v31, %v3836_v4 }
 0x3d9   : > { %v8022_v52 = vadd.f32 %v7629_v31, %v3841_v38  ;;  %v8025_v10 = vadd.f32 %v7629_v31, %v3842_v27  ;;  %v8028_v43 = vadd.f32 %v7629_v31, %v3843_v49  ;;  %v8031_v25 = vadd.f32 %v7629_v31, %v3844_v21 }
 0x3da   : > { %v3916_v29 = vmax.f32 %v7890_v32, 0.0  ;;  %v3917_v3 = vmax.f32 %v7893_v44, 0.0  ;;  %v3918_v28 = vmax.f32 %v7896_v39, 0.0  ;;  %v3919_v30 = vmax.f32 %v7899_v1, 0.0 }
 0x3db   : > { %v3920_v11 = vmax.f32 %v7902_v24, 0.0  ;;  %v3921_v2 = vmax.f32 %v7905_v0, 0.0  ;;  %v3924_v22 = vmax.f32 %v7914_v50, 0.0  ;;  %v3925_v31 = vmax.f32 %v7917_v48, 0.0 }
 0x3dc   : > { %v3926_v4 = vmax.f32 %v7920_v59, 0.0  ;;  %v3927_v38 = vmax.f32 %v7923_v14, 0.0  ;;  %v3928_v27 = vmax.f32 %v7926_v57, 0.0  ;;  %v3929_v49 = vmax.f32 %v7929_v34, 0.0 }
 0x3dd   : > { %v3932_v44 = vmax.f32 %v7938_v63, 0.0  ;;  %v3933_v39 = vmax.f32 %v7941_v35, 0.0  ;;  %v3934_v1 = vmax.f32 %v7944_v53, 0.0  ;;  %v3935_v50 = vmax.f32 %v7947_v33, 0.0 }
 0x3de   : > { %v3936_v48 = vmax.f32 %v7950_v56, 0.0  ;;  %v3937_v59 = vmax.f32 %v7953_v20, 0.0  ;;  %v3940_v12 = vmax.f32 %v7962_v55, 0.0  ;;  %v3941_v32 = vmax.f32 %v7965_v23, 0.0 }
 0x3df   : > { %v3942_v63 = vmax.f32 %v7968_v15, 0.0  ;;  %v3943_v35 = vmax.f32 %v7971_v40, 0.0  ;;  %v3944_v53 = vmax.f32 %v7974_v9, 0.0  ;;  %v3945_v33 = vmax.f32 %v7977_v18, 0.0 }
 0x3e0   : > { %v3980_v40 = vsel %vm1756_vm7, %v3916_v29, -inf  ;;  %v3981_v9 = vsel %vm1756_vm7, %v3924_v22, -inf  ;;  %v3975_v18 = vmax.f32 %v8031_v25, 0.0  ;;  %v3987_v56 = vsel %vm1756_vm7, %v3917_v3, -inf }
 0x3e1   : > { %v3982_v5 = vmax.f32 %v3980_v40, %v3981_v9  ;;  %v3988_v21 = vsel %vm1756_vm7, %v3925_v31, -inf  ;;  %v3983_v14 = vsel %vm1756_vm7, %v3932_v44, -inf  ;;  %v8087_v57 = vsel %vm1756_vm7, %v3940_v12, -inf }
 0x3e2   : > { %v3989_v55 = vmax.f32 %v3987_v56, %v3988_v21  ;;  %v3994_v23 = vsel %vm1756_vm7, %v3918_v28, -inf  ;;  %v3990_v29 = vsel %vm1756_vm7, %v3933_v39, -inf  ;;  %v8094_v22 = vsel %vm1756_vm7, %v3941_v32, -inf }
 0x3e3   : > { %v8090_v15 = vmax.f32 %v3982_v5, %v3983_v14  ;;  %v3995_v40 = vsel %vm1756_vm7, %v3926_v4, -inf  ;;  %v4001_v44 = vsel %vm1756_vm7, %v3919_v30, -inf  ;;  %v4002_v12 = vsel %vm1756_vm7, %v3927_v38, -inf }
 0x3e4   : > { %v8097_v3 = vmax.f32 %v3989_v55, %v3990_v29  ;;  %v3996_v31 = vmax.f32 %v3994_v23, %v3995_v40  ;;  %v3997_v28 = vsel %vm1756_vm7, %v3934_v1, -inf  ;;  %v8105_v5 = vsel %vm1756_vm7, %v3942_v63, -inf }
 0x3e5   : > { %v3986_v21 = vmax.f32 %v8090_v15, %v8087_v57  ;;  %v4003_v39 = vmax.f32 %v4001_v44, %v4002_v12  ;;  %v4004_v4 = vsel %vm1756_vm7, %v3935_v50, -inf  ;;  %v4008_v14 = vsel %vm1756_vm7, %v3920_v11, -inf }
 0x3e6   : > { %v8107_v32 = vmax.f32 %v3996_v31, %v3997_v28  ;;  %v4009_v30 = vsel %vm1756_vm7, %v3928_v27, -inf  ;;  %v3993_v38 = vmax.f32 %v8097_v3, %v8094_v22  ;;  %v8119_v1 = vsel %vm1756_vm7, %v3943_v35, -inf }
 0x3e7   : > { %v8116_v57 = vmax.f32 %v4003_v39, %v4004_v4  ;;  %v4010_v63 = vmax.f32 %v4008_v14, %v4009_v30  ;;  %v4011_v56 = vsel %vm1756_vm7, %v3936_v48, -inf  ;;  %v4013_v55 = vsel %vm1756_vm7, %v3944_v53, -inf }
 0x3e8   : > { %v4015_v24 = vsel %vm1756_vm7, %v3921_v2, -inf  ;;  %v4016_v11 = vsel %vm1756_vm7, %v3929_v49, -inf  ;;  %v4000_v27 = vmax.f32 %v8107_v32, %v8105_v5  ;;  %v4018_v35 = vsel %vm1756_vm7, %v3937_v59, -inf }
 0x3e9   : > { %v4012_v50 = vmax.f32 %v4010_v63, %v4011_v56  ;;  %v4017_v23 = vmax.f32 %v4015_v24, %v4016_v11  ;;  %v4007_v48 = vmax.f32 %v8116_v57, %v8119_v1  ;;  %v4020_v0 = vsel %vm1756_vm7, %v3945_v33, -inf }
 0x3ea   : > { %v8648_v2 = vmax.f32 %v7908_v54, 0.0  ;;  %v8649_v49 = vmax.f32 %v7932_v61, 0.0  ;;  %v8650_v29 = vmax.f32 %v7956_v37, 0.0  ;;  %v8651_v59 = vmax.f32 %v7911_v13, 0.0 }
 0x3eb   : > { %v4019_v15 = vmax.f32 %v4017_v23, %v4018_v35  ;;  %v4014_v40 = vmax.f32 %v4012_v50, %v4013_v55  ;;  %v8652_v33 = vmax.f32 %v7980_v7, 0.0  ;;  %v8653_v3 = vmax.f32 %v7935_v46, 0.0 }
 0x3ec   : > { %v4022_v34 = vsel %vm1756_vm7, %v8648_v2, -inf  ;;  %v4023_v53 = vsel %vm1756_vm7, %v8649_v49, -inf  ;;  %v4025_v20 = vsel %vm1756_vm7, %v8650_v29, -inf  ;;  %v4029_v22 = vsel %vm1756_vm7, %v8651_v59, -inf }
 0x3ed   : > { %v4024_v9 = vmax.f32 %v4022_v34, %v4023_v53  ;;  %v4027_v54 = vsel %vm1756_vm7, %v8652_v33, -inf  ;;  %v4030_v61 = vsel %vm1756_vm7, %v8653_v3, -inf  ;;  %v8654_v31 = vmax.f32 %v7986_v42, 0.0 }
 0x3ee   : > { %v4031_v12 = vmax.f32 %v4029_v22, %v4030_v61  ;;  %v8655_v28 = vmax.f32 %v7959_v45, 0.0  ;;  %v8656_v5 = vmax.f32 %v7998_v60, 0.0  ;;  %v4021_v39 = vmax.f32 %v4019_v15, %v4020_v0 }
 0x3ef   : > { %v4036_v44 = vsel %vm1756_vm7, %v8654_v31, -inf  ;;  %v4026_v37 = vmax.f32 %v4024_v9, %v4025_v20  ;;  %v8657_v46 = vmax.f32 %v7983_v26, 0.0  ;;  %v8658_v42 = vmax.f32 %v7989_v6, 0.0 }
 0x3f0   : > { %v4032_v13 = vsel %vm1756_vm7, %v8655_v28, -inf  ;;  %v4037_v7 = vsel %vm1756_vm7, %v8656_v5, -inf  ;;  %v8659_v45 = vmax.f32 %v8010_v58, 0.0  ;;  %v8660_v60 = vmax.f32 %v8022_v52, 0.0 }
 0x3f1   : > { %v4034_v32 = vsel %vm1756_vm7, %v8657_v46, -inf  ;;  %v4038_v4 = vmax.f32 %v4036_v44, %v4037_v7  ;;  %v4043_v14 = vsel %vm1756_vm7, %v8658_v42, -inf  ;;  %v4033_v30 = vmax.f32 %v4031_v12, %v4032_v13 }
 0x3f2   : > { %v4039_v57 = vsel %vm1756_vm7, %v8659_v45, -inf  ;;  %v4041_v1 = vsel %vm1756_vm7, %v8660_v60, -inf  ;;  %v8661_v63 = vmax.f32 %v8001_v16, 0.0  ;;  %v4028_v56 = vmax.f32 %v4026_v37, %v4027_v54 }
 0x3f3   : > { %v4040_v55 = vmax.f32 %v4038_v4, %v4039_v57  ;;  %v8662_v6 = vmax.f32 %v7992_v19, 0.0  ;;  %v4035_v50 = vmax.f32 %v4033_v30, %v4034_v32  ;;  %v8663_v58 = vmax.f32 %v8013_v47, 0.0 }
 0x3f4   : > { %v4044_v26 = vsel %vm1756_vm7, %v8661_v63, -inf  ;;  %v8664_v52 = vmax.f32 %v8025_v10, 0.0  ;;  %v8665_v16 = vmax.f32 %v8004_v51, 0.0  ;;  %v8666_v49 = vmax.f32 %v8016_v41, 0.0 }
 0x3f5   : > { %v4045_v24 = vmax.f32 %v4043_v14, %v4044_v26  ;;  %v4050_v11 = vsel %vm1756_vm7, %v8662_v6, -inf  ;;  %v4046_v23 = vsel %vm1756_vm7, %v8663_v58, -inf  ;;  %v8667_v53 = vmax.f32 %v7995_v62, 0.0 }
 0x3f6   : > { %v4048_v35 = vsel %vm1756_vm7, %v8664_v52, -inf  ;;  %v4051_v0 = vsel %vm1756_vm7, %v8665_v16, -inf  ;;  %v4053_v19 = vsel %vm1756_vm7, %v8666_v49, -inf  ;;  %v4042_v15 = vmax.f32 %v4040_v55, %v4041_v1 }
 0x3f7   : > { %v4047_v2 = vmax.f32 %v4045_v24, %v4046_v23  ;;  %v4052_v34 = vmax.f32 %v4050_v11, %v4051_v0  ;;  %v4057_v47 = vsel %vm1756_vm7, %v8667_v53, -inf  ;;  %v8668_v9 = vmax.f32 %v8028_v43, 0.0 }
 0x3f8   : > { %v8669_v29 = vmax.f32 %v8007_v8, 0.0  ;;  %v4092_v20 = vsel %vm1756_vm7, %v3986_v21, -inf  ;;  %v4093_v33 = vsel %vm1756_vm7, %v3993_v38, -inf  ;;  %v8670_v62 = vmax.f32 %v8019_v17, 0.0 }
 0x3f9   : > { %v4055_v10 = vsel %vm1756_vm7, %v8668_v9, -inf  ;;  %v4049_v59 = vmax.f32 %v4047_v2, %v4048_v35  ;;  %v4054_v22 = vmax.f32 %v4052_v34, %v4053_v19  ;;  %v4062_v43 = vsel %vm1756_vm7, %v3975_v18, -inf }
 0x3fa   : > { %v4058_v51 = vsel %vm1756_vm7, %v8669_v29, -inf  ;;  %v4060_v54 = vsel %vm1756_vm7, %v8670_v62, -inf  ;;  %v4094_v3 = vmax.f32 %v4092_v20, %v4093_v33  ;;  %v4099_v8 = vsel %vm1756_vm7, %v4014_v40, -inf }
 0x3fb   : > { %v4059_v41 = vmax.f32 %v4057_v47, %v4058_v51  ;;  %v4056_v61 = vmax.f32 %v4054_v22, %v4055_v10  ;;  %v4095_v21 = vsel %vm1756_vm7, %v4000_v27, -inf  ;;  %v4100_v44 = vsel %vm1756_vm7, %v4021_v39, -inf }
 0x3fc   : > { %v4096_v37 = vmax.f32 %v4094_v3, %v4095_v21  ;;  %v4097_v38 = vsel %vm1756_vm7, %v4007_v48, -inf  ;;  %v4101_v12 = vmax.f32 %v4099_v8, %v4100_v44  ;;  %v4106_v17 = vsel %vm1756_vm7, %v4042_v15, -inf }
 0x3fd   : > { %v4061_v31 = vmax.f32 %v4059_v41, %v4060_v54  ;;  %v4102_v25 = vsel %vm1756_vm7, %v4028_v56, -inf  ;;  %v4107_v18 = vsel %vm1756_vm7, %v4049_v59, -inf  ;;  %v4127_v13 = vrot.slane %v7717_v36, 4 }
 0x3fe   : > { %v4098_v40 = vmax.f32 %v4096_v37, %v4097_v38  ;;  %v4103_v5 = vmax.f32 %v4101_v12, %v4102_v25  ;;  %v4108_v7 = vmax.f32 %v4106_v17, %v4107_v18  ;;  %v4175_v27 = vsel %vm4132_vm14, %v7717_v36, -inf }
 0x3ff   : > { %v4063_v28 = vmax.f32 %v4061_v31, %v4062_v43  ;;  %v4104_v39 = vsel %vm1756_vm7, %v4035_v50, -inf  ;;  %v4109_v48 = vsel %vm1756_vm7, %v4056_v61, -inf  ;;  %v4176_v46 = vrot.slane %v4175_v27, 4 }
 0x400   : > { %v4182_v32 = vsel %vm4132_vm14, %v4127_v13, -inf  ;;  %v4105_v4 = vmax.f32 %v4103_v5, %v4104_v39  ;;  %v4110_v42 = vmax.f32 %v4108_v7, %v4109_v48  ;;  %v4124_v14 = vrot.slane %v4098_v40, 4 }
 0x401   : > { %v4133_v30 = vsel %vm4132_vm14, %v4098_v40, -inf  ;;  %v4111_v45 = vsel %vm1756_vm7, %v4063_v28, -inf  ;;  %v4177_v60 = vmax.f32 %v4175_v27, %v4176_v46  ;;  %v4183_v1 = vrot.slane %v4182_v32, 4 }
 0x402   : > { %v4134_v57 = vrot.slane %v4133_v30, 4  ;;  %v4112_v63 = vmax.f32 %v4110_v42, %v4111_v45  ;;  %v4125_v26 = vrot.slane %v4105_v4, 4  ;;  %v4140_v36 = vsel %vm4132_vm14, %v4124_v14, -inf }
 0x403   : > { %v4147_v56 = vsel %vm4132_vm14, %v4105_v4, -inf  ;;  %v4141_v24 = vrot.slane %v4140_v36, 4  ;;  %v4184_v23 = vmax.f32 %v4182_v32, %v4183_v1  ;;  %v4178_v49 = vrot.slane %v4177_v60, 2 }
 0x404   : > { %v4135_v55 = vmax.f32 %v4133_v30, %v4134_v57  ;;  %v4148_v6 = vrot.slane %v4147_v56, 4  ;;  %v4126_v11 = vrot.slane %v4112_v63, 4  ;;  %v4154_v50 = vsel %vm4132_vm14, %v4125_v26, -inf }
 0x405   : > { %v4161_v58 = vsel %vm4132_vm14, %v4112_v63, -inf  ;;  %v4142_v35 = vmax.f32 %v4140_v36, %v4141_v24  ;;  %v4155_v0 = vrot.slane %v4154_v50, 4  ;;  %v4185_v29 = vrot.slane %v4184_v23, 2 }
 0x406   : > { %v4136_v52 = vrot.slane %v4135_v55, 2  ;;  %v4149_v16 = vmax.f32 %v4147_v56, %v4148_v6  ;;  %v4162_v2 = vrot.slane %v4161_v58, 4  ;;  %v4168_v34 = vsel %vm4132_vm14, %v4126_v11, -inf }
 0x407   : > { %v4143_v53 = vrot.slane %v4142_v35, 2  ;;  %v4156_v15 = vmax.f32 %v4154_v50, %v4155_v0  ;;  %v4169_v10 = vrot.slane %v4168_v34, 4  ;;  %v4179_v3 = vmax.f32 %v4177_v60, %v4178_v49 }
 0x408   : > { %v4137_v19 = vmax.f32 %v4135_v55, %v4136_v52  ;;  %v4150_v47 = vrot.slane %v4149_v16, 2  ;;  %v4163_v9 = vmax.f32 %v4161_v58, %v4162_v2  ;;  %v4186_v31 = vmax.f32 %v4184_v23, %v4185_v29 }
 0x409   : > { %v4144_v20 = vmax.f32 %v4142_v35, %v4143_v53  ;;  %v4157_v22 = vrot.slane %v4156_v15, 2  ;;  %v4170_v33 = vmax.f32 %v4168_v34, %v4169_v10  ;;  %v4180_v25 = vrot.slane %v4179_v3, 1 }
 0x40a   : > { %v4138_v51 = vrot.slane %v4137_v19, 1  ;;  %v4151_v59 = vmax.f32 %v4149_v16, %v4150_v47  ;;  %v4164_v41 = vrot.slane %v4163_v9, 2  ;;  %v4187_v5 = vrot.slane %v4186_v31, 1 }
 0x40b   : > { %v4145_v62 = vrot.slane %v4144_v20, 1  ;;  %v4158_v43 = vmax.f32 %v4156_v15, %v4157_v22  ;;  %v4171_v61 = vrot.slane %v4170_v33, 2  ;;  %v4181_v46 = vmax.f32 %v4179_v3, %v4180_v25 }
 0x40c   : > { %v4152_v54 = vrot.slane %v4151_v59, 1  ;;  %v4165_v8 = vmax.f32 %v4163_v9, %v4164_v41  ;;  %v4139_v21 = vmax.f32 %v4137_v19, %v4138_v51  ;;  %v4188_v32 = vmax.f32 %v4186_v31, %v4187_v5 }
 0x40d   : > { %v4146_v44 = vmax.f32 %v4144_v20, %v4145_v62  ;;  %v4159_v37 = vrot.slane %v4158_v43, 1  ;;  %v4172_v17 = vmax.f32 %v4170_v33, %v4171_v61 }
 0x40e   : > { %v4153_v38 = vmax.f32 %v4151_v59, %v4152_v54  ;;  %v4166_v12 = vrot.slane %v4165_v8, 1 }
 0x40f   : > { %v4160_v28 = vmax.f32 %v4158_v43, %v4159_v37  ;;  %v4198_v18 = vsel %vm4197_vm15, %v4146_v44, %v4139_v21  ;;  %v4173_v40 = vrot.slane %v4172_v17, 1 }
 0x410   : > { %v4167_v13 = vmax.f32 %v4165_v8, %v4166_v12  ;;  %v4200_v7 = vsel %vm4199_vm0, %v4153_v38, %v4198_v18 }
 0x411   : > { %v4202_v27 = vsel %vm4201_vm1, %v4160_v28, %v4200_v7  ;;  %v4174_v39 = vmax.f32 %v4172_v17, %v4173_v40 }
 0x412   : > { %v4204_v48 = vsel %vm4203_vm2, %v4167_v13, %v4202_v27 }
 0x413   : > { %v4206_v4 = vsel %vm4205_vm3, %v4174_v39, %v4204_v48 }
 0x414   : > { %v4208_v42 = vsel %vm4207_vm4, %v4181_v46, %v4206_v4 }
 0x415   : > { %v4210_v14 = vsel %vm4209_vm5, %v4188_v32, %v4208_v42 }
 0x416   : > { %v4212_v30 = vsel %vm1756_vm7, %v4210_v14, 0.0 }
 0x417   : > { %4213 = vst [vmem:[%s367_s17] sm:$0xff] %v4212_v30 }
 0x418   : > { %4773 = shalt.err (!%p4770_p3)
}
 0x419   : > { %4696 = dma.vmem_to_hbm [thread:$0]  (%p4904_p5), %s4228_s30, 128, %s4230_s11, %s4215_s12  }
 0x41a PF: > { %p4702_p4 = scmp.ge.s32.totalorder %s4808_s16, 2  ;;  %s4241_s21 = sand.u32 1, %s4796_s13  }
 0x41b   : > { %s4242_s17 = scalar_lea.sflag [#allocation3], %s4241_s21 }
 0x41c   : > { %p4699_p7 = pnand %p4702_p4, %p4908_p6 }
 0x41e   : > { %p4700_p8 = pneg %p4699_p7 }
 0x420   : > { %4791 = dma.done.wait (%p4700_p8), %s4242_s17, 128  }
 0x421   : > { %4793 = vsyncadd (%p4700_p8), %s4242_s17, 4294967168  ;;  %p20_p9 = scmp.ge.s32.totalorder %s4891_s19, 4   ;;  %s8671_s13 = smov %s4800_s14 }
 0x422   : > { %s8672_s14 = smov %s4804_s15  ;;  %s8673_s15 = smov %s4902_s22 }
 0x423   : > { %s8674_s16 = smov %s4891_s19  ;;  %22 = sbr.rel (!%p20_p9) target bundleno = 3 (0x3), region = 98 }
 0x428   :  { %4248 = vsyncpa [#allocation3], 1 }
 0x429   :  { %4250 = vsyncpa [#allocation3 + $0x1], 1 }

</bundles_post_ra>
